<compile_context>
chip_gen: v6e
topology: v6e:2x2x1
jax: 0.10.0
libtpu: 0.0.40
codegen_flags: <defaults>
</compile_context>

<pallas_src>
import functools

import jax
import jax.numpy as jnp
from jax.experimental import pallas as pl
from jax.experimental.pallas import tpu as pltpu


# ----------------------------------------------------------------------------
# helpers
# ----------------------------------------------------------------------------
def _matmul_nt(a, b):
    """a (M, K) @ b (N, K)^T -> (M, N) with f32 accumulation on the MXU.

    `a` is cast to b.dtype, so bf16 weights give native bf16 x bf16 -> f32
    MXU matmuls; with f32 weights the cast is a no-op.
    """
    return jax.lax.dot_general(
        a.astype(b.dtype), b, (((1,), (1,)), ((), ())),
        preferred_element_type=jnp.float32)


def _sigmoid(x):
    # sigmoid(x) = 0.5 * (1 + tanh(x / 2)): one EUP tanh, no full-width divide.
    return 0.5 * (jnp.tanh(0.5 * x) + 1.0)


def _layer_norm(x, gamma, beta, eps=1e-5):
    mean = jnp.mean(x, axis=-1, keepdims=True)
    var = jnp.mean(jnp.square(x - mean), axis=-1, keepdims=True)
    return (x - mean) * jax.lax.rsqrt(var + eps) * gamma + beta


# ----------------------------------------------------------------------------
# Fused kernel: LSTM + time-emb add + TransformerEncoderLayer + Linear(H, 96)
# ----------------------------------------------------------------------------
def fused_attention_kernel(nhead, T, B,
                           x_ref,                       # (T*B, D), token-major (t, b)
                           wih_ref, whh_ref,            # (4H, D), (4H, H)
                           wqkv_ref, wo_ref,            # (3H, H), (H, H)
                           w1_ref, w2_ref,              # (H, H),  (H, H)
                           wf_ref,                      # (o_pad, H), zero-padded rows
                           vec_ref,                     # (11, vw) f32 packed 1-row params
                           out_ref,                     # (T*B, o_pad) f32, lane-dense
                           hid_scr):                    # (T*B, H) f32 scratch
    """Transformer attends over the B axis (S=B, N=T), exactly reproducing
    PyTorch's batch_first=False TransformerEncoderLayer fed the batch-first
    LSTM output, as in the original nn.Module."""
    H = whh_ref.shape[1]
    NS = T * B
    E = H
    hd = H // nhead
    o_pad = out_ref.shape[1]
    mxu_dt = wqkv_ref.dtype

    # ---- unpack the single packed small-vector slab (one DMA) ----
    b_lstm = vec_ref[0:1, :4 * H]
    bqkv = vec_ref[1:2, :3 * H]
    bo = vec_ref[2:3, :H]
    b1 = vec_ref[3:4, :H]
    b2 = vec_ref[4:5, :H]
    g1 = vec_ref[5:6, :H]
    be1 = vec_ref[6:7, :H]
    g2 = vec_ref[7:8, :H]
    be2 = vec_ref[8:9, :H]
    bf = vec_ref[9:10, :o_pad]
    temb = vec_ref[10:11, :H]

    # ---------------- LSTM ----------------
    # Input projection hoisted out of the recurrence: one big MXU matmul.
    # gx stays live (a few vregs); no scratch round-trip.
    gx = _matmul_nt(x_ref[...], wih_ref[...]) + b_lstm          # (NS, 4H) f32
    whh = whh_ref[...]                                          # hoisted load

    h = jnp.zeros((B, H), jnp.float32)
    c = jnp.zeros((B, H), jnp.float32)
    # T is static and small: static Python loop -> fully static slices.
    for t in range(T):
        gates = gx[t * B:(t + 1) * B, :] + _matmul_nt(h, whh)   # (B, 4H) f32
        # Full-width nonlinearities over the whole 4H-lane gate block.
        sig = _sigmoid(gates)
        tnh = jnp.tanh(gates)
        i_g = sig[:, 0 * H:1 * H]          # PyTorch gate order i, f, g, o
        f_g = sig[:, 1 * H:2 * H]
        g_g = tnh[:, 2 * H:3 * H]
        o_g = sig[:, 3 * H:4 * H]
        c = f_g * c + i_g * g_g
        h = o_g * jnp.tanh(c)
        hid_scr[t * B:(t + 1) * B, :] = h                       # static-slice store

    # ------------- time-emb add + transformer encoder layer -------------
    x_tok = hid_scr[...] + temb                                 # (NS, E) f32
    qkv = _matmul_nt(x_tok, wqkv_ref[...]) + bqkv               # (NS, 3E) f32
    scale = 1.0 / float(hd) ** 0.5

    def split_heads(col0):
        # (NS, E) lanes -> (nhead*T, B, hd), leading batch ordered (head, t).
        # Uses only lane slices + leading-dim reshape + axis-0 concat
        # (no 4D transposes).
        return jnp.concatenate(
            [qkv[:, col0 + hh * hd: col0 + (hh + 1) * hd].reshape(T, B, hd)
             for hh in range(nhead)], axis=0).astype(mxu_dt)

    q = split_heads(0)
    k = split_heads(E)
    v = split_heads(2 * E)

    # Batched-head attention: one score contraction, ONE softmax, one context
    # contraction over the merged (nhead*T) batch.
    s = jnp.einsum('nid,njd->nij', q, k,
                   preferred_element_type=jnp.float32) * scale   # (nhead*T, B, B)
    s = s - jnp.max(s, axis=-1, keepdims=True)
    p = jnp.exp(s)
    p = p * pl.reciprocal(jnp.sum(p, axis=-1, keepdims=True), approx=True)
    ctx = jnp.einsum('nij,njd->nid', p.astype(mxu_dt), v,
                     preferred_element_type=jnp.float32)         # (nhead*T, B, hd)

    # Reassemble heads into lanes (PyTorch head-concat order), then a single
    # full-K W_o matmul instead of 4 K=hd matmuls.
    ctx_full = jnp.concatenate(
        [ctx[hh * T:(hh + 1) * T].reshape(NS, hd) for hh in range(nhead)],
        axis=-1)                                                 # (NS, E) f32
    attn = _matmul_nt(ctx_full, wo_ref[...]) + bo

    # residual + LayerNorm1 (post-norm), FFN (ReLU), residual + LayerNorm2
    x1 = _layer_norm(x_tok + attn, g1, be1)
    h1 = jnp.maximum(_matmul_nt(x1, w1_ref[...]) + b1, 0.0)
    h2 = _matmul_nt(h1, w2_ref[...]) + b2
    x2 = _layer_norm(x1 + h2, g2, be2)

    # final Linear(H, 96) zero-padded to o_pad lanes: dense unmasked stores.
    out_ref[...] = _matmul_nt(x2, wf_ref[...]) + bf              # (NS, o_pad)


# ----------------------------------------------------------------------------
# Glue: positional encoding + wrapper around the fused pallas_call
# ----------------------------------------------------------------------------
def positional_encoding(noise_level, n_channels, linear_scale=5000.0):
    if noise_level.ndim > 1:
        noise_level = jnp.squeeze(noise_level, axis=-1)
    half = n_channels // 2
    exponents = jnp.arange(half, dtype=jnp.float32) / float(half)
    exponents = 0.0001 ** exponents
    e = linear_scale * noise_level[:, None] * exponents[None, :]
    return jnp.concatenate([jnp.sin(e), jnp.cos(e)], axis=-1)    # (n_y, H)


def attention_forward(params, x, y, nhead=4, mxu_dtype=jnp.bfloat16):
    """Full forward pass as ONE fused Pallas kernel (hidden states stay in VMEM)."""
    B, T, D = x.shape
    H = params['whh'].shape[1]
    O = params['wf'].shape[0]
    NS = T * B
    o_pad = ((O + 127) // 128) * 128                 # lane-dense output width
    vw = max(4 * H, 3 * H, o_pad, 128)
    vw = ((vw + 127) // 128) * 128                   # packed-vector row width

    temb = positional_encoding(y, H).astype(jnp.float32)         # (1, H)

    # Layout plumbing done once in the wrapper: time-major, token-flattened,
    # pre-cast to the MXU dtype (halves input DMA bytes on the bf16 path).
    x_tok = jnp.transpose(x, (1, 0, 2)).reshape(NS, D).astype(mxu_dtype)

    wf_pad = jnp.zeros((o_pad, H), jnp.float32).at[:O, :].set(params['wf'])

    def row(v):
        v = jnp.asarray(v, jnp.float32).reshape(-1)
        return jnp.zeros((vw,), jnp.float32).at[:v.shape[0]].set(v)

    # Pack all 1-row vectors + padded final bias + time embedding -> one DMA.
    vec_pack = jnp.stack([
        row(params['b_lstm']), row(params['bqkv']), row(params['bo']),
        row(params['b1']), row(params['b2']),
        row(params['g1']), row(params['be1']),
        row(params['g2']), row(params['be2']),
        row(jnp.zeros((o_pad,), jnp.float32).at[:O].set(params['bf'])),
        row(temb[0]),
    ], axis=0)                                                   # (11, vw) f32

    mm = lambda w: w.astype(mxu_dtype)               # MXU weight operands

    kernel = functools.partial(fused_attention_kernel, nhead, T, B)
    out2d = pl.pallas_call(
        kernel,
        out_shape=jax.ShapeDtypeStruct((NS, o_pad), jnp.float32),
        in_specs=[pl.BlockSpec(memory_space=pltpu.MemorySpace.VMEM)] * 9,
        out_specs=pl.BlockSpec(memory_space=pltpu.MemorySpace.VMEM),
        scratch_shapes=[pltpu.VMEM((NS, H), jnp.float32)],        # hidden states
    )(x_tok,
      mm(params['wih']), mm(params['whh']),
      mm(params['wqkv']), mm(params['wo']),
      mm(params['w1']), mm(params['w2']),
      mm(wf_pad), vec_pack)

    # (NS, o_pad) -> (T, B, o_pad) -> (B, T, O): cheap wrapper-side plumbing.
    return jnp.transpose(out2d.reshape(T, B, o_pad), (1, 0, 2))[:, :, :O]


# ----------------------------------------------------------------------------
# Pure-JAX reference (same math, no Pallas) — correctness check only
# ----------------------------------------------------------------------------
def reference_forward(params, x, y, nhead=4):
    B, T, _ = x.shape
    H = params['whh'].shape[1]

    def step(carry, x_t):
        h, c = carry
        g = x_t @ params['wih'].T + h @ params['whh'].T + params['b_lstm']
        i = jax.nn.sigmoid(g[:, :H]); f = jax.nn.sigmoid(g[:, H:2 * H])
        gg = jnp.tanh(g[:, 2 * H:3 * H]); o = jax.nn.sigmoid(g[:, 3 * H:])
        c = f * c + i * gg
        h = o * jnp.tanh(c)
        return (h, c), h

    x_tm = jnp.transpose(x, (1, 0, 2))
    (_, _), hid_tm = jax.lax.scan(step, (jnp.zeros((B, H)), jnp.zeros((B, H))), x_tm)
    hid = jnp.transpose(hid_tm, (1, 0, 2))
    xh = hid + positional_encoding(y, H)

    S, N, E = xh.shape
    hd = E // nhead
    x2d = xh.reshape(S * N, E)
    qkv = (x2d @ params['wqkv'].T + params['bqkv']).reshape(S, N, 3 * E)
    q = qkv[..., :E].reshape(S, N * nhead, hd)
    k = qkv[..., E:2 * E].reshape(S, N * nhead, hd)
    v = qkv[..., 2 * E:].reshape(S, N * nhead, hd)
    scores = jnp.einsum('ibd,jbd->bij', q, k) / float(hd) ** 0.5
    p = jax.nn.softmax(scores, axis=-1)
    ctx = jnp.einsum('bij,jbd->ibd', p, v).reshape(S * N, E)
    attn = ctx @ params['wo'].T + params['bo']

    def ln(z, g, b):
        m = z.mean(-1, keepdims=True)
        v_ = ((z - m) ** 2).mean(-1, keepdims=True)
        return (z - m) / jnp.sqrt(v_ + 1e-5) * g + b

    x1 = ln(x2d + attn, params['g1'], params['be1'])
    h1 = jax.nn.relu(x1 @ params['w1'].T + params['b1'])
    h2 = h1 @ params['w2'].T + params['b2']
    x2 = ln(x1 + h2, params['g2'], params['be2'])
    out = x2 @ params['wf'].T + params['bf']
    return out.reshape(S, N, -1)


# ----------------------------------------------------------------------------
# Deterministic synthetic parameter init (shapes from Attention.__init__)
# ----------------------------------------------------------------------------
def init_params(key, input_dim, hidden_dim, out_dim=96):
    H = hidden_dim
    ks = jax.random.split(key, 12)

    def nrm(k, shape, scale=0.1):
        return scale * jax.random.normal(k, shape, jnp.float32)

    return dict(
        # LSTM(input_dim, H): b_ih + b_hh folded into one bias
        wih=nrm(ks[0], (4 * H, input_dim)),
        whh=nrm(ks[1], (4 * H, H)),
        b_lstm=nrm(ks[2], (4 * H,)),
        # MultiheadAttention(H, nhead=4)
        wqkv=nrm(ks[3], (3 * H, H)),
        bqkv=nrm(ks[4], (3 * H,)),
        wo=nrm(ks[5], (H, H)),
        bo=nrm(ks[6], (H,)),
        # FFN: dim_feedforward = hidden_dim
        w1=nrm(ks[7], (H, H)),
        b1=nrm(ks[8], (H,)),
        w2=nrm(ks[9], (H, H)),
        b2=nrm(ks[10], (H,)),
        # LayerNorms
        g1=jnp.ones((H,), jnp.float32), be1=jnp.zeros((H,), jnp.float32),
        g2=jnp.ones((H,), jnp.float32), be2=jnp.zeros((H,), jnp.float32),
        # final Linear(H, 96)
        wf=nrm(ks[11], (out_dim, H)),
        bf=jnp.zeros((out_dim,), jnp.float32),
    )


if __name__ == "__main__":
    B, T, D, H = 4, 8, 16, 32
    key = jax.random.PRNGKey(0)
    kx, ky, kp = jax.random.split(key, 3)
    x = jax.random.normal(kx, (B, T, D), jnp.float32)
    y = jax.random.uniform(ky, (1, 1), jnp.float32)   # noise level, squeezed to (1,)
    params = init_params(kp, D, H)

    ref = jax.block_until_ready(reference_forward(params, x, y))

    # f32 MXU path: tight structural check.
    fwd_f32 = jax.jit(functools.partial(attention_forward, mxu_dtype=jnp.float32))
    out_f32 = jax.block_until_ready(fwd_f32(params, x, y))
    assert out_f32.shape == (B, T, 96), out_f32.shape
    err32 = float(jnp.max(jnp.abs(out_f32 - ref)))
    assert err32 < 5e-3, f"f32 max abs err {err32}"

    # bf16 MXU path (default on all generations): f32 accumulation, looser tol.
    fwd_bf16 = jax.jit(attention_forward)
    out_bf16 = jax.block_until_ready(fwd_bf16(params, x, y))
    assert out_bf16.shape == (B, T, 96), out_bf16.shape
    err16 = float(jnp.max(jnp.abs(out_bf16 - ref)))
    assert err16 < 1.5e-1, f"bf16 max abs err {err16}"

    print("KERNEL_OK")
</pallas_src>

<mosaic_0001>
module attributes {stable_mosaic.version = 11 : i64} {
  func.func @fused_attention_kernel(%arg0: memref<32x16xf32, #tpu.memory_space<vmem>>, %arg1: memref<128x16xf32, #tpu.memory_space<vmem>>, %arg2: memref<128x32xf32, #tpu.memory_space<vmem>>, %arg3: memref<96x32xf32, #tpu.memory_space<vmem>>, %arg4: memref<32x32xf32, #tpu.memory_space<vmem>>, %arg5: memref<32x32xf32, #tpu.memory_space<vmem>>, %arg6: memref<32x32xf32, #tpu.memory_space<vmem>>, %arg7: memref<128x32xf32, #tpu.memory_space<vmem>>, %arg8: memref<11x128xf32, #tpu.memory_space<vmem>>, %arg9: memref<32x128xf32, #tpu.memory_space<vmem>>, %arg10: memref<32x32xf32, #tpu.memory_space<vmem>>) attributes {dimension_semantics = [], scalar_prefetch = 0 : i64, scratch_operands = 1 : i64, tpu.core_type = #tpu.core_type<tc>} {
    %c0 = arith.constant 0 : index
    %c0_0 = arith.constant 0 : index
    %0 = vector.load %arg8[%c0, %c0_0] : memref<11x128xf32, #tpu.memory_space<vmem>>, vector<1x128xf32>
    %c1 = arith.constant 1 : index
    %c0_1 = arith.constant 0 : index
    %1 = vector.load %arg8[%c1, %c0_1] : memref<11x128xf32, #tpu.memory_space<vmem>>, vector<1x96xf32>
    %c2 = arith.constant 2 : index
    %c0_2 = arith.constant 0 : index
    %2 = vector.load %arg8[%c2, %c0_2] : memref<11x128xf32, #tpu.memory_space<vmem>>, vector<1x32xf32>
    %c3 = arith.constant 3 : index
    %c0_3 = arith.constant 0 : index
    %3 = vector.load %arg8[%c3, %c0_3] : memref<11x128xf32, #tpu.memory_space<vmem>>, vector<1x32xf32>
    %c4 = arith.constant 4 : index
    %c0_4 = arith.constant 0 : index
    %4 = vector.load %arg8[%c4, %c0_4] : memref<11x128xf32, #tpu.memory_space<vmem>>, vector<1x32xf32>
    %c5 = arith.constant 5 : index
    %c0_5 = arith.constant 0 : index
    %5 = vector.load %arg8[%c5, %c0_5] : memref<11x128xf32, #tpu.memory_space<vmem>>, vector<1x32xf32>
    %c6 = arith.constant 6 : index
    %c0_6 = arith.constant 0 : index
    %6 = vector.load %arg8[%c6, %c0_6] : memref<11x128xf32, #tpu.memory_space<vmem>>, vector<1x32xf32>
    %c7 = arith.constant 7 : index
    %c0_7 = arith.constant 0 : index
    %7 = vector.load %arg8[%c7, %c0_7] : memref<11x128xf32, #tpu.memory_space<vmem>>, vector<1x32xf32>
    %c8 = arith.constant 8 : index
    %c0_8 = arith.constant 0 : index
    %8 = vector.load %arg8[%c8, %c0_8] : memref<11x128xf32, #tpu.memory_space<vmem>>, vector<1x32xf32>
    %c9 = arith.constant 9 : index
    %c0_9 = arith.constant 0 : index
    %9 = vector.load %arg8[%c9, %c0_9] : memref<11x128xf32, #tpu.memory_space<vmem>>, vector<1x128xf32>
    %c10 = arith.constant 10 : index
    %c0_10 = arith.constant 0 : index
    %10 = vector.load %arg8[%c10, %c0_10] : memref<11x128xf32, #tpu.memory_space<vmem>>, vector<1x32xf32>
    %c0_11 = arith.constant 0 : index
    %c0_12 = arith.constant 0 : index
    %11 = vector.load %arg0[%c0_11, %c0_12] : memref<32x16xf32, #tpu.memory_space<vmem>>, vector<32x16xf32>
    %c0_13 = arith.constant 0 : index
    %c0_14 = arith.constant 0 : index
    %12 = vector.load %arg1[%c0_13, %c0_14] : memref<128x16xf32, #tpu.memory_space<vmem>>, vector<128x16xf32>
    %cst = arith.constant dense<0.000000e+00> : vector<32x128xf32>
    %13 = tpu.matmul %11, %12, %cst {dimension_numbers = #tpu.dot_dimension_numbers<[1], [1], [0], [0], [0, 0, 1, 0], [], []>} : vector<32x16xf32>, vector<128x16xf32>, vector<32x128xf32> -> vector<32x128xf32>
    %14 = vector.broadcast %0 : vector<1x128xf32> to vector<32x128xf32>
    %15 = arith.addf %13, %14 : vector<32x128xf32>
    %c0_15 = arith.constant 0 : index
    %c0_16 = arith.constant 0 : index
    %16 = vector.load %arg2[%c0_15, %c0_16] : memref<128x32xf32, #tpu.memory_space<vmem>>, vector<128x32xf32>
    %cst_17 = arith.constant 0.000000e+00 : f32
    %17 = vector.broadcast %cst_17 : f32 to vector<4x32xf32>
    %cst_18 = arith.constant 0.000000e+00 : f32
    %18 = vector.broadcast %cst_18 : f32 to vector<4x32xf32>
    %19 = vector.extract_strided_slice %15 {offsets = [0, 0], sizes = [4, 128], strides = [1, 1]} : vector<32x128xf32> to vector<4x128xf32>
    %cst_19 = arith.constant dense<0.000000e+00> : vector<4x128xf32>
    %20 = tpu.matmul %17, %16, %cst_19 {dimension_numbers = #tpu.dot_dimension_numbers<[1], [1], [0], [0], [0, 0, 1, 0], [], []>} : vector<4x32xf32>, vector<128x32xf32>, vector<4x128xf32> -> vector<4x128xf32>
    %21 = arith.addf %19, %20 : vector<4x128xf32>
    %cst_20 = arith.constant 5.000000e-01 : f32
    %22 = vector.broadcast %cst_20 : f32 to vector<4x128xf32>
    %23 = arith.mulf %22, %21 : vector<4x128xf32>
    %24 = math.tanh %23 : vector<4x128xf32>
    %cst_21 = arith.constant 1.000000e+00 : f32
    %25 = vector.broadcast %cst_21 : f32 to vector<4x128xf32>
    %26 = arith.addf %24, %25 : vector<4x128xf32>
    %cst_22 = arith.constant 5.000000e-01 : f32
    %27 = vector.broadcast %cst_22 : f32 to vector<4x128xf32>
    %28 = arith.mulf %27, %26 : vector<4x128xf32>
    %29 = math.tanh %21 : vector<4x128xf32>
    %30 = vector.extract_strided_slice %28 {offsets = [0, 0], sizes = [4, 32], strides = [1, 1]} : vector<4x128xf32> to vector<4x32xf32>
    %31 = vector.extract_strided_slice %28 {offsets = [0, 32], sizes = [4, 32], strides = [1, 1]} : vector<4x128xf32> to vector<4x32xf32>
    %32 = vector.extract_strided_slice %29 {offsets = [0, 64], sizes = [4, 32], strides = [1, 1]} : vector<4x128xf32> to vector<4x32xf32>
    %33 = vector.extract_strided_slice %28 {offsets = [0, 96], sizes = [4, 32], strides = [1, 1]} : vector<4x128xf32> to vector<4x32xf32>
    %34 = arith.mulf %31, %18 : vector<4x32xf32>
    %35 = arith.mulf %30, %32 : vector<4x32xf32>
    %36 = arith.addf %34, %35 : vector<4x32xf32>
    %37 = math.tanh %36 : vector<4x32xf32>
    %38 = arith.mulf %33, %37 : vector<4x32xf32>
    %c0_23 = arith.constant 0 : index
    %c0_24 = arith.constant 0 : index
    %39 = vector.load %arg10[%c0_23, %c0_24] : memref<32x32xf32, #tpu.memory_space<vmem>>, vector<4x32xf32>
    tpu.vector_store %arg10[%c0_23, %c0_24], %38 {strides = array<i32>} : memref<32x32xf32, #tpu.memory_space<vmem>>, vector<4x32xf32>,
    %40 = vector.extract_strided_slice %15 {offsets = [4, 0], sizes = [4, 128], strides = [1, 1]} : vector<32x128xf32> to vector<4x128xf32>
    %cst_25 = arith.constant dense<0.000000e+00> : vector<4x128xf32>
    %41 = tpu.matmul %38, %16, %cst_25 {dimension_numbers = #tpu.dot_dimension_numbers<[1], [1], [0], [0], [0, 0, 1, 0], [], []>} : vector<4x32xf32>, vector<128x32xf32>, vector<4x128xf32> -> vector<4x128xf32>
    %42 = arith.addf %40, %41 : vector<4x128xf32>
    %cst_26 = arith.constant 5.000000e-01 : f32
    %43 = vector.broadcast %cst_26 : f32 to vector<4x128xf32>
    %44 = arith.mulf %43, %42 : vector<4x128xf32>
    %45 = math.tanh %44 : vector<4x128xf32>
    %cst_27 = arith.constant 1.000000e+00 : f32
    %46 = vector.broadcast %cst_27 : f32 to vector<4x128xf32>
    %47 = arith.addf %45, %46 : vector<4x128xf32>
    %cst_28 = arith.constant 5.000000e-01 : f32
    %48 = vector.broadcast %cst_28 : f32 to vector<4x128xf32>
    %49 = arith.mulf %48, %47 : vector<4x128xf32>
    %50 = math.tanh %42 : vector<4x128xf32>
    %51 = vector.extract_strided_slice %49 {offsets = [0, 0], sizes = [4, 32], strides = [1, 1]} : vector<4x128xf32> to vector<4x32xf32>
    %52 = vector.extract_strided_slice %49 {offsets = [0, 32], sizes = [4, 32], strides = [1, 1]} : vector<4x128xf32> to vector<4x32xf32>
    %53 = vector.extract_strided_slice %50 {offsets = [0, 64], sizes = [4, 32], strides = [1, 1]} : vector<4x128xf32> to vector<4x32xf32>
    %54 = vector.extract_strided_slice %49 {offsets = [0, 96], sizes = [4, 32], strides = [1, 1]} : vector<4x128xf32> to vector<4x32xf32>
    %55 = arith.mulf %52, %36 : vector<4x32xf32>
    %56 = arith.mulf %51, %53 : vector<4x32xf32>
    %57 = arith.addf %55, %56 : vector<4x32xf32>
    %58 = math.tanh %57 : vector<4x32xf32>
    %59 = arith.mulf %54, %58 : vector<4x32xf32>
    %c4_29 = arith.constant 4 : index
    %c0_30 = arith.constant 0 : index
    %60 = vector.load %arg10[%c4_29, %c0_30] : memref<32x32xf32, #tpu.memory_space<vmem>>, vector<4x32xf32>
    tpu.vector_store %arg10[%c4_29, %c0_30], %59 {strides = array<i32>} : memref<32x32xf32, #tpu.memory_space<vmem>>, vector<4x32xf32>,
    %61 = vector.extract_strided_slice %15 {offsets = [8, 0], sizes = [4, 128], strides = [1, 1]} : vector<32x128xf32> to vector<4x128xf32>
    %cst_31 = arith.constant dense<0.000000e+00> : vector<4x128xf32>
    %62 = tpu.matmul %59, %16, %cst_31 {dimension_numbers = #tpu.dot_dimension_numbers<[1], [1], [0], [0], [0, 0, 1, 0], [], []>} : vector<4x32xf32>, vector<128x32xf32>, vector<4x128xf32> -> vector<4x128xf32>
    %63 = arith.addf %61, %62 : vector<4x128xf32>
    %cst_32 = arith.constant 5.000000e-01 : f32
    %64 = vector.broadcast %cst_32 : f32 to vector<4x128xf32>
    %65 = arith.mulf %64, %63 : vector<4x128xf32>
    %66 = math.tanh %65 : vector<4x128xf32>
    %cst_33 = arith.constant 1.000000e+00 : f32
    %67 = vector.broadcast %cst_33 : f32 to vector<4x128xf32>
    %68 = arith.addf %66, %67 : vector<4x128xf32>
    %cst_34 = arith.constant 5.000000e-01 : f32
    %69 = vector.broadcast %cst_34 : f32 to vector<4x128xf32>
    %70 = arith.mulf %69, %68 : vector<4x128xf32>
    %71 = math.tanh %63 : vector<4x128xf32>
    %72 = vector.extract_strided_slice %70 {offsets = [0, 0], sizes = [4, 32], strides = [1, 1]} : vector<4x128xf32> to vector<4x32xf32>
    %73 = vector.extract_strided_slice %70 {offsets = [0, 32], sizes = [4, 32], strides = [1, 1]} : vector<4x128xf32> to vector<4x32xf32>
    %74 = vector.extract_strided_slice %71 {offsets = [0, 64], sizes = [4, 32], strides = [1, 1]} : vector<4x128xf32> to vector<4x32xf32>
    %75 = vector.extract_strided_slice %70 {offsets = [0, 96], sizes = [4, 32], strides = [1, 1]} : vector<4x128xf32> to vector<4x32xf32>
    %76 = arith.mulf %73, %57 : vector<4x32xf32>
    %77 = arith.mulf %72, %74 : vector<4x32xf32>
    %78 = arith.addf %76, %77 : vector<4x32xf32>
    %79 = math.tanh %78 : vector<4x32xf32>
    %80 = arith.mulf %75, %79 : vector<4x32xf32>
    %c8_35 = arith.constant 8 : index
    %c0_36 = arith.constant 0 : index
    %81 = vector.load %arg10[%c8_35, %c0_36] : memref<32x32xf32, #tpu.memory_space<vmem>>, vector<4x32xf32>
    tpu.vector_store %arg10[%c8_35, %c0_36], %80 {strides = array<i32>} : memref<32x32xf32, #tpu.memory_space<vmem>>, vector<4x32xf32>,
    %82 = vector.extract_strided_slice %15 {offsets = [12, 0], sizes = [4, 128], strides = [1, 1]} : vector<32x128xf32> to vector<4x128xf32>
    %cst_37 = arith.constant dense<0.000000e+00> : vector<4x128xf32>
    %83 = tpu.matmul %80, %16, %cst_37 {dimension_numbers = #tpu.dot_dimension_numbers<[1], [1], [0], [0], [0, 0, 1, 0], [], []>} : vector<4x32xf32>, vector<128x32xf32>, vector<4x128xf32> -> vector<4x128xf32>
    %84 = arith.addf %82, %83 : vector<4x128xf32>
    %cst_38 = arith.constant 5.000000e-01 : f32
    %85 = vector.broadcast %cst_38 : f32 to vector<4x128xf32>
    %86 = arith.mulf %85, %84 : vector<4x128xf32>
    %87 = math.tanh %86 : vector<4x128xf32>
    %cst_39 = arith.constant 1.000000e+00 : f32
    %88 = vector.broadcast %cst_39 : f32 to vector<4x128xf32>
    %89 = arith.addf %87, %88 : vector<4x128xf32>
    %cst_40 = arith.constant 5.000000e-01 : f32
    %90 = vector.broadcast %cst_40 : f32 to vector<4x128xf32>
    %91 = arith.mulf %90, %89 : vector<4x128xf32>
    %92 = math.tanh %84 : vector<4x128xf32>
    %93 = vector.extract_strided_slice %91 {offsets = [0, 0], sizes = [4, 32], strides = [1, 1]} : vector<4x128xf32> to vector<4x32xf32>
    %94 = vector.extract_strided_slice %91 {offsets = [0, 32], sizes = [4, 32], strides = [1, 1]} : vector<4x128xf32> to vector<4x32xf32>
    %95 = vector.extract_strided_slice %92 {offsets = [0, 64], sizes = [4, 32], strides = [1, 1]} : vector<4x128xf32> to vector<4x32xf32>
    %96 = vector.extract_strided_slice %91 {offsets = [0, 96], sizes = [4, 32], strides = [1, 1]} : vector<4x128xf32> to vector<4x32xf32>
    %97 = arith.mulf %94, %78 : vector<4x32xf32>
    %98 = arith.mulf %93, %95 : vector<4x32xf32>
    %99 = arith.addf %97, %98 : vector<4x32xf32>
    %100 = math.tanh %99 : vector<4x32xf32>
    %101 = arith.mulf %96, %100 : vector<4x32xf32>
    %c12 = arith.constant 12 : index
    %c0_41 = arith.constant 0 : index
    %102 = vector.load %arg10[%c12, %c0_41] : memref<32x32xf32, #tpu.memory_space<vmem>>, vector<4x32xf32>
    tpu.vector_store %arg10[%c12, %c0_41], %101 {strides = array<i32>} : memref<32x32xf32, #tpu.memory_space<vmem>>, vector<4x32xf32>,
    %103 = vector.extract_strided_slice %15 {offsets = [16, 0], sizes = [4, 128], strides = [1, 1]} : vector<32x128xf32> to vector<4x128xf32>
    %cst_42 = arith.constant dense<0.000000e+00> : vector<4x128xf32>
    %104 = tpu.matmul %101, %16, %cst_42 {dimension_numbers = #tpu.dot_dimension_numbers<[1], [1], [0], [0], [0, 0, 1, 0], [], []>} : vector<4x32xf32>, vector<128x32xf32>, vector<4x128xf32> -> vector<4x128xf32>
    %105 = arith.addf %103, %104 : vector<4x128xf32>
    %cst_43 = arith.constant 5.000000e-01 : f32
    %106 = vector.broadcast %cst_43 : f32 to vector<4x128xf32>
    %107 = arith.mulf %106, %105 : vector<4x128xf32>
    %108 = math.tanh %107 : vector<4x128xf32>
    %cst_44 = arith.constant 1.000000e+00 : f32
    %109 = vector.broadcast %cst_44 : f32 to vector<4x128xf32>
    %110 = arith.addf %108, %109 : vector<4x128xf32>
    %cst_45 = arith.constant 5.000000e-01 : f32
    %111 = vector.broadcast %cst_45 : f32 to vector<4x128xf32>
    %112 = arith.mulf %111, %110 : vector<4x128xf32>
    %113 = math.tanh %105 : vector<4x128xf32>
    %114 = vector.extract_strided_slice %112 {offsets = [0, 0], sizes = [4, 32], strides = [1, 1]} : vector<4x128xf32> to vector<4x32xf32>
    %115 = vector.extract_strided_slice %112 {offsets = [0, 32], sizes = [4, 32], strides = [1, 1]} : vector<4x128xf32> to vector<4x32xf32>
    %116 = vector.extract_strided_slice %113 {offsets = [0, 64], sizes = [4, 32], strides = [1, 1]} : vector<4x128xf32> to vector<4x32xf32>
    %117 = vector.extract_strided_slice %112 {offsets = [0, 96], sizes = [4, 32], strides = [1, 1]} : vector<4x128xf32> to vector<4x32xf32>
    %118 = arith.mulf %115, %99 : vector<4x32xf32>
    %119 = arith.mulf %114, %116 : vector<4x32xf32>
    %120 = arith.addf %118, %119 : vector<4x32xf32>
    %121 = math.tanh %120 : vector<4x32xf32>
    %122 = arith.mulf %117, %121 : vector<4x32xf32>
    %c16 = arith.constant 16 : index
    %c0_46 = arith.constant 0 : index
    %123 = vector.load %arg10[%c16, %c0_46] : memref<32x32xf32, #tpu.memory_space<vmem>>, vector<4x32xf32>
    tpu.vector_store %arg10[%c16, %c0_46], %122 {strides = array<i32>} : memref<32x32xf32, #tpu.memory_space<vmem>>, vector<4x32xf32>,
    %124 = vector.extract_strided_slice %15 {offsets = [20, 0], sizes = [4, 128], strides = [1, 1]} : vector<32x128xf32> to vector<4x128xf32>
    %cst_47 = arith.constant dense<0.000000e+00> : vector<4x128xf32>
    %125 = tpu.matmul %122, %16, %cst_47 {dimension_numbers = #tpu.dot_dimension_numbers<[1], [1], [0], [0], [0, 0, 1, 0], [], []>} : vector<4x32xf32>, vector<128x32xf32>, vector<4x128xf32> -> vector<4x128xf32>
    %126 = arith.addf %124, %125 : vector<4x128xf32>
    %cst_48 = arith.constant 5.000000e-01 : f32
    %127 = vector.broadcast %cst_48 : f32 to vector<4x128xf32>
    %128 = arith.mulf %127, %126 : vector<4x128xf32>
    %129 = math.tanh %128 : vector<4x128xf32>
    %cst_49 = arith.constant 1.000000e+00 : f32
    %130 = vector.broadcast %cst_49 : f32 to vector<4x128xf32>
    %131 = arith.addf %129, %130 : vector<4x128xf32>
    %cst_50 = arith.constant 5.000000e-01 : f32
    %132 = vector.broadcast %cst_50 : f32 to vector<4x128xf32>
    %133 = arith.mulf %132, %131 : vector<4x128xf32>
    %134 = math.tanh %126 : vector<4x128xf32>
    %135 = vector.extract_strided_slice %133 {offsets = [0, 0], sizes = [4, 32], strides = [1, 1]} : vector<4x128xf32> to vector<4x32xf32>
    %136 = vector.extract_strided_slice %133 {offsets = [0, 32], sizes = [4, 32], strides = [1, 1]} : vector<4x128xf32> to vector<4x32xf32>
    %137 = vector.extract_strided_slice %134 {offsets = [0, 64], sizes = [4, 32], strides = [1, 1]} : vector<4x128xf32> to vector<4x32xf32>
    %138 = vector.extract_strided_slice %133 {offsets = [0, 96], sizes = [4, 32], strides = [1, 1]} : vector<4x128xf32> to vector<4x32xf32>
    %139 = arith.mulf %136, %120 : vector<4x32xf32>
    %140 = arith.mulf %135, %137 : vector<4x32xf32>
    %141 = arith.addf %139, %140 : vector<4x32xf32>
    %142 = math.tanh %141 : vector<4x32xf32>
    %143 = arith.mulf %138, %142 : vector<4x32xf32>
    %c20 = arith.constant 20 : index
    %c0_51 = arith.constant 0 : index
    %144 = vector.load %arg10[%c20, %c0_51] : memref<32x32xf32, #tpu.memory_space<vmem>>, vector<4x32xf32>
    tpu.vector_store %arg10[%c20, %c0_51], %143 {strides = array<i32>} : memref<32x32xf32, #tpu.memory_space<vmem>>, vector<4x32xf32>,
    %145 = vector.extract_strided_slice %15 {offsets = [24, 0], sizes = [4, 128], strides = [1, 1]} : vector<32x128xf32> to vector<4x128xf32>
    %cst_52 = arith.constant dense<0.000000e+00> : vector<4x128xf32>
    %146 = tpu.matmul %143, %16, %cst_52 {dimension_numbers = #tpu.dot_dimension_numbers<[1], [1], [0], [0], [0, 0, 1, 0], [], []>} : vector<4x32xf32>, vector<128x32xf32>, vector<4x128xf32> -> vector<4x128xf32>
    %147 = arith.addf %145, %146 : vector<4x128xf32>
    %cst_53 = arith.constant 5.000000e-01 : f32
    %148 = vector.broadcast %cst_53 : f32 to vector<4x128xf32>
    %149 = arith.mulf %148, %147 : vector<4x128xf32>
    %150 = math.tanh %149 : vector<4x128xf32>
    %cst_54 = arith.constant 1.000000e+00 : f32
    %151 = vector.broadcast %cst_54 : f32 to vector<4x128xf32>
    %152 = arith.addf %150, %151 : vector<4x128xf32>
    %cst_55 = arith.constant 5.000000e-01 : f32
    %153 = vector.broadcast %cst_55 : f32 to vector<4x128xf32>
    %154 = arith.mulf %153, %152 : vector<4x128xf32>
    %155 = math.tanh %147 : vector<4x128xf32>
    %156 = vector.extract_strided_slice %154 {offsets = [0, 0], sizes = [4, 32], strides = [1, 1]} : vector<4x128xf32> to vector<4x32xf32>
    %157 = vector.extract_strided_slice %154 {offsets = [0, 32], sizes = [4, 32], strides = [1, 1]} : vector<4x128xf32> to vector<4x32xf32>
    %158 = vector.extract_strided_slice %155 {offsets = [0, 64], sizes = [4, 32], strides = [1, 1]} : vector<4x128xf32> to vector<4x32xf32>
    %159 = vector.extract_strided_slice %154 {offsets = [0, 96], sizes = [4, 32], strides = [1, 1]} : vector<4x128xf32> to vector<4x32xf32>
    %160 = arith.mulf %157, %141 : vector<4x32xf32>
    %161 = arith.mulf %156, %158 : vector<4x32xf32>
    %162 = arith.addf %160, %161 : vector<4x32xf32>
    %163 = math.tanh %162 : vector<4x32xf32>
    %164 = arith.mulf %159, %163 : vector<4x32xf32>
    %c24 = arith.constant 24 : index
    %c0_56 = arith.constant 0 : index
    %165 = vector.load %arg10[%c24, %c0_56] : memref<32x32xf32, #tpu.memory_space<vmem>>, vector<4x32xf32>
    tpu.vector_store %arg10[%c24, %c0_56], %164 {strides = array<i32>} : memref<32x32xf32, #tpu.memory_space<vmem>>, vector<4x32xf32>,
    %166 = vector.extract_strided_slice %15 {offsets = [28, 0], sizes = [4, 128], strides = [1, 1]} : vector<32x128xf32> to vector<4x128xf32>
    %cst_57 = arith.constant dense<0.000000e+00> : vector<4x128xf32>
    %167 = tpu.matmul %164, %16, %cst_57 {dimension_numbers = #tpu.dot_dimension_numbers<[1], [1], [0], [0], [0, 0, 1, 0], [], []>} : vector<4x32xf32>, vector<128x32xf32>, vector<4x128xf32> -> vector<4x128xf32>
    %168 = arith.addf %166, %167 : vector<4x128xf32>
    %cst_58 = arith.constant 5.000000e-01 : f32
    %169 = vector.broadcast %cst_58 : f32 to vector<4x128xf32>
    %170 = arith.mulf %169, %168 : vector<4x128xf32>
    %171 = math.tanh %170 : vector<4x128xf32>
    %cst_59 = arith.constant 1.000000e+00 : f32
    %172 = vector.broadcast %cst_59 : f32 to vector<4x128xf32>
    %173 = arith.addf %171, %172 : vector<4x128xf32>
    %cst_60 = arith.constant 5.000000e-01 : f32
    %174 = vector.broadcast %cst_60 : f32 to vector<4x128xf32>
    %175 = arith.mulf %174, %173 : vector<4x128xf32>
    %176 = math.tanh %168 : vector<4x128xf32>
    %177 = vector.extract_strided_slice %175 {offsets = [0, 0], sizes = [4, 32], strides = [1, 1]} : vector<4x128xf32> to vector<4x32xf32>
    %178 = vector.extract_strided_slice %175 {offsets = [0, 32], sizes = [4, 32], strides = [1, 1]} : vector<4x128xf32> to vector<4x32xf32>
    %179 = vector.extract_strided_slice %176 {offsets = [0, 64], sizes = [4, 32], strides = [1, 1]} : vector<4x128xf32> to vector<4x32xf32>
    %180 = vector.extract_strided_slice %175 {offsets = [0, 96], sizes = [4, 32], strides = [1, 1]} : vector<4x128xf32> to vector<4x32xf32>
    %181 = arith.mulf %178, %162 : vector<4x32xf32>
    %182 = arith.mulf %177, %179 : vector<4x32xf32>
    %183 = arith.addf %181, %182 : vector<4x32xf32>
    %184 = math.tanh %183 : vector<4x32xf32>
    %185 = arith.mulf %180, %184 : vector<4x32xf32>
    %c28 = arith.constant 28 : index
    %c0_61 = arith.constant 0 : index
    %186 = vector.load %arg10[%c28, %c0_61] : memref<32x32xf32, #tpu.memory_space<vmem>>, vector<4x32xf32>
    tpu.vector_store %arg10[%c28, %c0_61], %185 {strides = array<i32>} : memref<32x32xf32, #tpu.memory_space<vmem>>, vector<4x32xf32>,
    %c0_62 = arith.constant 0 : index
    %c0_63 = arith.constant 0 : index
    %187 = vector.load %arg10[%c0_62, %c0_63] : memref<32x32xf32, #tpu.memory_space<vmem>>, vector<32x32xf32>
    %188 = vector.broadcast %10 : vector<1x32xf32> to vector<32x32xf32>
    %189 = arith.addf %187, %188 : vector<32x32xf32>
    %c0_64 = arith.constant 0 : index
    %c0_65 = arith.constant 0 : index
    %190 = vector.load %arg3[%c0_64, %c0_65] : memref<96x32xf32, #tpu.memory_space<vmem>>, vector<96x32xf32>
    %cst_66 = arith.constant dense<0.000000e+00> : vector<32x96xf32>
    %191 = tpu.matmul %189, %190, %cst_66 {dimension_numbers = #tpu.dot_dimension_numbers<[1], [1], [0], [0], [0, 0, 1, 0], [], []>} : vector<32x32xf32>, vector<96x32xf32>, vector<32x96xf32> -> vector<32x96xf32>
    %192 = vector.broadcast %1 : vector<1x96xf32> to vector<32x96xf32>
    %193 = arith.addf %191, %192 : vector<32x96xf32>
    %194 = vector.extract_strided_slice %193 {offsets = [0, 0], sizes = [32, 8], strides = [1, 1]} : vector<32x96xf32> to vector<32x8xf32>
    %195 = vector.shape_cast %194 : vector<32x8xf32> to vector<8x4x8xf32>
    %196 = vector.extract_strided_slice %193 {offsets = [0, 8], sizes = [32, 8], strides = [1, 1]} : vector<32x96xf32> to vector<32x8xf32>
    %197 = vector.shape_cast %196 : vector<32x8xf32> to vector<8x4x8xf32>
    %198 = vector.extract_strided_slice %193 {offsets = [0, 16], sizes = [32, 8], strides = [1, 1]} : vector<32x96xf32> to vector<32x8xf32>
    %199 = vector.shape_cast %198 : vector<32x8xf32> to vector<8x4x8xf32>
    %200 = vector.extract_strided_slice %193 {offsets = [0, 24], sizes = [32, 8], strides = [1, 1]} : vector<32x96xf32> to vector<32x8xf32>
    %201 = vector.shape_cast %200 : vector<32x8xf32> to vector<8x4x8xf32>
    %202 = tpu.concatenate %195, %197, %199, %201 in 0 : vector<8x4x8xf32>, vector<8x4x8xf32>, vector<8x4x8xf32>, vector<8x4x8xf32> -> vector<32x4x8xf32>
    %203 = vector.extract_strided_slice %193 {offsets = [0, 32], sizes = [32, 8], strides = [1, 1]} : vector<32x96xf32> to vector<32x8xf32>
    %204 = vector.shape_cast %203 : vector<32x8xf32> to vector<8x4x8xf32>
    %205 = vector.extract_strided_slice %193 {offsets = [0, 40], sizes = [32, 8], strides = [1, 1]} : vector<32x96xf32> to vector<32x8xf32>
    %206 = vector.shape_cast %205 : vector<32x8xf32> to vector<8x4x8xf32>
    %207 = vector.extract_strided_slice %193 {offsets = [0, 48], sizes = [32, 8], strides = [1, 1]} : vector<32x96xf32> to vector<32x8xf32>
    %208 = vector.shape_cast %207 : vector<32x8xf32> to vector<8x4x8xf32>
    %209 = vector.extract_strided_slice %193 {offsets = [0, 56], sizes = [32, 8], strides = [1, 1]} : vector<32x96xf32> to vector<32x8xf32>
    %210 = vector.shape_cast %209 : vector<32x8xf32> to vector<8x4x8xf32>
    %211 = tpu.concatenate %204, %206, %208, %210 in 0 : vector<8x4x8xf32>, vector<8x4x8xf32>, vector<8x4x8xf32>, vector<8x4x8xf32> -> vector<32x4x8xf32>
    %212 = vector.extract_strided_slice %193 {offsets = [0, 64], sizes = [32, 8], strides = [1, 1]} : vector<32x96xf32> to vector<32x8xf32>
    %213 = vector.shape_cast %212 : vector<32x8xf32> to vector<8x4x8xf32>
    %214 = vector.extract_strided_slice %193 {offsets = [0, 72], sizes = [32, 8], strides = [1, 1]} : vector<32x96xf32> to vector<32x8xf32>
    %215 = vector.shape_cast %214 : vector<32x8xf32> to vector<8x4x8xf32>
    %216 = vector.extract_strided_slice %193 {offsets = [0, 80], sizes = [32, 8], strides = [1, 1]} : vector<32x96xf32> to vector<32x8xf32>
    %217 = vector.shape_cast %216 : vector<32x8xf32> to vector<8x4x8xf32>
    %218 = vector.extract_strided_slice %193 {offsets = [0, 88], sizes = [32, 8], strides = [1, 1]} : vector<32x96xf32> to vector<32x8xf32>
    %219 = vector.shape_cast %218 : vector<32x8xf32> to vector<8x4x8xf32>
    %220 = tpu.concatenate %213, %215, %217, %219 in 0 : vector<8x4x8xf32>, vector<8x4x8xf32>, vector<8x4x8xf32>, vector<8x4x8xf32> -> vector<32x4x8xf32>
    "tpu.trace_start"() <{level = 10 : i32, message = "nid,njd->nij"}> : () -> ()
    %cst_67 = arith.constant dense<0.000000e+00> : vector<32x4x4xf32>
    %221 = tpu.matmul %202, %211, %cst_67 {dimension_numbers = #tpu.dot_dimension_numbers<[2], [2], [1], [1], [0, 0, 0, 1, 1, 1], [0], [0]>} : vector<32x4x8xf32>, vector<32x4x8xf32>, vector<32x4x4xf32> -> vector<32x4x4xf32>
    "tpu.trace_stop"() : () -> ()
    %cst_68 = arith.constant 0.353553385 : f32
    %222 = vector.broadcast %cst_68 : f32 to vector<32x4x4xf32>
    %223 = arith.mulf %221, %222 : vector<32x4x4xf32>
    %cst_69 = arith.constant dense<0xFF800000> : vector<32x4xf32>
    %224 = vector.multi_reduction <maximumf>, %223, %cst_69 [2] : vector<32x4x4xf32> to vector<32x4xf32>
    %225 = vector.shape_cast %224 : vector<32x4xf32> to vector<32x4x1xf32>
    %226 = vector.broadcast %225 : vector<32x4x1xf32> to vector<32x4x4xf32>
    %227 = arith.subf %223, %226 : vector<32x4x4xf32>
    %228 = math.exp %227 : vector<32x4x4xf32>
    %cst_70 = arith.constant dense<0.000000e+00> : vector<32x4xf32>
    %229 = vector.multi_reduction <add>, %228, %cst_70 [2] : vector<32x4x4xf32> to vector<32x4xf32>
    %230 = vector.shape_cast %229 : vector<32x4xf32> to vector<32x4x1xf32>
    %231 = tpu.reciprocal %230 {approx = true} : vector<32x4x1xf32> -> vector<32x4x1xf32>
    %232 = vector.broadcast %231 : vector<32x4x1xf32> to vector<32x4x4xf32>
    %233 = arith.mulf %228, %232 : vector<32x4x4xf32>
    "tpu.trace_start"() <{level = 10 : i32, message = "nij,njd->nid"}> : () -> ()
    %cst_71 = arith.constant dense<0.000000e+00> : vector<32x4x8xf32>
    %234 = tpu.matmul %233, %220, %cst_71 {dimension_numbers = #tpu.dot_dimension_numbers<[2], [1], [1], [2], [0, 0, 0, 1, 1, 2], [0], [0]>} : vector<32x4x4xf32>, vector<32x4x8xf32>, vector<32x4x8xf32> -> vector<32x4x8xf32>
    "tpu.trace_stop"() : () -> ()
    %235 = vector.extract_strided_slice %234 {offsets = [0, 0, 0], sizes = [8, 4, 8], strides = [1, 1, 1]} : vector<32x4x8xf32> to vector<8x4x8xf32>
    %236 = vector.shape_cast %235 : vector<8x4x8xf32> to vector<32x8xf32>
    %237 = vector.extract_strided_slice %234 {offsets = [8, 0, 0], sizes = [8, 4, 8], strides = [1, 1, 1]} : vector<32x4x8xf32> to vector<8x4x8xf32>
    %238 = vector.shape_cast %237 : vector<8x4x8xf32> to vector<32x8xf32>
    %239 = vector.extract_strided_slice %234 {offsets = [16, 0, 0], sizes = [8, 4, 8], strides = [1, 1, 1]} : vector<32x4x8xf32> to vector<8x4x8xf32>
    %240 = vector.shape_cast %239 : vector<8x4x8xf32> to vector<32x8xf32>
    %241 = vector.extract_strided_slice %234 {offsets = [24, 0, 0], sizes = [8, 4, 8], strides = [1, 1, 1]} : vector<32x4x8xf32> to vector<8x4x8xf32>
    %242 = vector.shape_cast %241 : vector<8x4x8xf32> to vector<32x8xf32>
    %243 = tpu.concatenate %236, %238, %240, %242 in 1 : vector<32x8xf32>, vector<32x8xf32>, vector<32x8xf32>, vector<32x8xf32> -> vector<32x32xf32>
    %c0_72 = arith.constant 0 : index
    %c0_73 = arith.constant 0 : index
    %244 = vector.load %arg4[%c0_72, %c0_73] : memref<32x32xf32, #tpu.memory_space<vmem>>, vector<32x32xf32>
    %cst_74 = arith.constant dense<0.000000e+00> : vector<32x32xf32>
    %245 = tpu.matmul %243, %244, %cst_74 {dimension_numbers = #tpu.dot_dimension_numbers<[1], [1], [0], [0], [0, 0, 1, 0], [], []>} : vector<32x32xf32>, vector<32x32xf32>, vector<32x32xf32> -> vector<32x32xf32>
    %246 = vector.broadcast %2 : vector<1x32xf32> to vector<32x32xf32>
    %247 = arith.addf %245, %246 : vector<32x32xf32>
    %248 = arith.addf %189, %247 : vector<32x32xf32>
    %cst_75 = arith.constant dense<0.000000e+00> : vector<32xf32>
    %249 = vector.multi_reduction <add>, %248, %cst_75 [1] : vector<32x32xf32> to vector<32xf32>
    %250 = vector.shape_cast %249 : vector<32xf32> to vector<32x1xf32>
    %cst_76 = arith.constant 3.200000e+01 : f32
    %251 = vector.broadcast %cst_76 : f32 to vector<32x1xf32>
    %252 = arith.divf %250, %251 : vector<32x1xf32>
    %253 = vector.broadcast %252 : vector<32x1xf32> to vector<32x32xf32>
    %254 = arith.subf %248, %253 : vector<32x32xf32>
    %255 = arith.mulf %254, %254 : vector<32x32xf32>
    %cst_77 = arith.constant dense<0.000000e+00> : vector<32xf32>
    %256 = vector.multi_reduction <add>, %255, %cst_77 [1] : vector<32x32xf32> to vector<32xf32>
    %257 = vector.shape_cast %256 : vector<32xf32> to vector<32x1xf32>
    %cst_78 = arith.constant 3.200000e+01 : f32
    %258 = vector.broadcast %cst_78 : f32 to vector<32x1xf32>
    %259 = arith.divf %257, %258 : vector<32x1xf32>
    %260 = vector.broadcast %252 : vector<32x1xf32> to vector<32x32xf32>
    %261 = arith.subf %248, %260 : vector<32x32xf32>
    %cst_79 = arith.constant 9.99999974E-6 : f32
    %262 = vector.broadcast %cst_79 : f32 to vector<32x1xf32>
    %263 = arith.addf %259, %262 : vector<32x1xf32>
    %264 = math.rsqrt %263 : vector<32x1xf32>
    %265 = vector.broadcast %264 : vector<32x1xf32> to vector<32x32xf32>
    %266 = arith.mulf %261, %265 : vector<32x32xf32>
    %267 = vector.broadcast %5 : vector<1x32xf32> to vector<32x32xf32>
    %268 = arith.mulf %266, %267 : vector<32x32xf32>
    %269 = vector.broadcast %6 : vector<1x32xf32> to vector<32x32xf32>
    %270 = arith.addf %268, %269 : vector<32x32xf32>
    %c0_80 = arith.constant 0 : index
    %c0_81 = arith.constant 0 : index
    %271 = vector.load %arg5[%c0_80, %c0_81] : memref<32x32xf32, #tpu.memory_space<vmem>>, vector<32x32xf32>
    %cst_82 = arith.constant dense<0.000000e+00> : vector<32x32xf32>
    %272 = tpu.matmul %270, %271, %cst_82 {dimension_numbers = #tpu.dot_dimension_numbers<[1], [1], [0], [0], [0, 0, 1, 0], [], []>} : vector<32x32xf32>, vector<32x32xf32>, vector<32x32xf32> -> vector<32x32xf32>
    %273 = vector.broadcast %3 : vector<1x32xf32> to vector<32x32xf32>
    %274 = arith.addf %272, %273 : vector<32x32xf32>
    %cst_83 = arith.constant 0.000000e+00 : f32
    %275 = vector.broadcast %cst_83 : f32 to vector<32x32xf32>
    %276 = arith.maximumf %274, %275 : vector<32x32xf32>
    %c0_84 = arith.constant 0 : index
    %c0_85 = arith.constant 0 : index
    %277 = vector.load %arg6[%c0_84, %c0_85] : memref<32x32xf32, #tpu.memory_space<vmem>>, vector<32x32xf32>
    %cst_86 = arith.constant dense<0.000000e+00> : vector<32x32xf32>
    %278 = tpu.matmul %276, %277, %cst_86 {dimension_numbers = #tpu.dot_dimension_numbers<[1], [1], [0], [0], [0, 0, 1, 0], [], []>} : vector<32x32xf32>, vector<32x32xf32>, vector<32x32xf32> -> vector<32x32xf32>
    %279 = vector.broadcast %4 : vector<1x32xf32> to vector<32x32xf32>
    %280 = arith.addf %278, %279 : vector<32x32xf32>
    %281 = arith.addf %270, %280 : vector<32x32xf32>
    %cst_87 = arith.constant dense<0.000000e+00> : vector<32xf32>
    %282 = vector.multi_reduction <add>, %281, %cst_87 [1] : vector<32x32xf32> to vector<32xf32>
    %283 = vector.shape_cast %282 : vector<32xf32> to vector<32x1xf32>
    %cst_88 = arith.constant 3.200000e+01 : f32
    %284 = vector.broadcast %cst_88 : f32 to vector<32x1xf32>
    %285 = arith.divf %283, %284 : vector<32x1xf32>
    %286 = vector.broadcast %285 : vector<32x1xf32> to vector<32x32xf32>
    %287 = arith.subf %281, %286 : vector<32x32xf32>
    %288 = arith.mulf %287, %287 : vector<32x32xf32>
    %cst_89 = arith.constant dense<0.000000e+00> : vector<32xf32>
    %289 = vector.multi_reduction <add>, %288, %cst_89 [1] : vector<32x32xf32> to vector<32xf32>
    %290 = vector.shape_cast %289 : vector<32xf32> to vector<32x1xf32>
    %cst_90 = arith.constant 3.200000e+01 : f32
    %291 = vector.broadcast %cst_90 : f32 to vector<32x1xf32>
    %292 = arith.divf %290, %291 : vector<32x1xf32>
    %293 = vector.broadcast %285 : vector<32x1xf32> to vector<32x32xf32>
    %294 = arith.subf %281, %293 : vector<32x32xf32>
    %cst_91 = arith.constant 9.99999974E-6 : f32
    %295 = vector.broadcast %cst_91 : f32 to vector<32x1xf32>
    %296 = arith.addf %292, %295 : vector<32x1xf32>
    %297 = math.rsqrt %296 : vector<32x1xf32>
    %298 = vector.broadcast %297 : vector<32x1xf32> to vector<32x32xf32>
    %299 = arith.mulf %294, %298 : vector<32x32xf32>
    %300 = vector.broadcast %7 : vector<1x32xf32> to vector<32x32xf32>
    %301 = arith.mulf %299, %300 : vector<32x32xf32>
    %302 = vector.broadcast %8 : vector<1x32xf32> to vector<32x32xf32>
    %303 = arith.addf %301, %302 : vector<32x32xf32>
    %c0_92 = arith.constant 0 : index
    %c0_93 = arith.constant 0 : index
    %304 = vector.load %arg7[%c0_92, %c0_93] : memref<128x32xf32, #tpu.memory_space<vmem>>, vector<128x32xf32>
    %cst_94 = arith.constant dense<0.000000e+00> : vector<32x128xf32>
    %305 = tpu.matmul %303, %304, %cst_94 {dimension_numbers = #tpu.dot_dimension_numbers<[1], [1], [0], [0], [0, 0, 1, 0], [], []>} : vector<32x32xf32>, vector<128x32xf32>, vector<32x128xf32> -> vector<32x128xf32>
    %306 = vector.broadcast %9 : vector<1x128xf32> to vector<32x128xf32>
    %307 = arith.addf %305, %306 : vector<32x128xf32>
    %c0_95 = arith.constant 0 : index
    %c0_96 = arith.constant 0 : index
    %308 = vector.load %arg9[%c0_95, %c0_96] : memref<32x128xf32, #tpu.memory_space<vmem>>, vector<32x128xf32>
    tpu.vector_store %arg9[%c0_95, %c0_96], %307 {strides = array<i32>} : memref<32x128xf32, #tpu.memory_space<vmem>>, vector<32x128xf32>,
    return
  }
}

</mosaic_0001>

<bundles_post_ra>
// kernel: attention_forward.1
= control target key start
LH: loop header
LB: loop body
LE: loop exit
PB: predicated region body
PF: predicated region fallthrough
CT: control target
= control target key end

     0   :  { %vm67_vm0 = vcmask 130048   ;;  %vm229_vm1 = vcmask 261120   ;;  %v11187_v1 = vmov 0.0   ;;  %vm9048_vm2 = vmmov 0   ;;  %s9049_s14 = smov 64   ;;  %s9050_s15 = smov 32   ;;  %s11177_s1 = inlined_call_operand.vmem [shape: f32[128,16], index: 1, kind: input, shape index: {}]   ;;  %s11178_s2 = inlined_call_operand.vmem [shape: f32[128,32], index: 2, kind: input, shape index: {}]   ;;  %s11179_s0 = inlined_call_operand.vmem [shape: f32[32,16], index: 0, kind: input, shape index: {}]   ;;  %s11180_s8 = inlined_call_operand.vmem [shape: f32[11,128], index: 8, kind: input, shape index: {}]   ;;  %s11181_s3 = inlined_call_operand.vmem [shape: f32[96,32], index: 3, kind: input, shape index: {}]   ;;  %s11182_s4 = inlined_call_operand.vmem [shape: f32[32,32], index: 4, kind: input, shape index: {}]   ;;  %s11183_s5 = inlined_call_operand.vmem [shape: f32[32,32], index: 5, kind: input, shape index: {}]   ;;  %s11184_s6 = inlined_call_operand.vmem [shape: f32[32,32], index: 6, kind: input, shape index: {}]   ;;  %s11185_s7 = inlined_call_operand.vmem [shape: f32[128,32], index: 7, kind: input, shape index: {}]   ;;  %s11186_s9 = inlined_call_operand.vmem [shape: f32[32,128], index: 9, kind: output, shape index: {}]  }
   0x1   :  { %v62_v0 = vld [vmem:[%s11177_s1 + $0x78] sm:$0xff]  ;;  %8134 = vmatprep.subr.mxu1 %v11187_v1  ;;  %v61_v3 = vld [vmem:[%s11177_s1 + $0x70] sm:$0xff]  ;;  %8166 = vmatprep.mubr.msk.f32.mxu1 %vm9048_vm2, %v11187_v1  ;;  %v60_v5 = vld [vmem:[%s11177_s1 + $0x68] sm:$0xff]  ;;  %vm378_vm3 = vcmask 257024   ;;  %vm485_vm4 = vcmask 261124   ;;  %s9051_s23 = smov 120  }
   0x2   :  { %v9115_v2 = vld [vmem:[%s11178_s2 + $0x78] sm:$0xff]  ;;  %8096 = vmatprep.subr.msk.mxu0 %vm67_vm0, %v62_v0  ;;  %v9130_v4 = vld [vmem:[%s11178_s2 + $0x70] sm:$0xff]  ;;  %v9143_v6 = vld [vmem:[%s11178_s2 + $0x68] sm:$0xff]  ;;  %s9052_s24 = smov 112   ;;  %s9053_s25 = smov 104   ;;  %vm1342_vm5 = vcmask 64512  }
   0x3   :  { %8135 = vmatpush3.xpose.msk.msra.mxu1 %vm229_vm1, %v9115_v2  ;;  %8097 = vmatpush3.xpose.msk.msra.mxu0 %vm67_vm0, %v62_v0  ;;  %v59_v7 = vld [vmem:[%s11177_s1 + $0x60] sm:$0xff]  ;;  %v58_v10 = vld [vmem:[%s11177_s1 + $0x58] sm:$0xff]  ;;  %v57_v12 = vld [vmem:[%s11177_s1 + $0x50] sm:$0xff]  ;;  %s9054_s26 = smov 96   ;;  %vm3805_vm6 = vcmask 27648   ;;  %vm4164_vm7 = vcmask 1043456  }
   0x4   :  { %8136 = vmatprep.subr.mxu1 %v11187_v1  ;;  %8098 = vmatprep.subr.msk.mxu0 %vm67_vm0, %v61_v3  ;;  %v9156_v8 = vld [vmem:[%s11178_s2 + $0x60] sm:$0xff]  ;;  %v9173_v11 = vld [vmem:[%s11178_s2 + $0x58] sm:$0xff]  ;;  %v9186_v13 = vld [vmem:[%s11178_s2 + $0x50] sm:$0xff]  ;;  %vm4160_vm8 = vcmask 31744   ;;  %vm6720_vm9 = vcmask 195584  }
   0x5   :  { %v43_v9 = vld [vmem:[%s11179_s0] sm:$0xff]  ;;  %v56_v14 = vld [vmem:[%s11177_s1 + $0x48] sm:$0xff]  ;;  %v54_v18 = vld [vmem:[%s11177_s1 + $0x38] sm:$0xff] }
   0x6   :  { %8128 = vmatprep.mubr.msk.f32.mxu0 %vm67_vm0, %v43_v9  ;;  %v9199_v15 = vld [vmem:[%s11178_s2 + $0x48] sm:$0xff]  ;;  %v55_v16 = vld [vmem:[%s11177_s1 + $0x40] sm:$0xff]  ;;  %v9225_v19 = vld [vmem:[%s11178_s2 + $0x38] sm:$0xff] }
   0x7   :  { %8137 = vmatpush3.xpose.msk.msra.mxu1 %vm229_vm1, %v9130_v4  ;;  %8099 = vmatpush3.xpose.msk.msra.mxu0 %vm67_vm0, %v61_v3  ;;  %v9212_v17 = vld [vmem:[%s11178_s2 + $0x40] sm:$0xff]  ;;  %v53_v20 = vld [vmem:[%s11177_s1 + $0x30] sm:$0xff]  ;;  %v52_v22 = vld [vmem:[%s11177_s1 + $0x28] sm:$0xff] }
   0x8   :  { %8138 = vmatprep.subr.mxu1 %v11187_v1  ;;  %8100 = vmatprep.subr.msk.mxu0 %vm67_vm0, %v60_v5  ;;  %v9238_v21 = vld [vmem:[%s11178_s2 + $0x30] sm:$0xff]  ;;  %v9251_v23 = vld [vmem:[%s11178_s2 + $0x28] sm:$0xff]  ;;  %v51_v24 = vld [vmem:[%s11177_s1 + $0x20] sm:$0xff] }
   0x9   :  { %v9264_v25 = vld [vmem:[%s11178_s2 + $0x20] sm:$0xff]  ;;  %v50_v26 = vld [vmem:[%s11177_s1 + $0x18] sm:$0xff]  ;;  %v49_v28 = vld [vmem:[%s11177_s1 + $0x10] sm:$0xff] }
   0xa   :  { %v9277_v27 = vld [vmem:[%s11178_s2 + $0x18] sm:$0xff]  ;;  %v9290_v29 = vld [vmem:[%s11178_s2 + $0x10] sm:$0xff]  ;;  %v48_v30 = vld [vmem:[%s11177_s1 + $0x8] sm:$0xff] }
   0xb   :  { %8139 = vmatpush3.xpose.msk.msra.mxu1 %vm229_vm1, %v9143_v6  ;;  %8101 = vmatpush3.xpose.msk.msra.mxu0 %vm67_vm0, %v60_v5  ;;  %v9303_v31 = vld [vmem:[%s11178_s2 + $0x8] sm:$0xff]  ;;  %v47_v32 = vld [vmem:[%s11177_s1] sm:$0xff]  ;;  %v45_v52 = vld [vmem:[%s11179_s0 + $0x10] sm:$0xff]  ;;  %s9056_s1 = smov 16  }
   0xc   :  { %8140 = vmatprep.subr.mxu1 %v11187_v1  ;;  %8102 = vmatprep.subr.msk.mxu0 %vm67_vm0, %v59_v7  ;;  %v9316_v33 = vld [vmem:[%s11178_s2] sm:$0xff]  ;;  %v44_v34 = vld [vmem:[%s11179_s0 + $0x8] sm:$0xff]  ;;  %v46_v53 = vld [vmem:[%s11179_s0 + $0x18] sm:$0xff] }
   0xd   :  { %v9432_v38 = vld [vmem:[%s11180_s8] ss:$0 sm:$0xff] }
   0xf   :  { %8141 = vmatpush3.xpose.msk.msra.mxu1 %vm229_vm1, %v9156_v8  ;;  %8103 = vmatpush3.xpose.msk.msra.mxu0 %vm67_vm0, %v59_v7 }
  0x10   :  { %8142 = vmatprep.subr.mxu1 %v11187_v1  ;;  %8104 = vmatprep.subr.msk.mxu0 %vm67_vm0, %v58_v10 }
  0x13   :  { %8143 = vmatpush3.xpose.msk.msra.mxu1 %vm229_vm1, %v9173_v11  ;;  %8105 = vmatpush3.xpose.msk.msra.mxu0 %vm67_vm0, %v58_v10 }
  0x14   :  { %8144 = vmatprep.subr.mxu1 %v11187_v1  ;;  %8106 = vmatprep.subr.msk.mxu0 %vm67_vm0, %v57_v12 }
  0x17   :  { %8145 = vmatpush3.xpose.msk.msra.mxu1 %vm229_vm1, %v9186_v13  ;;  %8107 = vmatpush3.xpose.msk.msra.mxu0 %vm67_vm0, %v57_v12 }
  0x18   :  { %8146 = vmatprep.subr.mxu1 %v11187_v1  ;;  %8108 = vmatprep.subr.msk.mxu0 %vm67_vm0, %v56_v14 }
  0x1b   :  { %8147 = vmatpush3.xpose.msk.msra.mxu1 %vm229_vm1, %v9199_v15  ;;  %8109 = vmatpush3.xpose.msk.msra.mxu0 %vm67_vm0, %v56_v14 }
  0x1c   :  { %8148 = vmatprep.subr.mxu1 %v11187_v1  ;;  %8110 = vmatprep.subr.msk.mxu0 %vm67_vm0, %v55_v16 }
  0x1f   :  { %8149 = vmatpush3.xpose.msk.msra.mxu1 %vm229_vm1, %v9212_v17  ;;  %8111 = vmatpush3.xpose.msk.msra.mxu0 %vm67_vm0, %v55_v16 }
  0x20   :  { %8150 = vmatprep.subr.mxu1 %v11187_v1  ;;  %8112 = vmatprep.subr.msk.mxu0 %vm67_vm0, %v54_v18 }
  0x23   :  { %8151 = vmatpush3.xpose.msk.msra.mxu1 %vm229_vm1, %v9225_v19  ;;  %8113 = vmatpush3.xpose.msk.msra.mxu0 %vm67_vm0, %v54_v18 }
  0x24   :  { %8152 = vmatprep.subr.mxu1 %v11187_v1  ;;  %8114 = vmatprep.subr.msk.mxu0 %vm67_vm0, %v53_v20 }
  0x27   :  { %8153 = vmatpush3.xpose.msk.msra.mxu1 %vm229_vm1, %v9238_v21  ;;  %8115 = vmatpush3.xpose.msk.msra.mxu0 %vm67_vm0, %v53_v20 }
  0x28   :  { %8154 = vmatprep.subr.mxu1 %v11187_v1  ;;  %8116 = vmatprep.subr.msk.mxu0 %vm67_vm0, %v52_v22 }
  0x2b   :  { %8155 = vmatpush3.xpose.msk.msra.mxu1 %vm229_vm1, %v9251_v23  ;;  %8117 = vmatpush3.xpose.msk.msra.mxu0 %vm67_vm0, %v52_v22 }
  0x2c   :  { %8156 = vmatprep.subr.mxu1 %v11187_v1  ;;  %8118 = vmatprep.subr.msk.mxu0 %vm67_vm0, %v51_v24 }
  0x2f   :  { %8157 = vmatpush3.xpose.msk.msra.mxu1 %vm229_vm1, %v9264_v25  ;;  %8119 = vmatpush3.xpose.msk.msra.mxu0 %vm67_vm0, %v51_v24 }
  0x30   :  { %8158 = vmatprep.subr.mxu1 %v11187_v1  ;;  %8120 = vmatprep.subr.msk.mxu0 %vm67_vm0, %v50_v26 }
  0x33   :  { %8159 = vmatpush3.xpose.msk.msra.mxu1 %vm229_vm1, %v9277_v27  ;;  %8121 = vmatpush3.xpose.msk.msra.mxu0 %vm67_vm0, %v50_v26 }
  0x34   :  { %8160 = vmatprep.subr.mxu1 %v11187_v1  ;;  %8122 = vmatprep.subr.msk.mxu0 %vm67_vm0, %v49_v28 }
  0x37   :  { %8161 = vmatpush3.xpose.msk.msra.mxu1 %vm229_vm1, %v9290_v29  ;;  %8123 = vmatpush3.xpose.msk.msra.mxu0 %vm67_vm0, %v49_v28 }
  0x38   :  { %8162 = vmatprep.subr.mxu1 %v11187_v1  ;;  %8124 = vmatprep.subr.msk.mxu0 %vm67_vm0, %v48_v30 }
  0x3b   :  { %8163 = vmatpush3.xpose.msk.msra.mxu1 %vm229_vm1, %v9303_v31  ;;  %8125 = vmatpush3.xpose.msk.msra.mxu0 %vm67_vm0, %v48_v30 }
  0x3c   :  { %8164 = vmatprep.subr.mxu1 %v11187_v1  ;;  %8126 = vmatprep.subr.msk.mxu0 %vm67_vm0, %v47_v32 }
  0x3f   :  { %8165 = vmatpush3.xpose.msk.msra.mxu1 %vm229_vm1, %v9316_v33  ;;  %8127 = vmatpush3.xpose.msk.msra.mxu0 %vm67_vm0, %v47_v32 }
  0x40   :  { %8204 = vmatprep.subr.mxu1 %v11187_v1  ;;  %8169 = vmatprep.subr.mxu0 %v11187_v1 }
  0x42   :  { %8167 = vmatmul.mubr.f32.vlgmr.msra.gmra.mxu1 %v11187_v1  ;;  %8129 = vmatmul.mubr.msk.f32.vlgmr.msra.gmra.mxu0 %vm67_vm0, %v44_v34 }
  0x43   :  { %8205 = vmatpush3.xpose.msk.msra.mxu1 %vm229_vm1, %v9115_v2  ;;  %8170 = vmatpush3.xpose.msk.msra.mxu0 %vm229_vm1, %v9115_v2 }
  0x44   :  { %8206 = vmatprep.subr.mxu1 %v11187_v1  ;;  %8171 = vmatprep.subr.mxu0 %v11187_v1 }
  0x45   :  { %8236 = vmatprep.mubr.msk.f32.mxu1 %vm9048_vm2, %v11187_v1  ;;  %8131 = vmatprep.mubr.msk.f32.mxu0 %vm67_vm0, %v45_v52 }
  0x46   :  { %8132 = vmatmul.mubr.msk.f32.gmra.mxu0 %vm67_vm0, %v46_v53 }
  0x47   :  { %8207 = vmatpush3.xpose.msk.msra.mxu1 %vm229_vm1, %v9130_v4  ;;  %8172 = vmatpush3.xpose.msk.msra.mxu0 %vm229_vm1, %v9130_v4 }
  0x48   :  { %8208 = vmatprep.subr.mxu1 %v11187_v1  ;;  %8173 = vmatprep.subr.mxu0 %v11187_v1 }
  0x49   :  { %8201 = vmatprep.mubr.msk.f32.mxu0 %vm9048_vm2, %v11187_v1 }
  0x4b   :  { %8209 = vmatpush3.xpose.msk.msra.mxu1 %vm229_vm1, %v9143_v6  ;;  %8174 = vmatpush3.xpose.msk.msra.mxu0 %vm229_vm1, %v9143_v6 }
  0x4c   :  { %8210 = vmatprep.subr.mxu1 %v11187_v1  ;;  %8175 = vmatprep.subr.mxu0 %v11187_v1 }
  0x4f   :  { %8211 = vmatpush3.xpose.msk.msra.mxu1 %vm229_vm1, %v9156_v8  ;;  %8176 = vmatpush3.xpose.msk.msra.mxu0 %vm229_vm1, %v9156_v8 }
  0x50   :  { %8212 = vmatprep.subr.mxu1 %v11187_v1  ;;  %8177 = vmatprep.subr.mxu0 %v11187_v1 }
  0x53   :  { %8213 = vmatpush3.xpose.msk.msra.mxu1 %vm229_vm1, %v9173_v11  ;;  %8178 = vmatpush3.xpose.msk.msra.mxu0 %vm229_vm1, %v9173_v11 }
  0x54   :  { %8214 = vmatprep.subr.mxu1 %v11187_v1  ;;  %8179 = vmatprep.subr.mxu0 %v11187_v1 }
  0x57   :  { %8215 = vmatpush3.xpose.msk.msra.mxu1 %vm229_vm1, %v9186_v13  ;;  %8180 = vmatpush3.xpose.msk.msra.mxu0 %vm229_vm1, %v9186_v13 }
  0x58   :  { %8216 = vmatprep.subr.mxu1 %v11187_v1  ;;  %8181 = vmatprep.subr.mxu0 %v11187_v1 }
  0x5b   :  { %8217 = vmatpush3.xpose.msk.msra.mxu1 %vm229_vm1, %v9199_v15  ;;  %8182 = vmatpush3.xpose.msk.msra.mxu0 %vm229_vm1, %v9199_v15 }
  0x5c   :  { %8218 = vmatprep.subr.mxu1 %v11187_v1  ;;  %8183 = vmatprep.subr.mxu0 %v11187_v1 }
  0x5f   :  { %8219 = vmatpush3.xpose.msk.msra.mxu1 %vm229_vm1, %v9212_v17  ;;  %8184 = vmatpush3.xpose.msk.msra.mxu0 %vm229_vm1, %v9212_v17 }
  0x60   :  { %8220 = vmatprep.subr.mxu1 %v11187_v1  ;;  %8185 = vmatprep.subr.mxu0 %v11187_v1 }
  0x63   :  { %8221 = vmatpush3.xpose.msk.msra.mxu1 %vm229_vm1, %v9225_v19  ;;  %8186 = vmatpush3.xpose.msk.msra.mxu0 %vm229_vm1, %v9225_v19 }
  0x64   :  { %8222 = vmatprep.subr.mxu1 %v11187_v1  ;;  %8187 = vmatprep.subr.mxu0 %v11187_v1 }
  0x67   :  { %8223 = vmatpush3.xpose.msk.msra.mxu1 %vm229_vm1, %v9238_v21  ;;  %8188 = vmatpush3.xpose.msk.msra.mxu0 %vm229_vm1, %v9238_v21 }
  0x68   :  { %8224 = vmatprep.subr.mxu1 %v11187_v1  ;;  %8189 = vmatprep.subr.mxu0 %v11187_v1 }
  0x6b   :  { %8225 = vmatpush3.xpose.msk.msra.mxu1 %vm229_vm1, %v9251_v23  ;;  %8190 = vmatpush3.xpose.msk.msra.mxu0 %vm229_vm1, %v9251_v23 }
  0x6c   :  { %8226 = vmatprep.subr.mxu1 %v11187_v1  ;;  %8191 = vmatprep.subr.mxu0 %v11187_v1 }
  0x6f   :  { %8227 = vmatpush3.xpose.msk.msra.mxu1 %vm229_vm1, %v9264_v25  ;;  %8192 = vmatpush3.xpose.msk.msra.mxu0 %vm229_vm1, %v9264_v25 }
  0x70   :  { %8228 = vmatprep.subr.mxu1 %v11187_v1  ;;  %8193 = vmatprep.subr.mxu0 %v11187_v1 }
  0x73   :  { %8229 = vmatpush3.xpose.msk.msra.mxu1 %vm229_vm1, %v9277_v27  ;;  %8194 = vmatpush3.xpose.msk.msra.mxu0 %vm229_vm1, %v9277_v27 }
  0x74   :  { %8230 = vmatprep.subr.mxu1 %v11187_v1  ;;  %8195 = vmatprep.subr.mxu0 %v11187_v1 }
  0x77   :  { %8231 = vmatpush3.xpose.msk.msra.mxu1 %vm229_vm1, %v9290_v29  ;;  %8196 = vmatpush3.xpose.msk.msra.mxu0 %vm229_vm1, %v9290_v29 }
  0x78   :  { %8232 = vmatprep.subr.mxu1 %v11187_v1  ;;  %8197 = vmatprep.subr.mxu0 %v11187_v1 }
  0x7b   :  { %8233 = vmatpush3.xpose.msk.msra.mxu1 %vm229_vm1, %v9303_v31  ;;  %8198 = vmatpush3.xpose.msk.msra.mxu0 %vm229_vm1, %v9303_v31 }
  0x7c   :  { %8234 = vmatprep.subr.mxu1 %v11187_v1  ;;  %8199 = vmatprep.subr.mxu0 %v11187_v1 }
  0x7f   :  { %8235 = vmatpush3.xpose.msk.msra.mxu1 %vm229_vm1, %v9316_v33  ;;  %8200 = vmatpush3.xpose.msk.msra.mxu0 %vm229_vm1, %v9316_v33 }
  0x80   :  { %8274 = vmatprep.subr.mxu1 %v11187_v1  ;;  %8239 = vmatprep.subr.mxu0 %v11187_v1 }
 0x102   :  { %v347_v35 = vpop.f32.mrf.mxu1  ;;  %v9427_v36 = vpop.f32.mrf.mxu0 }
 0x103   :  { %v9573_v32 = vadd.f32 %v9427_v36, %v9432_v38 }
 0x104   :  { %v8168_v37 = vpop.f32.mrf.mxu1  ;;  %v194_v39 = vpop.f32.mrf.mxu0 }
 0x105   :  { %v9435_v40 = vadd.f32 %v9432_v38, %v194_v39 }
 0x106   :  { %v9507_v58 = vpop.f32.mrf.mxu0 }
 0x107   :  { %v351_v41 = vadd.f32 %v347_v35, %v9435_v40 }
 0x108   :  { %v9509_v59 = vpop.f32.mrf.mxu0 }
 0x109   :  { %8855 = vtanh.f32 %v351_v41  ;;  %v352_v43 = vmul.f32 0.5, %v351_v41 }
 0x10b   :  { %8857 = vtanh.f32 %v352_v43 }
 0x116   :  { %v8856_v42 = vpop.eup %8855 }
 0x117   :  { %359 = vrot.lane.b32.xlu0 %v8856_v42, %s9049_s14 }
 0x118   :  { %v8858_v44 = vpop.eup %8857 }
 0x119   :  { %v354_v45 = vadd.f32 1.0, %v8858_v44 }
 0x11b   :  { %v355_v46 = vmul.f32 0.5, %v354_v45 }
 0x11d   :  { %v357_v49 = vmul.f32 0.0, %v355_v46 }
 0x189   :  { %v360_v47 = vpop.permute.xlu0 %359 }
 0x18a   :  { %v362_v48 = vmul.f32 %v360_v47, %v355_v46 }
 0x18c   :  { %364 = vrot.lane.b32.xlu0 %v362_v48, %s9050_s15 }
 0x1fe   :  { %v365_v50 = vpop.permute.xlu0 %364 }
 0x1ff   :  { %v9440_v51 = vadd.f32 %v365_v50, %v357_v49 }
 0x201   :  { %8859 = vtanh.f32 %v9440_v51  ;;  %v462_v14 = vrot.slane %v9440_v51, 4 }
 0x20e   :  { %v8860_v54 = vpop.eup %8859 }
 0x20f   :  { %370 = vrot.lane.b32.xlu1 %v8860_v54, %s9049_s14 }
 0x281   :  { %v371_v55 = vpop.permute.xlu1 %370 }
 0x282   :  { %v373_v56 = vmul.f32 %v371_v55, %v355_v46 }
 0x284   :  { %375 = vrot.lane.b32.xlu1 %v373_v56, %s9050_s15 }
 0x2f6   :  { %v376_v57 = vpop.permute.xlu1 %375 }
 0x2f7   :  { %379 = vst.msk [vmem:[#allocation2] sm:$0xf] %vm378_vm3, %v376_v57  ;;  %8202 = vmatmul.mubr.msk.f32.vlgmr.msra.gmra.mxu0 %vm229_vm1, %v376_v57 }
 0x2f8   :  { %8240 = vmatpush3.xpose.msk.msra.mxu0 %vm229_vm1, %v9115_v2  ;;  %8271 = vmatprep.mubr.msk.f32.mxu0 %vm9048_vm2, %v11187_v1 }
 0x2f9   :  { %8241 = vmatprep.subr.mxu0 %v11187_v1 }
 0x2fc   :  { %8242 = vmatpush3.xpose.msk.msra.mxu0 %vm229_vm1, %v9130_v4 }
 0x2fd   :  { %8243 = vmatprep.subr.mxu0 %v11187_v1 }
 0x300   :  { %8244 = vmatpush3.xpose.msk.msra.mxu0 %vm229_vm1, %v9143_v6 }
 0x301   :  { %8245 = vmatprep.subr.mxu0 %v11187_v1 }
 0x304   :  { %8246 = vmatpush3.xpose.msk.msra.mxu0 %vm229_vm1, %v9156_v8 }
 0x305   :  { %8247 = vmatprep.subr.mxu0 %v11187_v1 }
 0x308   :  { %8248 = vmatpush3.xpose.msk.msra.mxu0 %vm229_vm1, %v9173_v11 }
 0x309   :  { %8249 = vmatprep.subr.mxu0 %v11187_v1 }
 0x30c   :  { %8250 = vmatpush3.xpose.msk.msra.mxu0 %vm229_vm1, %v9186_v13 }
 0x30d   :  { %8251 = vmatprep.subr.mxu0 %v11187_v1 }
 0x310   :  { %8252 = vmatpush3.xpose.msk.msra.mxu0 %vm229_vm1, %v9199_v15 }
 0x311   :  { %8253 = vmatprep.subr.mxu0 %v11187_v1 }
 0x314   :  { %8254 = vmatpush3.xpose.msk.msra.mxu0 %vm229_vm1, %v9212_v17 }
 0x315   :  { %8255 = vmatprep.subr.mxu0 %v11187_v1 }
 0x318   :  { %8256 = vmatpush3.xpose.msk.msra.mxu0 %vm229_vm1, %v9225_v19 }
 0x319   :  { %8257 = vmatprep.subr.mxu0 %v11187_v1 }
 0x31c   :  { %8258 = vmatpush3.xpose.msk.msra.mxu0 %vm229_vm1, %v9238_v21 }
 0x31d   :  { %8259 = vmatprep.subr.mxu0 %v11187_v1 }
 0x320   :  { %8260 = vmatpush3.xpose.msk.msra.mxu0 %vm229_vm1, %v9251_v23 }
 0x321   :  { %8261 = vmatprep.subr.mxu0 %v11187_v1 }
 0x324   :  { %8262 = vmatpush3.xpose.msk.msra.mxu0 %vm229_vm1, %v9264_v25 }
 0x325   :  { %8263 = vmatprep.subr.mxu0 %v11187_v1 }
 0x328   :  { %8264 = vmatpush3.xpose.msk.msra.mxu0 %vm229_vm1, %v9277_v27 }
 0x329   :  { %8265 = vmatprep.subr.mxu0 %v11187_v1 }
 0x32c   :  { %8266 = vmatpush3.xpose.msk.msra.mxu0 %vm229_vm1, %v9290_v29 }
 0x32d   :  { %8267 = vmatprep.subr.mxu0 %v11187_v1 }
 0x330   :  { %8268 = vmatpush3.xpose.msk.msra.mxu0 %vm229_vm1, %v9303_v31 }
 0x331   :  { %8269 = vmatprep.subr.mxu0 %v11187_v1 }
 0x334   :  { %8270 = vmatpush3.xpose.msk.msra.mxu0 %vm229_vm1, %v9316_v33 }
 0x335   :  { %8309 = vmatprep.subr.mxu0 %v11187_v1 }
 0x3b7   :  { %v448_v60 = vpop.f32.mrf.mxu0 }
 0x3b8   :  { %v453_v61 = vrot.slane %v448_v60, 4 }
 0x3b9   :  { %v8203_v62 = vpop.f32.mrf.mxu0 }
 0x3ba   :  { %v455_v63 = vadd.f32 %v453_v61, %v9435_v40 }
 0x3bc   :  { %8861 = vtanh.f32 %v455_v63  ;;  %v456_v3 = vmul.f32 0.5, %v455_v63 }
 0x3be   :  { %8863 = vtanh.f32 %v456_v3 }
 0x3c9   :  { %v8862_v0 = vpop.eup %8861 }
 0x3ca   :  { %466 = vrot.lane.b32.xlu0 %v8862_v0, %s9049_s14 }
 0x3cb   :  { %v8864_v5 = vpop.eup %8863 }
 0x3cc   :  { %v458_v7 = vadd.f32 1.0, %v8864_v5 }
 0x3ce   :  { %v459_v9 = vmul.f32 0.5, %v458_v7 }
 0x3d0   :  { %v464_v16 = vmul.f32 %v462_v14, %v459_v9 }
 0x43c   :  { %v467_v10 = vpop.permute.xlu0 %466 }
 0x43d   :  { %v469_v12 = vmul.f32 %v467_v10, %v459_v9 }
 0x43f   :  { %471 = vrot.lane.b32.xlu1 %v469_v12, %s9050_s15 }
 0x4b1   :  { %v472_v18 = vpop.permute.xlu1 %471 }
 0x4b2   :  { %v474_v20 = vadd.f32 %v472_v18, %v464_v16 }
 0x4b4   :  { %8865 = vtanh.f32 %v474_v20  ;;  %v569_v46 = vrot.slane %v474_v20, 4 }
 0x4c1   :  { %v8866_v22 = vpop.eup %8865 }
 0x4c2   :  { %477 = vrot.lane.b32.xlu0 %v8866_v22, %s9049_s14  ;;  %v9692_v22 = vadd.f32 %v9432_v38, %v9509_v59 }
 0x534   :  { %v478_v24 = vpop.permute.xlu0 %477 }
 0x535   :  { %v9516_v26 = vmul.f32 %v478_v24, %v459_v9 }
 0x537   :  { %v487_v28 = vrot.slane %v9516_v26, 4 }
 0x539   :  { %488 = vrot.lane.b32.xlu1 %v487_v28, %s9050_s15 }
 0x5ab   :  { %v489_v30 = vpop.permute.xlu1 %488 }
 0x5ac   :  { %8237 = vmatmul.mubr.msk.f32.vlgmr.msra.gmra.mxu1 %vm229_vm1, %v489_v30 }
 0x5ad   :  { %8275 = vmatpush3.xpose.msk.msra.mxu1 %vm229_vm1, %v9115_v2  ;;  %8306 = vmatprep.mubr.msk.f32.mxu1 %vm9048_vm2, %v11187_v1 }
 0x5ae   :  { %8276 = vmatprep.subr.mxu1 %v11187_v1 }
 0x5b1   :  { %8277 = vmatpush3.xpose.msk.msra.mxu1 %vm229_vm1, %v9130_v4 }
 0x5b2   :  { %8278 = vmatprep.subr.mxu1 %v11187_v1 }
 0x5b5   :  { %8279 = vmatpush3.xpose.msk.msra.mxu1 %vm229_vm1, %v9143_v6 }
 0x5b6   :  { %8280 = vmatprep.subr.mxu1 %v11187_v1 }
 0x5b9   :  { %8281 = vmatpush3.xpose.msk.msra.mxu1 %vm229_vm1, %v9156_v8 }
 0x5ba   :  { %8282 = vmatprep.subr.mxu1 %v11187_v1 }
 0x5bd   :  { %8283 = vmatpush3.xpose.msk.msra.mxu1 %vm229_vm1, %v9173_v11 }
 0x5be   :  { %8284 = vmatprep.subr.mxu1 %v11187_v1 }
 0x5c1   :  { %8285 = vmatpush3.xpose.msk.msra.mxu1 %vm229_vm1, %v9186_v13 }
 0x5c2   :  { %8286 = vmatprep.subr.mxu1 %v11187_v1 }
 0x5c5   :  { %8287 = vmatpush3.xpose.msk.msra.mxu1 %vm229_vm1, %v9199_v15 }
 0x5c6   :  { %8288 = vmatprep.subr.mxu1 %v11187_v1 }
 0x5c9   :  { %8289 = vmatpush3.xpose.msk.msra.mxu1 %vm229_vm1, %v9212_v17 }
 0x5ca   :  { %8290 = vmatprep.subr.mxu1 %v11187_v1 }
 0x5cd   :  { %8291 = vmatpush3.xpose.msk.msra.mxu1 %vm229_vm1, %v9225_v19 }
 0x5ce   :  { %8292 = vmatprep.subr.mxu1 %v11187_v1 }
 0x5d1   :  { %8293 = vmatpush3.xpose.msk.msra.mxu1 %vm229_vm1, %v9238_v21 }
 0x5d2   :  { %8294 = vmatprep.subr.mxu1 %v11187_v1 }
 0x5d5   :  { %8295 = vmatpush3.xpose.msk.msra.mxu1 %vm229_vm1, %v9251_v23 }
 0x5d6   :  { %8296 = vmatprep.subr.mxu1 %v11187_v1 }
 0x5d9   :  { %8297 = vmatpush3.xpose.msk.msra.mxu1 %vm229_vm1, %v9264_v25 }
 0x5da   :  { %8298 = vmatprep.subr.mxu1 %v11187_v1 }
 0x5dd   :  { %8299 = vmatpush3.xpose.msk.msra.mxu1 %vm229_vm1, %v9277_v27 }
 0x5de   :  { %8300 = vmatprep.subr.mxu1 %v11187_v1 }
 0x5e1   :  { %8301 = vmatpush3.xpose.msk.msra.mxu1 %vm229_vm1, %v9290_v29 }
 0x5e2   :  { %8302 = vmatprep.subr.mxu1 %v11187_v1 }
 0x5e5   :  { %8303 = vmatpush3.xpose.msk.msra.mxu1 %vm229_vm1, %v9303_v31 }
 0x5e6   :  { %8304 = vmatprep.subr.mxu1 %v11187_v1 }
 0x5e9   :  { %8305 = vmatpush3.xpose.msk.msra.mxu1 %vm229_vm1, %v9316_v33 }
 0x5ea   :  { %8344 = vmatprep.subr.mxu1 %v11187_v1 }
 0x66c   :  { %v558_v34 = vpop.f32.mrf.mxu1 }
 0x66d   :  { %v562_v35 = vadd.f32 %v558_v34, %v9573_v32 }
 0x66e   :  { %v8238_v37 = vpop.f32.mrf.mxu1 }
 0x66f   :  { %8867 = vtanh.f32 %v562_v35  ;;  %v563_v40 = vmul.f32 0.5, %v562_v35 }
 0x671   :  { %8869 = vtanh.f32 %v563_v40 }
 0x67c   :  { %v8868_v39 = vpop.eup %8867 }
 0x67d   :  { %573 = vrot.lane.b32.xlu0 %v8868_v39, %s9049_s14 }
 0x67e   :  { %v8870_v41 = vpop.eup %8869 }
 0x67f   :  { %v565_v42 = vadd.f32 1.0, %v8870_v41 }
 0x681   :  { %v566_v43 = vmul.f32 0.5, %v565_v42 }
 0x683   :  { %v571_v36 = vmul.f32 %v569_v46, %v566_v43 }
 0x6ef   :  { %v574_v44 = vpop.permute.xlu0 %573 }
 0x6f0   :  { %v576_v45 = vmul.f32 %v574_v44, %v566_v43 }
 0x6f2   :  { %578 = vrot.lane.b32.xlu1 %v576_v45, %s9050_s15 }
 0x764   :  { %v579_v47 = vpop.permute.xlu1 %578 }
 0x765   :  { %v581_v48 = vadd.f32 %v579_v47, %v571_v36 }
 0x767   :  { %8871 = vtanh.f32 %v581_v48  ;;  %v675_v5 = vrot.slane %v581_v48, 4 }
 0x774   :  { %v8872_v49 = vpop.eup %8871 }
 0x775   :  { %584 = vrot.lane.b32.xlu0 %v8872_v49, %s9049_s14 }
 0x7e7   :  { %v585_v50 = vpop.permute.xlu0 %584 }
 0x7e8   :  { %v587_v51 = vmul.f32 %v585_v50, %v566_v43 }
 0x7ea   :  { %589 = vrot.lane.b32.xlu1 %v587_v51, %s9050_s15 }
 0x85c   :  { %v590_v52 = vpop.permute.xlu1 %589 }
 0x85d   :  { %592 = vst.msk [vmem:[#allocation2 + $0x8] sm:$0xf] %vm378_vm3, %v590_v52  ;;  %8272 = vmatmul.mubr.msk.f32.vlgmr.msra.gmra.mxu0 %vm229_vm1, %v590_v52  ;;  %v210_v52 = vadd.f32 %v9507_v58, %v9432_v38 }
 0x85e   :  { %8310 = vmatpush3.xpose.msk.msra.mxu0 %vm229_vm1, %v9115_v2  ;;  %8341 = vmatprep.mubr.msk.f32.mxu0 %vm9048_vm2, %v11187_v1 }
 0x85f   :  { %8311 = vmatprep.subr.mxu0 %v11187_v1 }
 0x862   :  { %8312 = vmatpush3.xpose.msk.msra.mxu0 %vm229_vm1, %v9130_v4 }
 0x863   :  { %8313 = vmatprep.subr.mxu0 %v11187_v1 }
 0x866   :  { %8314 = vmatpush3.xpose.msk.msra.mxu0 %vm229_vm1, %v9143_v6 }
 0x867   :  { %8315 = vmatprep.subr.mxu0 %v11187_v1 }
 0x86a   :  { %8316 = vmatpush3.xpose.msk.msra.mxu0 %vm229_vm1, %v9156_v8 }
 0x86b   :  { %8317 = vmatprep.subr.mxu0 %v11187_v1 }
 0x86e   :  { %8318 = vmatpush3.xpose.msk.msra.mxu0 %vm229_vm1, %v9173_v11 }
 0x86f   :  { %8319 = vmatprep.subr.mxu0 %v11187_v1 }
 0x872   :  { %8320 = vmatpush3.xpose.msk.msra.mxu0 %vm229_vm1, %v9186_v13 }
 0x873   :  { %8321 = vmatprep.subr.mxu0 %v11187_v1 }
 0x876   :  { %8322 = vmatpush3.xpose.msk.msra.mxu0 %vm229_vm1, %v9199_v15 }
 0x877   :  { %8323 = vmatprep.subr.mxu0 %v11187_v1 }
 0x87a   :  { %8324 = vmatpush3.xpose.msk.msra.mxu0 %vm229_vm1, %v9212_v17 }
 0x87b   :  { %8325 = vmatprep.subr.mxu0 %v11187_v1 }
 0x87e   :  { %8326 = vmatpush3.xpose.msk.msra.mxu0 %vm229_vm1, %v9225_v19 }
 0x87f   :  { %8327 = vmatprep.subr.mxu0 %v11187_v1 }
 0x882   :  { %8328 = vmatpush3.xpose.msk.msra.mxu0 %vm229_vm1, %v9238_v21 }
 0x883   :  { %8329 = vmatprep.subr.mxu0 %v11187_v1 }
 0x886   :  { %8330 = vmatpush3.xpose.msk.msra.mxu0 %vm229_vm1, %v9251_v23 }
 0x887   :  { %8331 = vmatprep.subr.mxu0 %v11187_v1 }
 0x88a   :  { %8332 = vmatpush3.xpose.msk.msra.mxu0 %vm229_vm1, %v9264_v25 }
 0x88b   :  { %8333 = vmatprep.subr.mxu0 %v11187_v1 }
 0x88e   :  { %8334 = vmatpush3.xpose.msk.msra.mxu0 %vm229_vm1, %v9277_v27 }
 0x88f   :  { %8335 = vmatprep.subr.mxu0 %v11187_v1 }
 0x892   :  { %8336 = vmatpush3.xpose.msk.msra.mxu0 %vm229_vm1, %v9290_v29 }
 0x893   :  { %8337 = vmatprep.subr.mxu0 %v11187_v1 }
 0x896   :  { %8338 = vmatpush3.xpose.msk.msra.mxu0 %vm229_vm1, %v9303_v31 }
 0x897   :  { %8339 = vmatprep.subr.mxu0 %v11187_v1 }
 0x89a   :  { %8340 = vmatpush3.xpose.msk.msra.mxu0 %vm229_vm1, %v9316_v33 }
 0x89b   :  { %8379 = vmatprep.subr.mxu0 %v11187_v1 }
 0x91d   :  { %v661_v53 = vpop.f32.mrf.mxu0 }
 0x91e   :  { %v666_v54 = vrot.slane %v661_v53, 4 }
 0x91f   :  { %v8273_v55 = vpop.f32.mrf.mxu0 }
 0x920   :  { %v668_v56 = vadd.f32 %v666_v54, %v9573_v32 }
 0x922   :  { %8873 = vtanh.f32 %v668_v56  ;;  %v669_v60 = vmul.f32 0.5, %v668_v56 }
 0x924   :  { %8875 = vtanh.f32 %v669_v60 }
 0x92f   :  { %v8874_v57 = vpop.eup %8873 }
 0x930   :  { %679 = vrot.lane.b32.xlu0 %v8874_v57, %s9049_s14 }
 0x931   :  { %v8876_v61 = vpop.eup %8875 }
 0x932   :  { %v671_v62 = vadd.f32 1.0, %v8876_v61 }
 0x934   :  { %v672_v63 = vmul.f32 0.5, %v671_v62 }
 0x936   :  { %v677_v7 = vmul.f32 %v675_v5, %v672_v63 }
 0x9a2   :  { %v680_v0 = vpop.permute.xlu0 %679 }
 0x9a3   :  { %v682_v3 = vmul.f32 %v680_v0, %v672_v63 }
 0x9a5   :  { %684 = vrot.lane.b32.xlu1 %v682_v3, %s9050_s15 }
 0xa17   :  { %v685_v9 = vpop.permute.xlu1 %684 }
 0xa18   :  { %v687_v10 = vadd.f32 %v685_v9, %v677_v7 }
 0xa1a   :  { %8877 = vtanh.f32 %v687_v10  ;;  %v781_v42 = vrot.slane %v687_v10, 4 }
 0xa27   :  { %v8878_v12 = vpop.eup %8877 }
 0xa28   :  { %690 = vrot.lane.b32.xlu0 %v8878_v12, %s9049_s14 }
 0xa9a   :  { %v691_v14 = vpop.permute.xlu0 %690 }
 0xa9b   :  { %v9636_v16 = vmul.f32 %v691_v14, %v672_v63 }
 0xa9d   :  { %v699_v18 = vrot.slane %v9636_v16, 4 }
 0xa9f   :  { %700 = vrot.lane.b32.xlu1 %v699_v18, %s9050_s15 }
 0xb11   :  { %v701_v20 = vpop.permute.xlu1 %700 }
 0xb12   :  { %8307 = vmatmul.mubr.msk.f32.vlgmr.msra.gmra.mxu1 %vm229_vm1, %v701_v20 }
 0xb13   :  { %8345 = vmatpush3.xpose.msk.msra.mxu1 %vm229_vm1, %v9115_v2  ;;  %8376 = vmatprep.mubr.msk.f32.mxu1 %vm9048_vm2, %v11187_v1 }
 0xb14   :  { %8346 = vmatprep.subr.mxu1 %v11187_v1 }
 0xb17   :  { %8347 = vmatpush3.xpose.msk.msra.mxu1 %vm229_vm1, %v9130_v4 }
 0xb18   :  { %8348 = vmatprep.subr.mxu1 %v11187_v1 }
 0xb1b   :  { %8349 = vmatpush3.xpose.msk.msra.mxu1 %vm229_vm1, %v9143_v6 }
 0xb1c   :  { %8350 = vmatprep.subr.mxu1 %v11187_v1 }
 0xb1f   :  { %8351 = vmatpush3.xpose.msk.msra.mxu1 %vm229_vm1, %v9156_v8 }
 0xb20   :  { %8352 = vmatprep.subr.mxu1 %v11187_v1 }
 0xb23   :  { %8353 = vmatpush3.xpose.msk.msra.mxu1 %vm229_vm1, %v9173_v11 }
 0xb24   :  { %8354 = vmatprep.subr.mxu1 %v11187_v1 }
 0xb27   :  { %8355 = vmatpush3.xpose.msk.msra.mxu1 %vm229_vm1, %v9186_v13 }
 0xb28   :  { %8356 = vmatprep.subr.mxu1 %v11187_v1 }
 0xb2b   :  { %8357 = vmatpush3.xpose.msk.msra.mxu1 %vm229_vm1, %v9199_v15 }
 0xb2c   :  { %8358 = vmatprep.subr.mxu1 %v11187_v1 }
 0xb2f   :  { %8359 = vmatpush3.xpose.msk.msra.mxu1 %vm229_vm1, %v9212_v17 }
 0xb30   :  { %8360 = vmatprep.subr.mxu1 %v11187_v1 }
 0xb33   :  { %8361 = vmatpush3.xpose.msk.msra.mxu1 %vm229_vm1, %v9225_v19 }
 0xb34   :  { %8362 = vmatprep.subr.mxu1 %v11187_v1 }
 0xb37   :  { %8363 = vmatpush3.xpose.msk.msra.mxu1 %vm229_vm1, %v9238_v21 }
 0xb38   :  { %8364 = vmatprep.subr.mxu1 %v11187_v1 }
 0xb3b   :  { %8365 = vmatpush3.xpose.msk.msra.mxu1 %vm229_vm1, %v9251_v23 }
 0xb3c   :  { %8366 = vmatprep.subr.mxu1 %v11187_v1 }
 0xb3f   :  { %8367 = vmatpush3.xpose.msk.msra.mxu1 %vm229_vm1, %v9264_v25 }
 0xb40   :  { %8368 = vmatprep.subr.mxu1 %v11187_v1 }
 0xb43   :  { %8369 = vmatpush3.xpose.msk.msra.mxu1 %vm229_vm1, %v9277_v27 }
 0xb44   :  { %8370 = vmatprep.subr.mxu1 %v11187_v1 }
 0xb47   :  { %8371 = vmatpush3.xpose.msk.msra.mxu1 %vm229_vm1, %v9290_v29 }
 0xb48   :  { %8372 = vmatprep.subr.mxu1 %v11187_v1 }
 0xb4b   :  { %8373 = vmatpush3.xpose.msk.msra.mxu1 %vm229_vm1, %v9303_v31 }
 0xb4c   :  { %8374 = vmatprep.subr.mxu1 %v11187_v1 }
 0xb4f   :  { %8375 = vmatpush3.xpose.msk.msra.mxu1 %vm229_vm1, %v9316_v33 }
 0xbd2   :  { %v770_v24 = vpop.f32.mrf.mxu1 }
 0xbd3   :  { %v774_v28 = vadd.f32 %v770_v24, %v9692_v22 }
 0xbd4   :  { %v8308_v30 = vpop.f32.mrf.mxu1 }
 0xbd5   :  { %8879 = vtanh.f32 %v774_v28  ;;  %v775_v34 = vmul.f32 0.5, %v774_v28 }
 0xbd7   :  { %8881 = vtanh.f32 %v775_v34 }
 0xbe2   :  { %v8880_v32 = vpop.eup %8879 }
 0xbe3   :  { %785 = vrot.lane.b32.xlu0 %v8880_v32, %s9049_s14 }
 0xbe4   :  { %v8882_v35 = vpop.eup %8881 }
 0xbe5   :  { %v777_v37 = vadd.f32 1.0, %v8882_v35 }
 0xbe7   :  { %v778_v39 = vmul.f32 0.5, %v777_v37 }
 0xbe9   :  { %v783_v59 = vmul.f32 %v781_v42, %v778_v39  ;;  %v1142_v42 = vld [vmem:[%s11181_s3 + $0x38] sm:$0xff] }
 0xc55   :  { %v786_v40 = vpop.permute.xlu0 %785 }
 0xc56   :  { %v788_v41 = vmul.f32 %v786_v40, %v778_v39  ;;  %v1145_v40 = vld [vmem:[%s11181_s3 + $0x50] sm:$0xff] }
 0xc58   :  { %790 = vrot.lane.b32.xlu1 %v788_v41, %s9050_s15  ;;  %v1143_v41 = vld [vmem:[%s11181_s3 + $0x40] sm:$0xff] }
 0xcca   :  { %v791_v43 = vpop.permute.xlu1 %790 }
 0xccb   :  { %v793_v44 = vadd.f32 %v791_v43, %v783_v59  ;;  %v1141_v59 = vld [vmem:[%s11181_s3 + $0x30] sm:$0xff]  ;;  %v1140_v43 = vld [vmem:[%s11181_s3 + $0x28] sm:$0xff] }
 0xccd   :  { %8883 = vtanh.f32 %v793_v44 }
 0xcda   :  { %v8884_v45 = vpop.eup %8883 }
 0xcdb   :  { %796 = vrot.lane.b32.xlu0 %v8884_v45, %s9049_s14  ;;  %v1138_v45 = vld [vmem:[%s11181_s3 + $0x18] sm:$0xff] }
 0xd4d   :  { %v797_v46 = vpop.permute.xlu0 %796 }
 0xd4e   :  { %v799_v36 = vmul.f32 %v797_v46, %v778_v39  ;;  %v1146_v39 = vld [vmem:[%s11181_s3 + $0x58] sm:$0xff] }
 0xd4f   :  { %8414 = vmatprep.subr.msk.mxu1 %vm229_vm1, %v1146_v39 }
 0xd50   :  { %801 = vrot.lane.b32.xlu1 %v799_v36, %s9050_s15 }
 0xdc2   :  { %v802_v47 = vpop.permute.xlu1 %801 }
 0xdc3   :  { %804 = vst.msk [vmem:[#allocation2 + $0x10] sm:$0xf] %vm378_vm3, %v802_v47  ;;  %8342 = vmatmul.mubr.msk.f32.vlgmr.msra.gmra.mxu0 %vm229_vm1, %v802_v47 }
 0xdc4   :  { %8380 = vmatpush3.xpose.msk.msra.mxu0 %vm229_vm1, %v9115_v2  ;;  %8411 = vmatprep.mubr.msk.f32.mxu0 %vm9048_vm2, %v11187_v1 }
 0xdc5   :  { %8381 = vmatprep.subr.mxu0 %v11187_v1 }
 0xdc8   :  { %8382 = vmatpush3.xpose.msk.msra.mxu0 %vm229_vm1, %v9130_v4 }
 0xdc9   :  { %8383 = vmatprep.subr.mxu0 %v11187_v1 }
 0xdcc   :  { %8384 = vmatpush3.xpose.msk.msra.mxu0 %vm229_vm1, %v9143_v6 }
 0xdcd   :  { %8385 = vmatprep.subr.mxu0 %v11187_v1 }
 0xdd0   :  { %8386 = vmatpush3.xpose.msk.msra.mxu0 %vm229_vm1, %v9156_v8 }
 0xdd1   :  { %8387 = vmatprep.subr.mxu0 %v11187_v1 }
 0xdd4   :  { %8388 = vmatpush3.xpose.msk.msra.mxu0 %vm229_vm1, %v9173_v11 }
 0xdd5   :  { %8389 = vmatprep.subr.mxu0 %v11187_v1 }
 0xdd8   :  { %8390 = vmatpush3.xpose.msk.msra.mxu0 %vm229_vm1, %v9186_v13 }
 0xdd9   :  { %8391 = vmatprep.subr.mxu0 %v11187_v1 }
 0xddc   :  { %8392 = vmatpush3.xpose.msk.msra.mxu0 %vm229_vm1, %v9199_v15 }
 0xddd   :  { %8393 = vmatprep.subr.mxu0 %v11187_v1 }
 0xde0   :  { %8394 = vmatpush3.xpose.msk.msra.mxu0 %vm229_vm1, %v9212_v17 }
 0xde1   :  { %8395 = vmatprep.subr.mxu0 %v11187_v1 }
 0xde4   :  { %8396 = vmatpush3.xpose.msk.msra.mxu0 %vm229_vm1, %v9225_v19 }
 0xde5   :  { %8397 = vmatprep.subr.mxu0 %v11187_v1 }
 0xde8   :  { %8398 = vmatpush3.xpose.msk.msra.mxu0 %vm229_vm1, %v9238_v21 }
 0xde9   :  { %8399 = vmatprep.subr.mxu0 %v11187_v1 }
 0xdec   :  { %8400 = vmatpush3.xpose.msk.msra.mxu0 %vm229_vm1, %v9251_v23 }
 0xded   :  { %8401 = vmatprep.subr.mxu0 %v11187_v1 }
 0xdf0   :  { %8402 = vmatpush3.xpose.msk.msra.mxu0 %vm229_vm1, %v9264_v25  ;;  %v887_v25 = vrot.slane %v793_v44, 4  ;;  %v1139_v44 = vld [vmem:[%s11181_s3 + $0x20] sm:$0xff] }
 0xdf1   :  { %8403 = vmatprep.subr.mxu0 %v11187_v1 }
 0xdf4   :  { %8404 = vmatpush3.xpose.msk.msra.mxu0 %vm229_vm1, %v9277_v27 }
 0xdf5   :  { %8405 = vmatprep.subr.mxu0 %v11187_v1 }
 0xdf8   :  { %8406 = vmatpush3.xpose.msk.msra.mxu0 %vm229_vm1, %v9290_v29 }
 0xdf9   :  { %8407 = vmatprep.subr.mxu0 %v11187_v1 }
 0xdfc   :  { %8408 = vmatpush3.xpose.msk.msra.mxu0 %vm229_vm1, %v9303_v31 }
 0xdfd   :  { %8409 = vmatprep.subr.mxu0 %v11187_v1 }
 0xe00   :  { %8410 = vmatpush3.xpose.msk.msra.mxu0 %vm229_vm1, %v9316_v33 }
 0xe01   :  { %8479 = vmatprep.subr.mxu0 %v11187_v1 }
 0xe83   :  { %v873_v2 = vpop.f32.mrf.mxu0 }
 0xe84   :  { %v878_v4 = vrot.slane %v873_v2, 4 }
 0xe85   :  { %v8343_v6 = vpop.f32.mrf.mxu0 }
 0xe86   :  { %v880_v8 = vadd.f32 %v878_v4, %v9692_v22  ;;  %v1137_v6 = vld [vmem:[%s11181_s3 + $0x10] sm:$0xff] }
 0xe88   :  { %8885 = vtanh.f32 %v880_v8  ;;  %v881_v13 = vmul.f32 0.5, %v880_v8 }
 0xe8a   :  { %8887 = vtanh.f32 %v881_v13  ;;  %v1135_v13 = vld [vmem:[%s11181_s3] sm:$0xff] }
 0xe95   :  { %v8886_v11 = vpop.eup %8885 }
 0xe96   :  { %891 = vrot.lane.b32.xlu0 %v8886_v11, %s9049_s14  ;;  %v1136_v11 = vld [vmem:[%s11181_s3 + $0x8] sm:$0xff] }
 0xe97   :  { %v8888_v15 = vpop.eup %8887 }
 0xe98   :  { %v883_v17 = vadd.f32 1.0, %v8888_v15  ;;  %v7554_v15 = vld [vmem:[%s11180_s8 + $0xa] ss:$0 sm:$0xff] }
 0xe9a   :  { %v884_v19 = vmul.f32 0.5, %v883_v17 }
 0xe9c   :  { %v889_v27 = vmul.f32 %v887_v25, %v884_v19 }
 0xf08   :  { %v892_v21 = vpop.permute.xlu0 %891 }
 0xf09   :  { %v894_v23 = vmul.f32 %v892_v21, %v884_v19 }
 0xf0b   :  { %896 = vrot.lane.b32.xlu1 %v894_v23, %s9050_s15 }
 0xf7d   :  { %v897_v29 = vpop.permute.xlu1 %896 }
 0xf7e   :  { %v899_v31 = vadd.f32 %v897_v29, %v889_v27 }
 0xf80   :  { %8889 = vtanh.f32 %v899_v31  ;;  %v993_v3 = vrot.slane %v899_v31, 4 }
 0xf8d   :  { %v8890_v33 = vpop.eup %8889 }
 0xf8e   :  { %902 = vrot.lane.b32.xlu0 %v8890_v33, %s9049_s14 }
0x1000   :  { %v903_v48 = vpop.permute.xlu0 %902 }
0x1001   :  { %v905_v49 = vmul.f32 %v903_v48, %v884_v19 }
0x1003   :  { %v911_v50 = vrot.slane %v905_v49, 4 }
0x1005   :  { %912 = vrot.lane.b32.xlu1 %v911_v50, %s9050_s15 }
0x1077   :  { %v913_v51 = vpop.permute.xlu1 %912 }
0x1078   :  { %8377 = vmatmul.mubr.msk.f32.vlgmr.msra.gmra.mxu1 %vm229_vm1, %v913_v51 }
0x1079   :  { %8415 = vmatpush3.xpose.msk.msra.mxu1 %vm229_vm1, %v1146_v39 }
0x107a   :  { %8416 = vmatprep.subr.msk.mxu1 %vm229_vm1, %v1145_v40 }
0x107d   :  { %8417 = vmatpush3.xpose.msk.msra.mxu1 %vm229_vm1, %v1145_v40 }
0x1138   :  { %v982_v53 = vpop.f32.mrf.mxu1 }
0x1139   :  { %v986_v54 = vadd.f32 %v982_v53, %v210_v52 }
0x113a   :  { %v8378_v55 = vpop.f32.mrf.mxu1 }
0x113b   :  { %8891 = vtanh.f32 %v986_v54  ;;  %v987_v57 = vmul.f32 0.5, %v986_v54 }
0x113d   :  { %8893 = vtanh.f32 %v987_v57 }
0x1148   :  { %v8892_v56 = vpop.eup %8891 }
0x1149   :  { %997 = vrot.lane.b32.xlu0 %v8892_v56, %s9049_s14 }
0x114a   :  { %v8894_v60 = vpop.eup %8893 }
0x114b   :  { %v989_v61 = vadd.f32 1.0, %v8894_v60 }
0x114d   :  { %v990_v62 = vmul.f32 0.5, %v989_v61 }
0x114f   :  { %v995_v5 = vmul.f32 %v993_v3, %v990_v62 }
0x11bb   :  { %v998_v63 = vpop.permute.xlu0 %997 }
0x11bc   :  { %v1000_v0 = vmul.f32 %v998_v63, %v990_v62 }
0x11be   :  { %1002 = vrot.lane.b32.xlu1 %v1000_v0, %s9050_s15 }
0x1230   :  { %v1003_v7 = vpop.permute.xlu1 %1002 }
0x1231   :  { %v1005_v38 = vadd.f32 %v1003_v7, %v995_v5 }
0x1233   :  { %8895 = vtanh.f32 %v1005_v38  ;;  %v1099_v46 = vrot.slane %v1005_v38, 4 }
0x1240   :  { %v8896_v58 = vpop.eup %8895 }
0x1241   :  { %1008 = vrot.lane.b32.xlu0 %v8896_v58, %s9049_s14 }
0x12b3   :  { %v1009_v9 = vpop.permute.xlu0 %1008 }
0x12b4   :  { %v1011_v10 = vmul.f32 %v1009_v9, %v990_v62 }
0x12b6   :  { %1013 = vrot.lane.b32.xlu1 %v1011_v10, %s9050_s15 }
0x1328   :  { %v1014_v12 = vpop.permute.xlu1 %1013 }
0x1329   :  { %1016 = vst.msk [vmem:[#allocation2 + $0x18] sm:$0xf] %vm378_vm3, %v1014_v12  ;;  %8412 = vmatmul.mubr.msk.f32.vlgmr.msra.gmra.mxu0 %vm229_vm1, %v1014_v12 }
0x132a   :  { %8481 = vmatprep.mubr.msk.f32.mxu0 %vm9048_vm2, %v11187_v1 }
0x13e9   :  { %v1085_v14 = vpop.f32.mrf.mxu0 }
0x13ea   :  { %v1090_v18 = vrot.slane %v1085_v14, 4 }
0x13eb   :  { %v8413_v20 = vpop.f32.mrf.mxu0 }
0x13ec   :  { %v1092_v22 = vadd.f32 %v1090_v18, %v210_v52  ;;  %v7555_v52 = vld [vmem:[%s11180_s8 + $0x1] ss:$0 sm:$0xff] }
0x13ee   :  { %8897 = vtanh.f32 %v1092_v22  ;;  %v1093_v28 = vmul.f32 0.5, %v1092_v22 }
0x13f0   :  { %8899 = vtanh.f32 %v1093_v28 }
0x13fb   :  { %v8898_v24 = vpop.eup %8897 }
0x13fc   :  { %1103 = vrot.lane.b32.xlu0 %v8898_v24, %s9049_s14 }
0x13fd   :  { %v8900_v30 = vpop.eup %8899 }
0x13fe   :  { %v1095_v32 = vadd.f32 1.0, %v8900_v30 }
0x1400   :  { %v1096_v34 = vmul.f32 0.5, %v1095_v32 }
0x1402   :  { %v1101_v36 = vmul.f32 %v1099_v46, %v1096_v34 }
0x146e   :  { %v1104_v35 = vpop.permute.xlu0 %1103 }
0x146f   :  { %v1106_v37 = vmul.f32 %v1104_v35, %v1096_v34 }
0x1471   :  { %1108 = vrot.lane.b32.xlu1 %v1106_v37, %s9050_s15 }
0x1475   :  { %482 = vrot.lane.b32.xlu1 %v9516_v26, %s9050_s15  ;;  %v1144_v26 = vld [vmem:[%s11181_s3 + $0x48] sm:$0xff] }
0x1476   :  { %8418 = vmatprep.subr.msk.mxu1 %vm229_vm1, %v1144_v26 }
0x1477   :  { %8419 = vmatpush3.xpose.msk.msra.mxu1 %vm229_vm1, %v1144_v26 }
0x1478   :  { %8420 = vmatprep.subr.msk.mxu1 %vm229_vm1, %v1143_v41 }
0x1479   :  { %907 = vrot.lane.b32.xlu1 %v905_v49, %s9050_s15 }
0x147b   :  { %8421 = vmatpush3.xpose.msk.msra.mxu1 %vm229_vm1, %v1143_v41 }
0x147c   :  { %8422 = vmatprep.subr.msk.mxu1 %vm229_vm1, %v1142_v42 }
0x147f   :  { %8423 = vmatpush3.xpose.msk.msra.mxu1 %vm229_vm1, %v1142_v42 }
0x1480   :  { %8424 = vmatprep.subr.msk.mxu1 %vm229_vm1, %v1141_v59 }
0x1483   :  { %8425 = vmatpush3.xpose.msk.msra.mxu1 %vm229_vm1, %v1141_v59 }
0x1484   :  { %8426 = vmatprep.subr.msk.mxu1 %vm229_vm1, %v1140_v43 }
0x1487   :  { %8427 = vmatpush3.xpose.msk.msra.mxu1 %vm229_vm1, %v1140_v43 }
0x1488   :  { %8428 = vmatprep.subr.msk.mxu1 %vm229_vm1, %v1139_v44 }
0x148b   :  { %8429 = vmatpush3.xpose.msk.msra.mxu1 %vm229_vm1, %v1139_v44 }
0x148c   :  { %8430 = vmatprep.subr.msk.mxu1 %vm229_vm1, %v1138_v45 }
0x148f   :  { %8431 = vmatpush3.xpose.msk.msra.mxu1 %vm229_vm1, %v1138_v45 }
0x1490   :  { %8432 = vmatprep.subr.msk.mxu1 %vm229_vm1, %v1137_v6 }
0x1493   :  { %8433 = vmatpush3.xpose.msk.msra.mxu1 %vm229_vm1, %v1137_v6 }
0x1494   :  { %8434 = vmatprep.subr.msk.mxu1 %vm229_vm1, %v1136_v11 }
0x1497   :  { %8435 = vmatpush3.xpose.msk.msra.mxu1 %vm229_vm1, %v1136_v11 }
0x1498   :  { %8436 = vmatprep.subr.msk.mxu1 %vm229_vm1, %v1135_v13 }
0x149b   :  { %8437 = vmatpush3.xpose.msk.msra.mxu1 %vm229_vm1, %v1135_v13 }
0x149c   :  { %8444 = vmatprep.subr.mxu1 %v11187_v1 }
0x14e3   :  { %v1109_v47 = vpop.permute.xlu1 %1108 }
0x14e4   :  { %v1111_v2 = vadd.f32 %v1109_v47, %v1101_v36 }
0x14e6   :  { %8901 = vtanh.f32 %v1111_v2 }
0x14e7   :  { %v483_v4 = vpop.permute.xlu1 %482 }
0x14e8   :  { %486 = vst.msk [vmem:[#allocation2] sm:$0xf0] %vm485_vm4, %v483_v4 }
0x14eb   :  { %v908_v8 = vpop.permute.xlu1 %907 }
0x14ec   :  { %910 = vst.msk [vmem:[#allocation2 + $0x10] sm:$0xf0] %vm485_vm4, %v908_v8 }
0x14ef   :  { %v1123_v17 = vld [vmem:[#allocation2] sm:$0xff] }
0x14f0   :  { %v9836_v19 = vadd.f32 %v7554_v15, %v1123_v17 }
0x14f2   :  { %11193 = vst [vmem:[#allocation3_spill] sm:$0xff] %v9836_v19  ;;  %8438 = vmatprep.mubr.msk.f32.mxu1 %vm229_vm1, %v9836_v19 }
0x14f3   :  { %v8902_v21 = vpop.eup %8901  ;;  %v1125_v29 = vld [vmem:[#allocation2 + $0x10] sm:$0xff] }
0x14f4   :  { %1114 = vrot.lane.b32.xlu0 %v8902_v21, %s9049_s14  ;;  %v9849_v48 = vadd.f32 %v7554_v15, %v1125_v29 }
0x14f6   :  { %11195 = vst [vmem:[#allocation5_spill] sm:$0xff] %v9849_v48 }
0x14f8   :  { %695 = vrot.lane.b32.xlu0 %v9636_v16, %s9050_s15 }
0x1566   :  { %v1115_v23 = vpop.permute.xlu0 %1114 }
0x1567   :  { %v1117_v25 = vmul.f32 %v1115_v23, %v1096_v34 }
0x1569   :  { %1119 = vrot.lane.b32.xlu0 %v1117_v25, %s9050_s15 }
0x156a   :  { %v696_v27 = vpop.permute.xlu0 %695 }
0x156b   :  { %698 = vst.msk [vmem:[#allocation2 + $0x8] sm:$0xf0] %vm485_vm4, %v696_v27 }
0x1572   :  { %v1124_v31 = vld [vmem:[#allocation2 + $0x8] sm:$0xff] }
0x1573   :  { %v9847_v33 = vadd.f32 %v7554_v15, %v1124_v31 }
0x1575   :  { %11194 = vst [vmem:[#allocation4_spill] sm:$0xff] %v9847_v33  ;;  %8439 = vmatmul.mubr.msk.f32.vlgmr.msra.gmra.mxu1 %vm229_vm1, %v9847_v33 }
0x1576   :  { %8441 = vmatprep.mubr.msk.f32.mxu1 %vm229_vm1, %v9849_v48 }
0x15db   :  { %v1120_v16 = vpop.permute.xlu0 %1119 }
0x15dc   :  { %1122 = vst.msk [vmem:[#allocation2 + $0x18] sm:$0xf0] %vm485_vm4, %v1120_v16 }
0x15e3   :  { %v1126_v49 = vld [vmem:[#allocation2 + $0x18] sm:$0xff] }
0x15e4   :  { %v9856_v50 = vadd.f32 %v7554_v15, %v1126_v49 }
0x15e6   :  { %11196 = vst [vmem:[#allocation6_spill] sm:$0xff] %v9856_v50  ;;  %8442 = vmatmul.mubr.msk.f32.gmra.mxu1 %vm229_vm1, %v9856_v50 }
0x15e7   :  { %8446 = vmatprep.mubr.msk.f32.mxu1 %vm9048_vm2, %v11187_v1 }
0x1635   :  { %v8440_v51 = vpop.f32.mrf.mxu1 }
0x1636   :  { %v9867_v55 = vadd.f32 %v8440_v51, %v7555_v52 }
0x1637   :  { %v1265_v53 = vpop.f32.mrf.mxu1 }
0x1638   :  { %v9865_v54 = vadd.f32 %v7555_v52, %v1265_v53  ;;  %v9878_v57 = vcombine.high %v9867_v55, %v9867_v55 }
0x163a   :  { %1292 = vrot.lane.b32.xlu1 %v9865_v54, %s9051_s23  ;;  %v9872_v56 = vcombine.high %v9865_v54, %v9865_v54 }
0x163c   :  { %1294 = vrot.lane.b32.xlu0 %v9872_v56, %s9051_s23 }
0x163e   :  { %1296 = vrot.lane.b32.xlu1 %v9867_v55, %s9051_s23 }
0x1640   :  { %1298 = vrot.lane.b32.xlu0 %v9878_v57, %s9051_s23 }
0x1642   :  { %1308 = vrot.lane.b32.xlu1 %v9865_v54, %s9052_s24 }
0x1644   :  { %1310 = vrot.lane.b32.xlu0 %v9872_v56, %s9052_s24 }
0x16a6   :  { %v8443_v60 = vpop.f32.mrf.mxu1 }
0x16a7   :  { %v9883_v61 = vadd.f32 %v8443_v60, %v7555_v52 }
0x16a8   :  { %v1275_v62 = vpop.f32.mrf.mxu1 }
0x16a9   :  { %v9885_v63 = vadd.f32 %v7555_v52, %v1275_v62  ;;  %1304 = vrot.lane.b32.xlu1 %v9883_v61, %s9051_s23  ;;  %v9890_v0 = vcombine.high %v9883_v61, %v9883_v61 }
0x16ab   :  { %1306 = vrot.lane.b32.xlu0 %v9890_v0, %s9051_s23  ;;  %v9896_v3 = vcombine.high %v9885_v63, %v9885_v63 }
0x16ac   :  { %v9927_v5 = vpop.permute.xlu1 %1292 }
0x16ad   :  { %1300 = vrot.lane.b32.xlu1 %v9885_v63, %s9051_s23 }
0x16ae   :  { %v9931_v7 = vpop.permute.xlu0 %1294 }
0x16af   :  { %1302 = vrot.lane.b32.xlu0 %v9896_v3, %s9051_s23 }
0x16b0   :  { %v9937_v38 = vpop.permute.xlu1 %1296 }
0x16b1   :  { %1312 = vrot.lane.b32.xlu1 %v9867_v55, %s9052_s24 }
0x16b2   :  { %v9941_v58 = vpop.permute.xlu0 %1298 }
0x16b3   :  { %1314 = vrot.lane.b32.xlu0 %v9878_v57, %s9052_s24 }
0x16b4   :  { %v9945_v9 = vpop.permute.xlu1 %1308 }
0x16b5   :  { %1316 = vrot.lane.b32.xlu1 %v9885_v63, %s9052_s24 }
0x16b6   :  { %v9947_v10 = vpop.permute.xlu0 %1310 }
0x16b7   :  { %1322 = vrot.lane.b32.xlu0 %v9890_v0, %s9052_s24 }
0x16b9   :  { %1320 = vrot.lane.b32.xlu1 %v9883_v61, %s9052_s24 }
0x16bb   :  { %1324 = vrot.lane.b32.xlu0 %v9865_v54, %s9053_s25 }
0x16bd   :  { %1340 = vrot.lane.b32.xlu1 %v9865_v54, %s9054_s26 }
0x16bf   :  { %1318 = vrot.lane.b32.xlu0 %v9896_v3, %s9052_s24 }
0x16c1   :  { %1326 = vrot.lane.b32.xlu1 %v9872_v56, %s9053_s25 }
0x16c3   :  { %1417 = vrot.lane.b32.xlu0 %v9872_v56, %s9054_s26 }
0x16c5   :  { %1328 = vrot.lane.b32.xlu1 %v9867_v55, %s9053_s25 }
0x16c7   :  { %1330 = vrot.lane.b32.xlu0 %v9878_v57, %s9053_s25 }
0x16c9   :  { %1493 = vrot.lane.b32.xlu1 %v9867_v55, %s9054_s26 }
0x16cb   :  { %1332 = vrot.lane.b32.xlu0 %v9885_v63, %s9053_s25 }
0x16cd   :  { %1334 = vrot.lane.b32.xlu1 %v9896_v3, %s9053_s25 }
0x16cf   :  { %1569 = vrot.lane.b32.xlu0 %v9878_v57, %s9054_s26 }
0x16d1   :  { %1336 = vrot.lane.b32.xlu1 %v9883_v61, %s9053_s25 }
0x16d3   :  { %1338 = vrot.lane.b32.xlu0 %v9890_v0, %s9053_s25 }
0x16d5   :  { %1645 = vrot.lane.b32.xlu1 %v9885_v63, %s9054_s26 }
0x16d7   :  { %1721 = vrot.lane.b32.xlu0 %v9896_v3, %s9054_s26 }
0x16d9   :  { %1797 = vrot.lane.b32.xlu1 %v9883_v61, %s9054_s26 }
0x16db   :  { %1873 = vrot.lane.b32.xlu0 %v9890_v0, %s9054_s26 }
0x16dd   :  { %1949 = vrot.lane.b32.xlu1 %v9927_v5, %s9054_s26 }
0x16df   :  { %2025 = vrot.lane.b32.xlu0 %v9931_v7, %s9054_s26 }
0x16e1   :  { %2101 = vrot.lane.b32.xlu1 %v9937_v38, %s9054_s26 }
0x16e3   :  { %2177 = vrot.lane.b32.xlu0 %v9941_v58, %s9054_s26 }
0x171b   :  { %v9949_v12 = vpop.permute.xlu1 %1304 }
0x171d   :  { %v9951_v14 = vpop.permute.xlu0 %1306 }
0x171f   :  { %v9953_v18 = vpop.permute.xlu1 %1300 }
0x1720   :  { %2253 = vrot.lane.b32.xlu1 %v9953_v18, %s9054_s26 }
0x1721   :  { %v9957_v20 = vpop.permute.xlu0 %1302 }
0x1722   :  { %2329 = vrot.lane.b32.xlu0 %v9957_v20, %s9054_s26 }
0x1723   :  { %v9961_v22 = vpop.permute.xlu1 %1312 }
0x1724   :  { %2405 = vrot.lane.b32.xlu1 %v9949_v12, %s9054_s26 }
0x1725   :  { %v9965_v24 = vpop.permute.xlu0 %1314 }
0x1726   :  { %2481 = vrot.lane.b32.xlu0 %v9951_v14, %s9054_s26 }
0x1727   :  { %v9969_v28 = vpop.permute.xlu1 %1316 }
0x1728   :  { %2557 = vrot.lane.b32.xlu1 %v9945_v9, %s9054_s26 }
0x1729   :  { %v9973_v30 = vpop.permute.xlu0 %1322 }
0x172a   :  { %2633 = vrot.lane.b32.xlu0 %v9947_v10, %s9054_s26 }
0x172b   :  { %v9977_v32 = vpop.permute.xlu1 %1320 }
0x172c   :  { %2709 = vrot.lane.b32.xlu1 %v9961_v22, %s9054_s26 }
0x172d   :  { %v9981_v34 = vpop.permute.xlu0 %1324 }
0x172e   :  { %2785 = vrot.lane.b32.xlu0 %v9965_v24, %s9054_s26 }
0x172f   :  { %v1341_v35 = vpop.permute.xlu1 %1340 }
0x1730   :  { %8445 = vmatpush3.xpose.msk.msra.mxu1 %vm1342_vm5, %v1341_v35  ;;  %2861 = vrot.lane.b32.xlu1 %v9969_v28, %s9054_s26 }
0x1731   :  { %v9988_v37 = vpop.permute.xlu0 %1318  ;;  %8449 = vmatprep.subr.mxu1 %v11187_v1 }
0x1732   :  { %2937 = vrot.lane.b32.xlu0 %v9988_v37, %s9054_s26 }
0x1733   :  { %8447 = vmatmul.mubr.msk.f32.vlgmr.msra.gmra.mxu1 %vm1342_vm5, %v9865_v54  ;;  %v9995_v39 = vpop.permute.xlu1 %1326 }
0x1734   :  { %3013 = vrot.lane.b32.xlu1 %v9977_v32, %s9054_s26  ;;  %8451 = vmatprep.mubr.msk.f32.mxu1 %vm9048_vm2, %v11187_v1 }
0x1735   :  { %v1418_v40 = vpop.permute.xlu0 %1417 }
0x1736   :  { %3089 = vrot.lane.b32.xlu0 %v9973_v30, %s9054_s26  ;;  %8450 = vmatpush3.xpose.msk.msra.mxu1 %vm1342_vm5, %v1418_v40 }
0x1737   :  { %v10004_v26 = vpop.permute.xlu1 %1328  ;;  %8454 = vmatprep.subr.mxu1 %v11187_v1 }
0x1738   :  { %3165 = vrot.lane.b32.xlu1 %v9981_v34, %s9054_s26 }
0x1739   :  { %8452 = vmatmul.mubr.msk.f32.vlgmr.msra.gmra.mxu1 %vm1342_vm5, %v9872_v56  ;;  %v10011_v41 = vpop.permute.xlu0 %1330 }
0x173a   :  { %3241 = vrot.lane.b32.xlu0 %v9995_v39, %s9054_s26  ;;  %8456 = vmatprep.mubr.msk.f32.mxu1 %vm9048_vm2, %v11187_v1 }
0x173b   :  { %v1494_v42 = vpop.permute.xlu1 %1493 }
0x173c   :  { %3317 = vrot.lane.b32.xlu1 %v10004_v26, %s9054_s26  ;;  %8455 = vmatpush3.xpose.msk.msra.mxu1 %vm1342_vm5, %v1494_v42 }
0x173d   :  { %v10020_v59 = vpop.permute.xlu0 %1332  ;;  %8459 = vmatprep.subr.mxu1 %v11187_v1 }
0x173e   :  { %3393 = vrot.lane.b32.xlu0 %v10011_v41, %s9054_s26 }
0x173f   :  { %v10025_v43 = vpop.permute.xlu1 %1334  ;;  %8457 = vmatmul.mubr.msk.f32.vlgmr.msra.gmra.mxu1 %vm1342_vm5, %v9867_v55 }
0x1740   :  { %3469 = vrot.lane.b32.xlu1 %v10020_v59, %s9054_s26  ;;  %8461 = vmatprep.mubr.msk.f32.mxu1 %vm9048_vm2, %v11187_v1 }
0x1741   :  { %v1570_v44 = vpop.permute.xlu0 %1569 }
0x1742   :  { %3545 = vrot.lane.b32.xlu0 %v10025_v43, %s9054_s26  ;;  %8460 = vmatpush3.xpose.msk.msra.mxu1 %vm1342_vm5, %v1570_v44 }
0x1743   :  { %v10036_v45 = vpop.permute.xlu1 %1336  ;;  %8464 = vmatprep.subr.mxu1 %v11187_v1 }
0x1744   :  { %3621 = vrot.lane.b32.xlu1 %v10036_v45, %s9054_s26 }
0x1745   :  { %8462 = vmatmul.mubr.msk.f32.vlgmr.msra.gmra.mxu1 %vm1342_vm5, %v9878_v57  ;;  %v10043_v46 = vpop.permute.xlu0 %1338 }
0x1746   :  { %3697 = vrot.lane.b32.xlu0 %v10043_v46, %s9054_s26  ;;  %8466 = vmatprep.mubr.msk.f32.mxu1 %vm9048_vm2, %v11187_v1 }
0x1747   :  { %v1646_v36 = vpop.permute.xlu1 %1645 }
0x1748   :  { %8465 = vmatpush3.xpose.msk.msra.mxu1 %vm1342_vm5, %v1646_v36 }
0x1749   :  { %v1722_v47 = vpop.permute.xlu0 %1721  ;;  %8469 = vmatprep.subr.mxu1 %v11187_v1 }
0x174b   :  { %v1798_v2 = vpop.permute.xlu1 %1797  ;;  %8467 = vmatmul.mubr.msk.f32.vlgmr.msra.gmra.mxu1 %vm1342_vm5, %v9885_v63 }
0x174c   :  { %8470 = vmatpush3.xpose.msk.msra.mxu1 %vm1342_vm5, %v1722_v47  ;;  %8471 = vmatprep.mubr.msk.f32.mxu1 %vm9048_vm2, %v11187_v1 }
0x174d   :  { %v1874_v4 = vpop.permute.xlu0 %1873  ;;  %8474 = vmatprep.subr.mxu1 %v11187_v1 }
0x174e   :  { %8480 = vmatpush3.xpose.msk.msra.mxu0 %vm1342_vm5, %v1874_v4 }
0x174f   :  { %8472 = vmatmul.mubr.msk.f32.vlgmr.msra.gmra.mxu1 %vm1342_vm5, %v9896_v3  ;;  %8489 = vmatprep.subr.mxu0 %v11187_v1  ;;  %v1950_v6 = vpop.permute.xlu1 %1949 }
0x1750   :  { %8475 = vmatpush3.xpose.msk.msra.mxu1 %vm1342_vm5, %v1798_v2  ;;  %8476 = vmatprep.mubr.msk.f32.mxu1 %vm9048_vm2, %v11187_v1 }
0x1751   :  { %8482 = vmatmul.mubr.msk.f32.vlgmr.msra.gmra.mxu0 %vm1342_vm5, %v9890_v0  ;;  %v2026_v8 = vpop.permute.xlu0 %2025  ;;  %8484 = vmatprep.subr.mxu1 %v11187_v1 }
0x1752   :  { %8490 = vmatpush3.xpose.msk.msra.mxu0 %vm1342_vm5, %v2026_v8  ;;  %8491 = vmatprep.mubr.msk.f32.mxu0 %vm9048_vm2, %v11187_v1 }
0x1753   :  { %8477 = vmatmul.mubr.msk.f32.vlgmr.msra.gmra.mxu1 %vm1342_vm5, %v9883_v61  ;;  %8499 = vmatprep.subr.mxu0 %v11187_v1  ;;  %v2102_v13 = vpop.permute.xlu1 %2101 }
0x1754   :  { %8485 = vmatpush3.xpose.msk.msra.mxu1 %vm1342_vm5, %v1950_v6  ;;  %8486 = vmatprep.mubr.msk.f32.mxu1 %vm9048_vm2, %v11187_v1 }
0x1755   :  { %8492 = vmatmul.mubr.msk.f32.vlgmr.msra.gmra.mxu0 %vm1342_vm5, %v9931_v7  ;;  %v2178_v11 = vpop.permute.xlu0 %2177  ;;  %8494 = vmatprep.subr.mxu1 %v11187_v1 }
0x1756   :  { %8500 = vmatpush3.xpose.msk.msra.mxu0 %vm1342_vm5, %v2178_v11  ;;  %8501 = vmatprep.mubr.msk.f32.mxu0 %vm9048_vm2, %v11187_v1 }
0x1757   :  { %8487 = vmatmul.mubr.msk.f32.vlgmr.msra.gmra.mxu1 %vm1342_vm5, %v9927_v5  ;;  %8509 = vmatprep.subr.mxu0 %v11187_v1 }
0x1758   :  { %8495 = vmatpush3.xpose.msk.msra.mxu1 %vm1342_vm5, %v2102_v13  ;;  %8496 = vmatprep.mubr.msk.f32.mxu1 %vm9048_vm2, %v11187_v1 }
0x1759   :  { %8502 = vmatmul.mubr.msk.f32.vlgmr.msra.gmra.mxu0 %vm1342_vm5, %v9941_v58  ;;  %8504 = vmatprep.subr.mxu1 %v11187_v1 }
0x175a   :  { %8511 = vmatprep.mubr.msk.f32.mxu0 %vm9048_vm2, %v11187_v1 }
0x175b   :  { %8497 = vmatmul.mubr.msk.f32.vlgmr.msra.gmra.mxu1 %vm1342_vm5, %v9937_v38 }
0x175c   :  { %8506 = vmatprep.mubr.msk.f32.mxu1 %vm9048_vm2, %v11187_v1 }
0x1792   :  { %v2254_v15 = vpop.permute.xlu1 %2253 }
0x1793   :  { %8505 = vmatpush3.xpose.msk.msra.mxu1 %vm1342_vm5, %v2254_v15 }
0x1794   :  { %v2330_v17 = vpop.permute.xlu0 %2329  ;;  %8514 = vmatprep.subr.mxu1 %v11187_v1 }
0x1795   :  { %8510 = vmatpush3.xpose.msk.msra.mxu0 %vm1342_vm5, %v2330_v17 }
0x1796   :  { %v2406_v21 = vpop.permute.xlu1 %2405  ;;  %8507 = vmatmul.mubr.msk.f32.vlgmr.msra.gmra.mxu1 %vm1342_vm5, %v9953_v18  ;;  %8519 = vmatprep.subr.mxu0 %v11187_v1 }
0x1797   :  { %8515 = vmatpush3.xpose.msk.msra.mxu1 %vm1342_vm5, %v2406_v21  ;;  %8516 = vmatprep.mubr.msk.f32.mxu1 %vm9048_vm2, %v11187_v1 }
0x1798   :  { %8512 = vmatmul.mubr.msk.f32.vlgmr.msra.gmra.mxu0 %vm1342_vm5, %v9957_v20  ;;  %v2482_v23 = vpop.permute.xlu0 %2481  ;;  %8524 = vmatprep.subr.mxu1 %v11187_v1 }
0x1799   :  { %8520 = vmatpush3.xpose.msk.msra.mxu0 %vm1342_vm5, %v2482_v23  ;;  %8521 = vmatprep.mubr.msk.f32.mxu0 %vm9048_vm2, %v11187_v1 }
0x179a   :  { %v2558_v25 = vpop.permute.xlu1 %2557  ;;  %8517 = vmatmul.mubr.msk.f32.vlgmr.msra.gmra.mxu1 %vm1342_vm5, %v9949_v12  ;;  %8529 = vmatprep.subr.mxu0 %v11187_v1 }
0x179b   :  { %8525 = vmatpush3.xpose.msk.msra.mxu1 %vm1342_vm5, %v2558_v25  ;;  %8526 = vmatprep.mubr.msk.f32.mxu1 %vm9048_vm2, %v11187_v1 }
0x179c   :  { %8522 = vmatmul.mubr.msk.f32.vlgmr.msra.gmra.mxu0 %vm1342_vm5, %v9951_v14  ;;  %v2634_v27 = vpop.permute.xlu0 %2633  ;;  %8534 = vmatprep.subr.mxu1 %v11187_v1 }
0x179d   :  { %8530 = vmatpush3.xpose.msk.msra.mxu0 %vm1342_vm5, %v2634_v27  ;;  %8531 = vmatprep.mubr.msk.f32.mxu0 %vm9048_vm2, %v11187_v1 }
0x179e   :  { %v2710_v29 = vpop.permute.xlu1 %2709  ;;  %8527 = vmatmul.mubr.msk.f32.vlgmr.msra.gmra.mxu1 %vm1342_vm5, %v9945_v9  ;;  %8539 = vmatprep.subr.mxu0 %v11187_v1 }
0x179f   :  { %8535 = vmatpush3.xpose.msk.msra.mxu1 %vm1342_vm5, %v2710_v29  ;;  %8536 = vmatprep.mubr.msk.f32.mxu1 %vm9048_vm2, %v11187_v1 }
0x17a0   :  { %8532 = vmatmul.mubr.msk.f32.vlgmr.msra.gmra.mxu0 %vm1342_vm5, %v9947_v10  ;;  %v2786_v31 = vpop.permute.xlu0 %2785  ;;  %8544 = vmatprep.subr.mxu1 %v11187_v1 }
0x17a1   :  { %8540 = vmatpush3.xpose.msk.msra.mxu0 %vm1342_vm5, %v2786_v31  ;;  %8541 = vmatprep.mubr.msk.f32.mxu0 %vm9048_vm2, %v11187_v1 }
0x17a2   :  { %v2862_v16 = vpop.permute.xlu1 %2861  ;;  %8537 = vmatmul.mubr.msk.f32.vlgmr.msra.gmra.mxu1 %vm1342_vm5, %v9961_v22  ;;  %8549 = vmatprep.subr.mxu0 %v11187_v1 }
0x17a3   :  { %8545 = vmatpush3.xpose.msk.msra.mxu1 %vm1342_vm5, %v2862_v16  ;;  %8546 = vmatprep.mubr.msk.f32.mxu1 %vm9048_vm2, %v11187_v1 }
0x17a4   :  { %8542 = vmatmul.mubr.msk.f32.vlgmr.msra.gmra.mxu0 %vm1342_vm5, %v9965_v24  ;;  %v2938_v49 = vpop.permute.xlu0 %2937  ;;  %8554 = vmatprep.subr.mxu1 %v11187_v1 }
0x17a5   :  { %8550 = vmatpush3.xpose.msk.msra.mxu0 %vm1342_vm5, %v2938_v49  ;;  %8551 = vmatprep.mubr.msk.f32.mxu0 %vm9048_vm2, %v11187_v1 }
0x17a6   :  { %v3014_v51 = vpop.permute.xlu1 %3013  ;;  %8547 = vmatmul.mubr.msk.f32.vlgmr.msra.gmra.mxu1 %vm1342_vm5, %v9969_v28  ;;  %8559 = vmatprep.subr.mxu0 %v11187_v1 }
0x17a7   :  { %8555 = vmatpush3.xpose.msk.msra.mxu1 %vm1342_vm5, %v3014_v51  ;;  %8556 = vmatprep.mubr.msk.f32.mxu1 %vm9048_vm2, %v11187_v1 }
0x17a8   :  { %8552 = vmatmul.mubr.msk.f32.vlgmr.msra.gmra.mxu0 %vm1342_vm5, %v9988_v37  ;;  %v3090_v52 = vpop.permute.xlu0 %3089  ;;  %8564 = vmatprep.subr.mxu1 %v11187_v1 }
0x17a9   :  { %8560 = vmatpush3.xpose.msk.msra.mxu0 %vm1342_vm5, %v3090_v52  ;;  %8561 = vmatprep.mubr.msk.f32.mxu0 %vm9048_vm2, %v11187_v1 }
0x17aa   :  { %v3166_v53 = vpop.permute.xlu1 %3165  ;;  %8557 = vmatmul.mubr.msk.f32.vlgmr.msra.gmra.mxu1 %vm1342_vm5, %v9977_v32  ;;  %8569 = vmatprep.subr.mxu0 %v11187_v1 }
0x17ab   :  { %8565 = vmatpush3.xpose.msk.msra.mxu1 %vm1342_vm5, %v3166_v53  ;;  %8566 = vmatprep.mubr.msk.f32.mxu1 %vm9048_vm2, %v11187_v1 }
0x17ac   :  { %8562 = vmatmul.mubr.msk.f32.vlgmr.msra.gmra.mxu0 %vm1342_vm5, %v9973_v30  ;;  %v3242_v60 = vpop.permute.xlu0 %3241  ;;  %8574 = vmatprep.subr.mxu1 %v11187_v1 }
0x17ad   :  { %8570 = vmatpush3.xpose.msk.msra.mxu0 %vm1342_vm5, %v3242_v60  ;;  %8571 = vmatprep.mubr.msk.f32.mxu0 %vm9048_vm2, %v11187_v1 }
0x17ae   :  { %v3318_v62 = vpop.permute.xlu1 %3317  ;;  %8567 = vmatmul.mubr.msk.f32.vlgmr.msra.gmra.mxu1 %vm1342_vm5, %v9981_v34  ;;  %8579 = vmatprep.subr.mxu0 %v11187_v1 }
0x17af   :  { %8575 = vmatpush3.xpose.msk.msra.mxu1 %vm1342_vm5, %v3318_v62  ;;  %8576 = vmatprep.mubr.msk.f32.mxu1 %vm9048_vm2, %v11187_v1 }
0x17b0   :  { %8572 = vmatmul.mubr.msk.f32.vlgmr.msra.gmra.mxu0 %vm1342_vm5, %v9995_v39  ;;  %v3394_v35 = vpop.permute.xlu0 %3393  ;;  %8584 = vmatprep.subr.mxu1 %v11187_v1 }
0x17b1   :  { %8580 = vmatpush3.xpose.msk.msra.mxu0 %vm1342_vm5, %v3394_v35  ;;  %8581 = vmatprep.mubr.msk.f32.mxu0 %vm9048_vm2, %v11187_v1 }
0x17b2   :  { %v3470_v40 = vpop.permute.xlu1 %3469  ;;  %8577 = vmatmul.mubr.msk.f32.vlgmr.msra.gmra.mxu1 %vm1342_vm5, %v10004_v26  ;;  %8589 = vmatprep.subr.mxu0 %v11187_v1 }
0x17b3   :  { %8585 = vmatpush3.xpose.msk.msra.mxu1 %vm1342_vm5, %v3470_v40  ;;  %8586 = vmatprep.mubr.msk.f32.mxu1 %vm9048_vm2, %v11187_v1 }
0x17b4   :  { %8582 = vmatmul.mubr.msk.f32.vlgmr.msra.gmra.mxu0 %vm1342_vm5, %v10011_v41  ;;  %v3546_v42 = vpop.permute.xlu0 %3545  ;;  %8594 = vmatprep.subr.mxu1 %v11187_v1 }
0x17b5   :  { %8590 = vmatpush3.xpose.msk.msra.mxu0 %vm1342_vm5, %v3546_v42  ;;  %8591 = vmatprep.mubr.msk.f32.mxu0 %vm9048_vm2, %v11187_v1 }
0x17b6   :  { %v3622_v44 = vpop.permute.xlu1 %3621  ;;  %8587 = vmatmul.mubr.msk.f32.vlgmr.msra.gmra.mxu1 %vm1342_vm5, %v10020_v59  ;;  %8599 = vmatprep.subr.mxu0 %v11187_v1 }
0x17b7   :  { %8595 = vmatpush3.xpose.msk.msra.mxu1 %vm1342_vm5, %v3622_v44  ;;  %8596 = vmatprep.mubr.msk.f32.mxu1 %vm9048_vm2, %v11187_v1 }
0x17b8   :  { %8592 = vmatmul.mubr.msk.f32.vlgmr.msra.gmra.mxu0 %vm1342_vm5, %v10025_v43  ;;  %v3698_v36 = vpop.permute.xlu0 %3697  ;;  %8604 = vmatprep.subr.mxu1 %v11187_v1 }
0x17b9   :  { %8600 = vmatpush3.xpose.msk.msra.mxu0 %vm1342_vm5, %v3698_v36  ;;  %8601 = vmatprep.mubr.msk.f32.mxu0 %vm9048_vm2, %v11187_v1 }
0x17ba   :  { %8597 = vmatmul.mubr.msk.f32.vlgmr.msra.gmra.mxu1 %vm1342_vm5, %v10036_v45  ;;  %8609 = vmatprep.subr.mxu0 %v11187_v1 }
0x17bb   :  { %8606 = vmatprep.mubr.msk.f32.mxu1 %vm9048_vm2, %v11187_v1 }
0x17bc   :  { %8602 = vmatmul.mubr.msk.f32.vlgmr.msra.gmra.mxu0 %vm1342_vm5, %v10043_v46 }
0x17bd   :  { %8611 = vmatprep.mubr.msk.f32.mxu0 %vm9048_vm2, %v11187_v1 }
0x17f3   :  { %v1413_v47 = vpop.f32.mrf.mxu1 }
0x17f4   :  { %v10217_v2 = vmul.f32 0.35355338, %v1413_v47 }
0x17f5   :  { %v8448_v4 = vpop.f32.mrf.mxu1 }
0x17f6   :  { %v3806_v6 = vsel %vm3805_vm6, %v10217_v2, -inf }
0x17f7   :  { %3807 = vmax.xlane.f32.xlu1 %v3806_v6 }
0x17f9   :  { %v1489_v8 = vpop.f32.mrf.mxu1 }
0x17fa   :  { %v10221_v11 = vmul.f32 0.35355338, %v1489_v8 }
0x17fb   :  { %v8453_v13 = vpop.f32.mrf.mxu1 }
0x17fc   :  { %v3809_v15 = vsel %vm3805_vm6, %v10221_v11, -inf }
0x17fd   :  { %3810 = vmax.xlane.f32.xlu0 %v3809_v15 }
0x17ff   :  { %v1565_v17 = vpop.f32.mrf.mxu1 }
0x1800   :  { %v10225_v21 = vmul.f32 0.35355338, %v1565_v17 }
0x1801   :  { %v8458_v23 = vpop.f32.mrf.mxu1 }
0x1802   :  { %v3812_v25 = vsel %vm3805_vm6, %v10225_v21, -inf }
0x1803   :  { %3813 = vmax.xlane.f32.xlu0 %v3812_v25 }
0x1805   :  { %v1641_v27 = vpop.f32.mrf.mxu1 }
0x1806   :  { %v10229_v29 = vmul.f32 0.35355338, %v1641_v27 }
0x1807   :  { %v8463_v31 = vpop.f32.mrf.mxu1 }
0x1808   :  { %v3815_v16 = vsel %vm3805_vm6, %v10229_v29, -inf }
0x1809   :  { %3816 = vmax.xlane.f32.xlu1 %v3815_v16 }
0x180b   :  { %v10233_v49 = vpop.f32.mrf.mxu1 }
0x180d   :  { %v8468_v51 = vpop.f32.mrf.mxu1 }
0x180f   :  { %v10235_v52 = vpop.f32.mrf.mxu1 }
0x1811   :  { %v8473_v53 = vpop.f32.mrf.mxu1  ;;  %v10237_v60 = vpop.f32.mrf.mxu0 }
0x1813   :  { %v10239_v62 = vpop.f32.mrf.mxu1  ;;  %v8483_v35 = vpop.f32.mrf.mxu0 }
0x1815   :  { %v8478_v40 = vpop.f32.mrf.mxu1  ;;  %v10241_v42 = vpop.f32.mrf.mxu0 }
0x1817   :  { %v10243_v44 = vpop.f32.mrf.mxu1  ;;  %v8493_v36 = vpop.f32.mrf.mxu0 }
0x1819   :  { %4158 = vrot.lane.b32.xlu0 %v9865_v54, %s9049_s14  ;;  %v8488_v47 = vpop.f32.mrf.mxu1  ;;  %v10247_v4 = vpop.f32.mrf.mxu0 }
0x181a   :  { %4237 = vrot.lane.b32.xlu1 %v9872_v56, %s9049_s14 }
0x181b   :  { %v10251_v6 = vpop.f32.mrf.mxu1  ;;  %v8503_v8 = vpop.f32.mrf.mxu0 }
0x181d   :  { %4314 = vrot.lane.b32.xlu0 %v9867_v55, %s9049_s14  ;;  %v8498_v13 = vpop.f32.mrf.mxu1 }
0x181e   :  { %4391 = vrot.lane.b32.xlu1 %v9878_v57, %s9049_s14 }
0x1821   :  { %4468 = vrot.lane.b32.xlu0 %v9885_v63, %s9049_s14 }
0x1822   :  { %4545 = vrot.lane.b32.xlu1 %v9896_v3, %s9049_s14 }
0x1825   :  { %4622 = vrot.lane.b32.xlu0 %v9883_v61, %s9049_s14 }
0x1826   :  { %4699 = vrot.lane.b32.xlu1 %v9890_v0, %s9049_s14 }
0x1829   :  { %4776 = vrot.lane.b32.xlu0 %v9927_v5, %s9049_s14 }
0x182a   :  { %4853 = vrot.lane.b32.xlu1 %v9931_v7, %s9049_s14 }
0x182d   :  { %4930 = vrot.lane.b32.xlu0 %v9937_v38, %s9049_s14 }
0x182e   :  { %5007 = vrot.lane.b32.xlu1 %v9941_v58, %s9049_s14 }
0x1831   :  { %5084 = vrot.lane.b32.xlu0 %v9953_v18, %s9049_s14 }
0x1832   :  { %5315 = vrot.lane.b32.xlu1 %v9951_v14, %s9049_s14 }
0x1835   :  { %5238 = vrot.lane.b32.xlu0 %v9949_v12, %s9049_s14 }
0x1836   :  { %5469 = vrot.lane.b32.xlu1 %v9947_v10, %s9049_s14 }
0x1839   :  { %5392 = vrot.lane.b32.xlu0 %v9945_v9, %s9049_s14 }
0x183a   :  { %5623 = vrot.lane.b32.xlu1 %v9965_v24, %s9049_s14 }
0x183d   :  { %5546 = vrot.lane.b32.xlu0 %v9961_v22, %s9049_s14 }
0x183e   :  { %5700 = vrot.lane.b32.xlu1 %v9969_v28, %s9049_s14 }
0x1841   :  { %5931 = vrot.lane.b32.xlu0 %v9973_v30, %s9049_s14 }
0x1842   :  { %5854 = vrot.lane.b32.xlu1 %v9977_v32, %s9049_s14 }
0x1845   :  { %6085 = vrot.lane.b32.xlu0 %v9995_v39, %s9049_s14 }
0x1846   :  { %6008 = vrot.lane.b32.xlu1 %v9981_v34, %s9049_s14 }
0x1849   :  { %6239 = vrot.lane.b32.xlu0 %v10011_v41, %s9049_s14 }
0x184a   :  { %6162 = vrot.lane.b32.xlu1 %v10004_v26, %s9049_s14 }
0x184d   :  { %5777 = vrot.lane.b32.xlu0 %v9988_v37, %s9049_s14 }
0x184e   :  { %5161 = vrot.lane.b32.xlu1 %v9957_v20, %s9049_s14 }
0x1856   :  { %v10305_v54 = vpop.f32.mrf.mxu1 }
0x1858   :  { %v8508_v55 = vpop.f32.mrf.mxu1  ;;  %v10307_v56 = vpop.f32.mrf.mxu0 }
0x185a   :  { %v8513_v57 = vpop.f32.mrf.mxu0  ;;  %v10309_v61 = vpop.f32.mrf.mxu1 }
0x185c   :  { %v8518_v63 = vpop.f32.mrf.mxu1  ;;  %v10311_v0 = vpop.f32.mrf.mxu0 }
0x185e   :  { %v8523_v3 = vpop.f32.mrf.mxu0  ;;  %v10313_v5 = vpop.f32.mrf.mxu1 }
0x1860   :  { %v8528_v7 = vpop.f32.mrf.mxu1  ;;  %v10315_v38 = vpop.f32.mrf.mxu0 }
0x1862   :  { %v8533_v58 = vpop.f32.mrf.mxu0  ;;  %v10317_v9 = vpop.f32.mrf.mxu1 }
0x1864   :  { %v8538_v10 = vpop.f32.mrf.mxu1  ;;  %v10319_v12 = vpop.f32.mrf.mxu0 }
0x1866   :  { %v8543_v14 = vpop.f32.mrf.mxu0  ;;  %v10321_v18 = vpop.f32.mrf.mxu1 }
0x1868   :  { %v8548_v20 = vpop.f32.mrf.mxu1  ;;  %v10323_v22 = vpop.f32.mrf.mxu0 }
0x186a   :  { %v8553_v24 = vpop.f32.mrf.mxu0  ;;  %v10325_v28 = vpop.f32.mrf.mxu1 }
0x186c   :  { %v8558_v30 = vpop.f32.mrf.mxu1  ;;  %v10327_v32 = vpop.f32.mrf.mxu0 }
0x186e   :  { %v8563_v34 = vpop.f32.mrf.mxu0  ;;  %v10329_v37 = vpop.f32.mrf.mxu1 }
0x1870   :  { %v8568_v39 = vpop.f32.mrf.mxu1  ;;  %v10331_v26 = vpop.f32.mrf.mxu0 }
0x1872   :  { %v8573_v41 = vpop.f32.mrf.mxu0  ;;  %v10333_v15 = vpop.f32.mrf.mxu1 }
0x1874   :  { %v8578_v17 = vpop.f32.mrf.mxu1  ;;  %v10335_v23 = vpop.f32.mrf.mxu0 }
0x1875   :  { %v10369_v17 = vmul.f32 0.35355338, %v10239_v62 }
0x1876   :  { %v8583_v25 = vpop.f32.mrf.mxu0  ;;  %v10337_v27 = vpop.f32.mrf.mxu1 }
0x1877   :  { %v3824_v62 = vsel %vm3805_vm6, %v10369_v17, -inf }
0x1878   :  { %v8588_v31 = vpop.f32.mrf.mxu1  ;;  %v10339_v16 = vpop.f32.mrf.mxu0 }
0x187a   :  { %v8593_v51 = vpop.f32.mrf.mxu0  ;;  %v10341_v53 = vpop.f32.mrf.mxu1 }
0x187b   :  { %v10376_v51 = vmul.f32 0.35355338, %v10237_v60  ;;  %v10391_v60 = vmul.f32 0.35355338, %v10251_v6  ;;  %v10406_v6 = vmul.f32 0.35355338, %v10247_v4 }
0x187c   :  { %v8598_v35 = vpop.f32.mrf.mxu1  ;;  %v10343_v40 = vpop.f32.mrf.mxu0  ;;  %v10421_v4 = vmul.f32 0.35355338, %v10313_v5  ;;  %v10436_v5 = vmul.f32 0.35355338, %v10315_v38  ;;  %v10451_v38 = vmul.f32 0.35355338, %v10325_v28 }
0x187d   :  { %v10381_v35 = vmul.f32 0.35355338, %v10243_v44  ;;  %v10396_v44 = vmul.f32 0.35355338, %v10241_v42  ;;  %v10411_v42 = vmul.f32 0.35355338, %v10309_v61 }
0x187e   :  { %v8603_v36 = vpop.f32.mrf.mxu0  ;;  %v10426_v61 = vmul.f32 0.35355338, %v10311_v0  ;;  %v10441_v0 = vmul.f32 0.35355338, %v10321_v18  ;;  %v10456_v18 = vmul.f32 0.35355338, %v10323_v22 }
0x187f   :  { %v10386_v36 = vmul.f32 0.35355338, %v10235_v52  ;;  %v10401_v52 = vmul.f32 0.35355338, %v10305_v54  ;;  %v10416_v54 = vmul.f32 0.35355338, %v10307_v56 }
0x1880   :  { %v3808_v47 = vpop.xlane.xlu1 %3807  ;;  %v10431_v56 = vmul.f32 0.35355338, %v10317_v9  ;;  %v10446_v9 = vmul.f32 0.35355338, %v10319_v12  ;;  %v10461_v12 = vmul.f32 0.35355338, %v10329_v37 }
0x1881   :  { %v3902_v8 = vsub.f32 %v10217_v2, %v3808_v47  ;;  %v3827_v47 = vsel %vm3805_vm6, %v10376_v51, -inf  ;;  %v10466_v28 = vmul.f32 0.35355338, %v10327_v32  ;;  %v10471_v22 = vmul.f32 0.35355338, %v10333_v15 }
0x1882   :  { %v10476_v37 = vmul.f32 0.35355338, %v10331_v26  ;;  %v10481_v32 = vmul.f32 0.35355338, %v10337_v27  ;;  %v10486_v15 = vmul.f32 0.35355338, %v10335_v23 }
0x1883   :  { %v3934_v13 = vmul.f32 1.442695, %v3902_v8  ;;  %v3830_v8 = vsel %vm3805_vm6, %v10381_v35, -inf  ;;  %v10491_v26 = vmul.f32 0.35355338, %v10341_v53 }
0x1884   :  { %v10496_v27 = vmul.f32 0.35355338, %v10339_v16  ;;  %v10505_v53 = vmul.f32 0.35355338, %v10343_v40 }
0x1885   :  { %8903 = vpow2.f32 %v3934_v13  ;;  %v3821_v13 = vsel %vm3805_vm6, %v10386_v36, -inf }
0x1886   :  { %v3811_v55 = vpop.xlane.xlu0 %3810 }
0x1887   :  { %v3903_v57 = vsub.f32 %v10221_v11, %v3811_v55  ;;  %v3836_v55 = vsel %vm3805_vm6, %v10391_v60, -inf }
0x1889   :  { %v3936_v63 = vmul.f32 1.442695, %v3903_v57  ;;  %v3833_v57 = vsel %vm3805_vm6, %v10396_v44, -inf }
0x188b   :  { %8905 = vpow2.f32 %v3936_v63  ;;  %v3842_v63 = vsel %vm3805_vm6, %v10401_v52, -inf }
0x188c   :  { %v3814_v3 = vpop.xlane.xlu0 %3813 }
0x188d   :  { %v3904_v7 = vsub.f32 %v10225_v21, %v3814_v3  ;;  %v3839_v3 = vsel %vm3805_vm6, %v10406_v6, -inf }
0x188f   :  { %v3938_v58 = vmul.f32 1.442695, %v3904_v7  ;;  %v3848_v7 = vsel %vm3805_vm6, %v10411_v42, -inf }
0x1890   :  { %v4159_v10 = vpop.permute.xlu0 %4158 }
0x1891   :  { %8907 = vpow2.f32 %v3938_v58  ;;  %8605 = vmatpush3.msk.msra.mxu1 %vm4164_vm7, %v4159_v10  ;;  %v3845_v58 = vsel %vm3805_vm6, %v10416_v54, -inf  ;;  %v3854_v10 = vsel %vm3805_vm6, %v10421_v4, -inf }
0x1892   :  { %v10349_v14 = vpop.eup %8903  ;;  %v3817_v20 = vpop.xlane.xlu1 %3816  ;;  %8614 = vmatprep.subr.mxu1 %v11187_v1 }
0x1893   :  { %v3905_v2 = vsub.f32 %v10229_v29, %v3817_v20  ;;  %v3998_v11 = vsel %vm3805_vm6, %v10349_v14, 0.0  ;;  %v10364_v29 = vmul.f32 0.35355338, %v10233_v49  ;;  %v3851_v20 = vsel %vm3805_vm6, %v10426_v61, -inf }
0x1894   :  { %3999 = vadd.xlane.f32.xlu0 %v3998_v11  ;;  %v3857_v11 = vsel %vm3805_vm6, %v10436_v5, -inf }
0x1895   :  { %v3940_v24 = vmul.f32 1.442695, %v3905_v2  ;;  %v3818_v25 = vsel %vm3805_vm6, %v10364_v29, -inf  ;;  %v3860_v2 = vsel %vm3805_vm6, %v10431_v56, -inf }
0x1896   :  { %v4238_v30 = vpop.permute.xlu1 %4237 }
0x1897   :  { %8909 = vpow2.f32 %v3940_v24  ;;  %8610 = vmatpush3.msk.msra.mxu0 %vm4164_vm7, %v4238_v30  ;;  %v3866_v24 = vsel %vm3805_vm6, %v10441_v0, -inf  ;;  %v3863_v30 = vsel %vm3805_vm6, %v10446_v9, -inf }
0x1898   :  { %v10356_v21 = vpop.eup %8905  ;;  %8619 = vmatprep.subr.mxu0 %v11187_v1 }
0x1899   :  { %v4001_v34 = vsel %vm3805_vm6, %v10356_v21, 0.0 }
0x189a   :  { %4002 = vadd.xlane.f32.xlu1 %v4001_v34  ;;  %v3872_v34 = vsel %vm3805_vm6, %v10451_v38, -inf }
0x189e   :  { %v10361_v39 = vpop.eup %8907 }
0x189f   :  { %v4004_v41 = vsel %vm3805_vm6, %v10361_v39, 0.0 }
0x18a0   :  { %4005 = vadd.xlane.f32.xlu0 %v4004_v41  ;;  %v3869_v41 = vsel %vm3805_vm6, %v10456_v18, -inf }
0x18a4   :  { %v10373_v31 = vpop.eup %8909  ;;  %3819 = vmax.xlane.f32.xlu0 %v3818_v25  ;;  %v3878_v25 = vsel %vm3805_vm6, %v10461_v12, -inf }
0x18a5   :  { %v4007_v49 = vsel %vm3805_vm6, %v10373_v31, 0.0 }
0x18a6   :  { %4008 = vadd.xlane.f32.xlu1 %v4007_v49  ;;  %v3875_v49 = vsel %vm3805_vm6, %v10466_v28, -inf }
0x18a8   :  { %3825 = vmax.xlane.f32.xlu0 %v3824_v62  ;;  %v3884_v62 = vsel %vm3805_vm6, %v10471_v22, -inf }
0x18aa   :  { %3828 = vmax.xlane.f32.xlu1 %v3827_v47  ;;  %v4315_v47 = vpop.permute.xlu0 %4314 }
0x18ac   :  { %3831 = vmax.xlane.f32.xlu0 %v3830_v8  ;;  %v3881_v8 = vsel %vm3805_vm6, %v10476_v37, -inf }
0x18ae   :  { %3822 = vmax.xlane.f32.xlu1 %v3821_v13  ;;  %v3890_v13 = vsel %vm3805_vm6, %v10481_v32, -inf  ;;  %v10500_v23 = vpop.permute.xlu0 %4468 }
0x18b0   :  { %3837 = vmax.xlane.f32.xlu0 %v3836_v55  ;;  %v3887_v55 = vsel %vm3805_vm6, %v10486_v15, -inf }
0x18b2   :  { %3834 = vmax.xlane.f32.xlu1 %v3833_v57  ;;  %v4392_v57 = vpop.permute.xlu1 %4391  ;;  %v10509_v16 = vpop.permute.xlu0 %4622 }
0x18b4   :  { %3843 = vmax.xlane.f32.xlu0 %v3842_v63  ;;  %v3896_v63 = vsel %vm3805_vm6, %v10491_v26, -inf }
0x18b6   :  { %3840 = vmax.xlane.f32.xlu1 %v3839_v3  ;;  %v3893_v3 = vsel %vm3805_vm6, %v10496_v27, -inf }
0x18b8   :  { %3849 = vmax.xlane.f32.xlu0 %v3848_v7  ;;  %v10511_v7 = vpop.permute.xlu1 %4545 }
0x18ba   :  { %3846 = vmax.xlane.f32.xlu1 %v3845_v58  ;;  %v3899_v58 = vsel %vm3805_vm6, %v10505_v53, -inf }
0x18bc   :  { %3855 = vmax.xlane.f32.xlu0 %v3854_v10  ;;  %v10515_v10 = vpop.permute.xlu0 %4776 }
0x18be   :  { %3852 = vmax.xlane.f32.xlu1 %v3851_v20  ;;  %v10517_v20 = vpop.permute.xlu1 %4699 }
0x18c0   :  { %3861 = vmax.xlane.f32.xlu0 %v3860_v2  ;;  %v10519_v2 = vpop.permute.xlu0 %4930 }
0x18c2   :  { %3858 = vmax.xlane.f32.xlu1 %v3857_v11  ;;  %v10521_v40 = vpop.permute.xlu1 %4853 }
0x18c4   :  { %3867 = vmax.xlane.f32.xlu0 %v3866_v24  ;;  %v10525_v11 = vpop.permute.xlu0 %5084 }
0x18c6   :  { %3864 = vmax.xlane.f32.xlu1 %v3863_v30  ;;  %v10527_v24 = vpop.permute.xlu1 %5007 }
0x18c8   :  { %3873 = vmax.xlane.f32.xlu0 %v3872_v34  ;;  %v10531_v30 = vpop.permute.xlu0 %5238 }
0x18ca   :  { %3870 = vmax.xlane.f32.xlu1 %v3869_v41  ;;  %v10533_v34 = vpop.permute.xlu1 %5315 }
0x18cc   :  { %3879 = vmax.xlane.f32.xlu0 %v3878_v25  ;;  %v10535_v41 = vpop.permute.xlu0 %5392 }
0x18ce   :  { %3876 = vmax.xlane.f32.xlu1 %v3875_v49  ;;  %v10537_v25 = vpop.permute.xlu1 %5469 }
0x18d0   :  { %3885 = vmax.xlane.f32.xlu0 %v3884_v62  ;;  %v10539_v49 = vpop.permute.xlu0 %5546 }
0x18d2   :  { %3882 = vmax.xlane.f32.xlu1 %v3881_v8  ;;  %v10541_v62 = vpop.permute.xlu1 %5623 }
0x18d4   :  { %3891 = vmax.xlane.f32.xlu0 %v3890_v13 }
0x18d6   :  { %3888 = vmax.xlane.f32.xlu1 %v3887_v55  ;;  %v10545_v8 = vpop.permute.xlu1 %5700 }
0x18d8   :  { %3897 = vmax.xlane.f32.xlu0 %v3896_v63 }
0x18da   :  { %3894 = vmax.xlane.f32.xlu1 %v3893_v3  ;;  %v10549_v55 = vpop.permute.xlu1 %5854 }
0x18de   :  { %3900 = vmax.xlane.f32.xlu1 %v3899_v58  ;;  %v10553_v63 = vpop.permute.xlu1 %6008 }
0x18df   :  { %11200 = vst [vmem:[#allocation10_spill] sm:$0xff] %v10553_v63  ;;  %v11202_v63 = vmov 0.0  }
0x18e2   :  { %v10557_v58 = vpop.permute.xlu1 %6162 }
0x18e3   :  { %11201 = vst [vmem:[#allocation11_spill] sm:$0xff] %v10557_v58 }
0x18e6   :  { %v10559_v48 = vpop.permute.xlu1 %5161 }
0x18ee   :  { %6393 = vrot.lane.b32.xlu0 %v10025_v43, %s9049_s14  ;;  %v10543_v43 = vpop.permute.xlu0 %5931 }
0x18ef   :  { %6316 = vrot.lane.b32.xlu1 %v10020_v59, %s9049_s14  ;;  %11197 = vst [vmem:[#allocation7_spill] sm:$0xff] %v10543_v43 }
0x18f2   :  { %v10547_v13 = vpop.permute.xlu0 %6085 }
0x18f3   :  { %11198 = vst [vmem:[#allocation8_spill] sm:$0xff] %v10547_v13 }
0x18f6   :  { %v10551_v59 = vpop.permute.xlu0 %6239 }
0x18f7   :  { %11199 = vst [vmem:[#allocation9_spill] sm:$0xff] %v10551_v59 }
0x18fa   :  { %v10555_v3 = vpop.permute.xlu0 %5777 }
0x191d   :  { %v4000_v1 = vpop.xlane.xlu0 %3999 }
0x191e   :  { %8911 = vrcp.f32 %v4000_v1 }
0x1923   :  { %v4003_v50 = vpop.xlane.xlu1 %4002 }
0x1924   :  { %8913 = vrcp.f32 %v4003_v50 }
0x1929   :  { %v4006_v19 = vpop.xlane.xlu0 %4005 }
0x192a   :  { %8915 = vrcp.f32 %v4006_v19 }
0x192b   :  { %v8912_v33 = vpop.eup %8911 }
0x192c   :  { %v4126_v13 = vmul.f32 %v8912_v33, %v10349_v14 }
0x192d   :  { %v3820_v43 = vpop.xlane.xlu0 %3819 }
0x192e   :  { %v3906_v59 = vsub.f32 %v10364_v29, %v3820_v43  ;;  %8607 = vmatmul.mubr.msk.f32.vlgmr.msra.gmra.mxu1 %vm4160_vm8, %v4126_v13 }
0x192f   :  { %8615 = vmatpush3.msk.msra.mxu1 %vm4164_vm7, %v4315_v47  ;;  %v4009_v58 = vpop.xlane.xlu1 %4008  ;;  %8616 = vmatprep.mubr.msk.f32.mxu1 %vm9048_vm2, %v11202_v63 }
0x1930   :  { %v3942_v1 = vmul.f32 1.442695, %v3906_v59  ;;  %8917 = vrcp.f32 %v4009_v58  ;;  %8624 = vmatprep.subr.mxu1 %v11202_v63 }
0x1931   :  { %v8914_v19 = vpop.eup %8913  ;;  %v3826_v50 = vpop.xlane.xlu0 %3825 }
0x1932   :  { %8919 = vpow2.f32 %v3942_v1  ;;  %v3908_v33 = vsub.f32 %v10369_v17, %v3826_v50  ;;  %v4127_v14 = vmul.f32 %v8914_v19, %v10356_v21 }
0x1933   :  { %v3829_v29 = vpop.xlane.xlu1 %3828 }
0x1934   :  { %v3946_v43 = vmul.f32 1.442695, %v3908_v33  ;;  %v3909_v13 = vsub.f32 %v10376_v51, %v3829_v29  ;;  %8612 = vmatmul.mubr.msk.f32.vlgmr.msra.gmra.mxu0 %vm4160_vm8, %v4127_v14 }
0x1935   :  { %8620 = vmatpush3.msk.msra.mxu0 %vm4164_vm7, %v4392_v57  ;;  %v3832_v47 = vpop.xlane.xlu0 %3831  ;;  %8621 = vmatprep.mubr.msk.f32.mxu0 %vm9048_vm2, %v11202_v63 }
0x1936   :  { %8921 = vpow2.f32 %v3946_v43  ;;  %v3948_v59 = vmul.f32 1.442695, %v3909_v13  ;;  %v3910_v58 = vsub.f32 %v10381_v35, %v3832_v47  ;;  %8629 = vmatprep.subr.mxu0 %v11202_v63 }
0x1937   :  { %v8916_v17 = vpop.eup %8915  ;;  %v3823_v21 = vpop.xlane.xlu1 %3822 }
0x1938   :  { %8923 = vpow2.f32 %v3948_v59  ;;  %v3950_v1 = vmul.f32 1.442695, %v3910_v58  ;;  %v3907_v51 = vsub.f32 %v10386_v36, %v3823_v21  ;;  %v4128_v19 = vmul.f32 %v8916_v17, %v10361_v39 }
0x1939   :  { %v3838_v50 = vpop.xlane.xlu0 %3837 }
0x193a   :  { %8925 = vpow2.f32 %v3950_v1  ;;  %v3944_v57 = vmul.f32 1.442695, %v3907_v51  ;;  %v3912_v33 = vsub.f32 %v10391_v60, %v3838_v50  ;;  %8617 = vmatmul.mubr.msk.f32.vlgmr.msra.gmra.mxu1 %vm4160_vm8, %v4128_v19 }
0x193b   :  { %8625 = vmatpush3.msk.msra.mxu1 %vm4164_vm7, %v10500_v23  ;;  %v3835_v35 = vpop.xlane.xlu1 %3834  ;;  %8626 = vmatprep.mubr.msk.f32.mxu1 %vm9048_vm2, %v11202_v63 }
0x193c   :  { %8927 = vpow2.f32 %v3944_v57  ;;  %v3954_v14 = vmul.f32 1.442695, %v3912_v33  ;;  %v3911_v36 = vsub.f32 %v10396_v44, %v3835_v35  ;;  %8634 = vmatprep.subr.mxu1 %v11202_v63 }
0x193d   :  { %v8918_v39 = vpop.eup %8917  ;;  %v3844_v29 = vpop.xlane.xlu0 %3843 }
0x193e   :  { %8929 = vpow2.f32 %v3954_v14  ;;  %v3952_v43 = vmul.f32 1.442695, %v3911_v36  ;;  %v3914_v60 = vsub.f32 %v10401_v52, %v3844_v29  ;;  %v4129_v13 = vmul.f32 %v8918_v39, %v10373_v31 }
0x193f   :  { %v10589_v47 = vpop.eup %8919  ;;  %v3841_v23 = vpop.xlane.xlu1 %3840 }
0x1940   :  { %8931 = vpow2.f32 %v3952_v43  ;;  %v3958_v59 = vmul.f32 1.442695, %v3914_v60  ;;  %v3913_v58 = vsub.f32 %v10406_v6, %v3841_v23  ;;  %8622 = vmatmul.mubr.msk.f32.vlgmr.msra.gmra.mxu0 %vm4160_vm8, %v4129_v13  ;;  %v4010_v44 = vsel %vm3805_vm6, %v10589_v47, 0.0 }
0x1941   :  { %8630 = vmatpush3.msk.msra.mxu0 %vm4164_vm7, %v10511_v7  ;;  %4011 = vadd.xlane.f32.xlu0 %v4010_v44  ;;  %v3850_v17 = vpop.xlane.xlu0 %3849 }
0x1942   :  { %8933 = vpow2.f32 %v3958_v59  ;;  %v3956_v52 = vmul.f32 1.442695, %v3913_v58  ;;  %v3916_v31 = vsub.f32 %v10411_v42, %v3850_v17  ;;  %8631 = vmatprep.mubr.msk.f32.mxu0 %vm9048_vm2, %v11202_v63  ;;  %8639 = vmatprep.subr.mxu0 %v11202_v63 }
0x1943   :  { %v10601_v6 = vpop.eup %8921  ;;  %v3847_v21 = vpop.xlane.xlu1 %3846 }
0x1944   :  { %8935 = vpow2.f32 %v3956_v52  ;;  %v3915_v1 = vsub.f32 %v10416_v54, %v3847_v21  ;;  %v4016_v7 = vsel %vm3805_vm6, %v10601_v6, 0.0  ;;  %v3962_v19 = vmul.f32 1.442695, %v3916_v31 }
0x1945   :  { %v10606_v51 = vpop.eup %8923  ;;  %4017 = vadd.xlane.f32.xlu0 %v4016_v7  ;;  %v3856_v50 = vpop.xlane.xlu0 %3855 }
0x1946   :  { %v3960_v42 = vmul.f32 1.442695, %v3915_v1  ;;  %v3918_v57 = vsub.f32 %v10421_v4, %v3856_v50  ;;  %v4019_v33 = vsel %vm3805_vm6, %v10606_v51, 0.0 }
0x1947   :  { %v10611_v35 = vpop.eup %8925  ;;  %4020 = vadd.xlane.f32.xlu1 %v4019_v33  ;;  %v3853_v14 = vpop.xlane.xlu1 %3852 }
0x1948   :  { %8937 = vpow2.f32 %v3960_v42  ;;  %v3917_v54 = vsub.f32 %v10426_v61, %v3853_v14  ;;  %v4022_v36 = vsel %vm3805_vm6, %v10611_v35, 0.0  ;;  %v3966_v29 = vmul.f32 1.442695, %v3918_v57 }
0x1949   :  { %v10616_v39 = vpop.eup %8927  ;;  %8939 = vpow2.f32 %v3962_v19  ;;  %4023 = vadd.xlane.f32.xlu0 %v4022_v36  ;;  %v3862_v43 = vpop.xlane.xlu0 %3861 }
0x194a   :  { %v3964_v4 = vmul.f32 1.442695, %v3917_v54  ;;  %v3920_v60 = vsub.f32 %v10431_v56, %v3862_v43  ;;  %v4013_v13 = vsel %vm3805_vm6, %v10616_v39, 0.0 }
0x194b   :  { %v10621_v23 = vpop.eup %8929  ;;  %4014 = vadd.xlane.f32.xlu1 %v4013_v13  ;;  %v3859_v59 = vpop.xlane.xlu1 %3858 }
0x194c   :  { %8941 = vpow2.f32 %v3964_v4  ;;  %v3919_v61 = vsub.f32 %v10436_v5, %v3859_v59  ;;  %v4028_v58 = vsel %vm3805_vm6, %v10621_v23, 0.0  ;;  %v3970_v17 = vmul.f32 1.442695, %v3920_v60 }
0x194d   :  { %v10626_v44 = vpop.eup %8931  ;;  %8943 = vpow2.f32 %v3966_v29  ;;  %4029 = vadd.xlane.f32.xlu0 %v4028_v58  ;;  %v3868_v52 = vpop.xlane.xlu0 %3867 }
0x194e   :  { %v3968_v56 = vmul.f32 1.442695, %v3919_v61  ;;  %v3922_v31 = vsub.f32 %v10441_v0, %v3868_v52  ;;  %v4025_v21 = vsel %vm3805_vm6, %v10626_v44, 0.0 }
0x194f   :  { %v10631_v1 = vpop.eup %8933  ;;  %4026 = vadd.xlane.f32.xlu1 %v4025_v21  ;;  %v3865_v7 = vpop.xlane.xlu1 %3864 }
0x1950   :  { %8945 = vpow2.f32 %v3968_v56  ;;  %v3921_v5 = vsub.f32 %v10446_v9, %v3865_v7  ;;  %v4034_v19 = vsel %vm3805_vm6, %v10631_v1, 0.0  ;;  %v3974_v42 = vmul.f32 1.442695, %v3922_v31 }
0x1951   :  { %v10636_v50 = vpop.eup %8935  ;;  %8947 = vpow2.f32 %v3970_v17  ;;  %4035 = vadd.xlane.f32.xlu0 %v4034_v19  ;;  %v3874_v57 = vpop.xlane.xlu0 %3873 }
0x1952   :  { %v3972_v0 = vmul.f32 1.442695, %v3921_v5  ;;  %v3924_v33 = vsub.f32 %v10451_v38, %v3874_v57  ;;  %v4031_v14 = vsel %vm3805_vm6, %v10636_v50, 0.0 }
0x1953   :  { %4032 = vadd.xlane.f32.xlu1 %v4031_v14  ;;  %v3871_v54 = vpop.xlane.xlu1 %3870 }
0x1954   :  { %8949 = vpow2.f32 %v3972_v0  ;;  %v3923_v9 = vsub.f32 %v10456_v18, %v3871_v54  ;;  %v3978_v29 = vmul.f32 1.442695, %v3924_v33 }
0x1955   :  { %v10642_v36 = vpop.eup %8937  ;;  %8951 = vpow2.f32 %v3974_v42  ;;  %v3880_v43 = vpop.xlane.xlu0 %3879 }
0x1956   :  { %v10644_v4 = vpop.eup %8939  ;;  %v3976_v60 = vmul.f32 1.442695, %v3923_v9  ;;  %v3926_v13 = vsub.f32 %v10461_v12, %v3880_v43  ;;  %v4037_v38 = vsel %vm3805_vm6, %v10642_v36, 0.0 }
0x1957   :  { %4038 = vadd.xlane.f32.xlu1 %v4037_v38  ;;  %v3877_v59 = vpop.xlane.xlu1 %3876  ;;  %v4040_v17 = vsel %vm3805_vm6, %v10644_v4, 0.0 }
0x1958   :  { %8953 = vpow2.f32 %v3976_v60  ;;  %v3925_v61 = vsub.f32 %v10466_v28, %v3877_v59  ;;  %v3982_v56 = vmul.f32 1.442695, %v3926_v13 }
0x1959   :  { %v10650_v58 = vpop.eup %8941  ;;  %8955 = vpow2.f32 %v3978_v29  ;;  %v3886_v18 = vpop.xlane.xlu0 %3885 }
0x195a   :  { %v10654_v52 = vpop.eup %8943  ;;  %v3980_v31 = vmul.f32 1.442695, %v3925_v61  ;;  %v3928_v12 = vsub.f32 %v10471_v22, %v3886_v18  ;;  %v4043_v21 = vsel %vm3805_vm6, %v10650_v58, 0.0 }
0x195b   :  { %v3883_v7 = vpop.xlane.xlu1 %3882  ;;  %4044 = vadd.xlane.f32.xlu0 %v4043_v21  ;;  %4041 = vadd.xlane.f32.xlu1 %v4040_v17  ;;  %v4046_v57 = vsel %vm3805_vm6, %v10654_v52, 0.0 }
0x195c   :  { %8957 = vpow2.f32 %v3980_v31  ;;  %v3927_v28 = vsub.f32 %v10476_v37, %v3883_v7  ;;  %v3986_v19 = vmul.f32 1.442695, %v3928_v12 }
0x195d   :  { %v10660_v5 = vpop.eup %8945  ;;  %v3892_v42 = vpop.xlane.xlu0 %3891  ;;  %8959 = vpow2.f32 %v3982_v56 }
0x195e   :  { %v10664_v0 = vpop.eup %8947  ;;  %v3984_v22 = vmul.f32 1.442695, %v3927_v28  ;;  %v3930_v33 = vsub.f32 %v10481_v32, %v3892_v42  ;;  %v4049_v14 = vsel %vm3805_vm6, %v10660_v5, 0.0 }
0x195f   :  { %v3889_v54 = vpop.xlane.xlu1 %3888  ;;  %4050 = vadd.xlane.f32.xlu0 %v4049_v14  ;;  %4047 = vadd.xlane.f32.xlu1 %v4046_v57  ;;  %v4052_v43 = vsel %vm3805_vm6, %v10664_v0, 0.0 }
0x1960   :  { %8961 = vpow2.f32 %v3984_v22  ;;  %v3929_v37 = vsub.f32 %v10486_v15, %v3889_v54  ;;  %v3990_v13 = vmul.f32 1.442695, %v3930_v33 }
0x1961   :  { %v10670_v9 = vpop.eup %8949  ;;  %8963 = vpow2.f32 %v3986_v19  ;;  %v3898_v29 = vpop.xlane.xlu0 %3897 }
0x1962   :  { %v10674_v60 = vpop.eup %8951  ;;  %v3988_v32 = vmul.f32 1.442695, %v3929_v37  ;;  %v3932_v38 = vsub.f32 %v10491_v26, %v3898_v29  ;;  %v4055_v59 = vsel %vm3805_vm6, %v10670_v9, 0.0 }
0x1963   :  { %v3895_v61 = vpop.xlane.xlu1 %3894  ;;  %4056 = vadd.xlane.f32.xlu0 %v4055_v59  ;;  %4053 = vadd.xlane.f32.xlu1 %v4052_v43  ;;  %v4058_v17 = vsel %vm3805_vm6, %v10674_v60, 0.0 }
0x1964   :  { %8965 = vpow2.f32 %v3988_v32  ;;  %v3931_v15 = vsub.f32 %v10496_v27, %v3895_v61  ;;  %v3994_v31 = vmul.f32 1.442695, %v3932_v38 }
0x1965   :  { %v10680_v18 = vpop.eup %8953  ;;  %8967 = vpow2.f32 %v3990_v13 }
0x1966   :  { %v10684_v56 = vpop.eup %8955  ;;  %v3992_v12 = vmul.f32 1.442695, %v3931_v15  ;;  %v4061_v26 = vsel %vm3805_vm6, %v10680_v18, 0.0 }
0x1967   :  { %v3901_v21 = vpop.xlane.xlu1 %3900  ;;  %4062 = vadd.xlane.f32.xlu0 %v4061_v26  ;;  %4059 = vadd.xlane.f32.xlu1 %v4058_v17  ;;  %v4064_v42 = vsel %vm3805_vm6, %v10684_v56, 0.0 }
0x1968   :  { %8969 = vpow2.f32 %v3992_v12  ;;  %v3933_v7 = vsub.f32 %v10505_v53, %v3901_v21 }
0x1969   :  { %v10689_v27 = vpop.eup %8957  ;;  %8971 = vpow2.f32 %v3994_v31  ;;  %v10731_v31 = vpop.permute.xlu0 %6393 }
0x196a   :  { %v3996_v28 = vmul.f32 1.442695, %v3933_v7  ;;  %v4067_v19 = vsel %vm3805_vm6, %v10689_v27, 0.0  ;;  %v10695_v57 = vpop.eup %8959 }
0x196b   :  { %4068 = vadd.xlane.f32.xlu0 %v4067_v19  ;;  %4065 = vadd.xlane.f32.xlu1 %v4064_v42  ;;  %v4070_v14 = vsel %vm3805_vm6, %v10695_v57, 0.0  ;;  %v10733_v26 = vpop.permute.xlu1 %6316 }
0x196c   :  { %8973 = vpow2.f32 %v3996_v28 }
0x196d   :  { %v10697_v22 = vpop.eup %8961 }
0x196e   :  { %v10699_v33 = vpop.eup %8963  ;;  %v4073_v53 = vsel %vm3805_vm6, %v10697_v22, 0.0 }
0x196f   :  { %4074 = vadd.xlane.f32.xlu0 %v4073_v53  ;;  %4071 = vadd.xlane.f32.xlu1 %v4070_v14  ;;  %v4076_v29 = vsel %vm3805_vm6, %v10699_v33, 0.0 }
0x1971   :  { %v10705_v54 = vpop.eup %8965 }
0x1972   :  { %v4079_v37 = vsel %vm3805_vm6, %v10705_v54, 0.0  ;;  %v10711_v43 = vpop.eup %8967 }
0x1973   :  { %4080 = vadd.xlane.f32.xlu0 %v4079_v37  ;;  %4077 = vadd.xlane.f32.xlu1 %v4076_v29  ;;  %v4082_v38 = vsel %vm3805_vm6, %v10711_v43, 0.0 }
0x1975   :  { %v10713_v13 = vpop.eup %8969 }
0x1976   :  { %v4085_v32 = vsel %vm3805_vm6, %v10713_v13, 0.0  ;;  %v10719_v59 = vpop.eup %8971 }
0x1977   :  { %4086 = vadd.xlane.f32.xlu0 %v4085_v32  ;;  %4083 = vadd.xlane.f32.xlu1 %v4082_v38  ;;  %v4088_v17 = vsel %vm3805_vm6, %v10719_v59, 0.0 }
0x1979   :  { %v10721_v61 = vpop.eup %8973 }
0x197a   :  { %v4091_v15 = vsel %vm3805_vm6, %v10721_v61, 0.0 }
0x197b   :  { %4092 = vadd.xlane.f32.xlu0 %v4091_v15  ;;  %4089 = vadd.xlane.f32.xlu1 %v4088_v17 }
0x198c   :  { %6470 = vrot.lane.b32.xlu1 %v10036_v45, %s9049_s14 }
0x1991   :  { %6547 = vrot.lane.b32.xlu0 %v10043_v46, %s9049_s14  ;;  %s9055_s14 = smov 8  }
0x19ca   :  { %v4012_v12 = vpop.xlane.xlu0 %4011 }
0x19cb   :  { %8975 = vrcp.f32 %v4012_v12 }
0x19ce   :  { %v4018_v21 = vpop.xlane.xlu0 %4017 }
0x19cf   :  { %8977 = vrcp.f32 %v4018_v21 }
0x19d0   :  { %v4021_v7 = vpop.xlane.xlu1 %4020 }
0x19d2   :  { %v4024_v28 = vpop.xlane.xlu0 %4023 }
0x19d3   :  { %8979 = vrcp.f32 %v4024_v28 }
0x19d4   :  { %v4015_v19 = vpop.xlane.xlu1 %4014 }
0x19d5   :  { %8981 = vrcp.f32 %v4015_v19 }
0x19d6   :  { %8983 = vrcp.f32 %v4021_v7  ;;  %v4030_v42 = vpop.xlane.xlu0 %4029 }
0x19d7   :  { %8985 = vrcp.f32 %v4030_v42 }
0x19d8   :  { %v8976_v45 = vpop.eup %8975  ;;  %v4027_v53 = vpop.xlane.xlu1 %4026 }
0x19d9   :  { %v4130_v46 = vmul.f32 %v8976_v45, %v10589_v47  ;;  %8987 = vrcp.f32 %v4027_v53 }
0x19da   :  { %v4036_v14 = vpop.xlane.xlu0 %4035 }
0x19db   :  { %8989 = vrcp.f32 %v4036_v14  ;;  %8627 = vmatmul.mubr.msk.f32.vlgmr.msra.gmra.mxu1 %vm4160_vm8, %v4130_v46 }
0x19dc   :  { %v8978_v37 = vpop.eup %8977  ;;  %8635 = vmatpush3.msk.msra.mxu1 %vm4164_vm7, %v10509_v16  ;;  %v4033_v29 = vpop.xlane.xlu1 %4032  ;;  %8636 = vmatprep.mubr.msk.f32.mxu1 %vm9048_vm2, %v11202_v63 }
0x19dd   :  { %8644 = vmatprep.subr.mxu1 %v11202_v63  ;;  %v4132_v32 = vmul.f32 %v8978_v37, %v10601_v6  ;;  %8991 = vrcp.f32 %v4033_v29 }
0x19df   :  { %8637 = vmatmul.mubr.msk.f32.vlgmr.msra.gmra.mxu1 %vm4160_vm8, %v4132_v32 }
0x19e0   :  { %v8980_v47 = vpop.eup %8979  ;;  %8645 = vmatpush3.msk.msra.mxu1 %vm4164_vm7, %v10515_v10  ;;  %v4039_v38 = vpop.xlane.xlu1 %4038  ;;  %8646 = vmatprep.mubr.msk.f32.mxu1 %vm9048_vm2, %v11202_v63 }
0x19e1   :  { %8654 = vmatprep.subr.mxu1 %v11202_v63  ;;  %v4134_v16 = vmul.f32 %v8980_v47, %v10611_v35  ;;  %8993 = vrcp.f32 %v4039_v38 }
0x19e2   :  { %v8982_v15 = vpop.eup %8981 }
0x19e3   :  { %v8984_v17 = vpop.eup %8983  ;;  %8647 = vmatmul.mubr.msk.f32.vlgmr.msra.gmra.mxu1 %vm4160_vm8, %v4134_v16  ;;  %v4131_v6 = vmul.f32 %v8982_v15, %v10616_v39 }
0x19e4   :  { %v8986_v12 = vpop.eup %8985  ;;  %8655 = vmatpush3.msk.msra.mxu1 %vm4164_vm7, %v10519_v2  ;;  %v4042_v10 = vpop.xlane.xlu1 %4041  ;;  %8656 = vmatprep.mubr.msk.f32.mxu1 %vm9048_vm2, %v11202_v63  ;;  %v4133_v2 = vmul.f32 %v8984_v17, %v10606_v51 }
0x19e5   :  { %v4045_v21 = vpop.xlane.xlu0 %4044  ;;  %8995 = vrcp.f32 %v4042_v10  ;;  %8632 = vmatmul.mubr.msk.f32.vlgmr.msra.gmra.mxu0 %vm4160_vm8, %v4131_v6  ;;  %8664 = vmatprep.subr.mxu1 %v11202_v63  ;;  %v4136_v35 = vmul.f32 %v8986_v12, %v10621_v23 }
0x19e6   :  { %8640 = vmatpush3.msk.msra.mxu0 %vm4164_vm7, %v10517_v20  ;;  %8641 = vmatprep.mubr.msk.f32.mxu0 %vm9048_vm2, %v11202_v63  ;;  %v8988_v39 = vpop.eup %8987  ;;  %8997 = vrcp.f32 %v4045_v21 }
0x19e7   :  { %8657 = vmatmul.mubr.msk.f32.vlgmr.msra.gmra.mxu1 %vm4160_vm8, %v4136_v35  ;;  %8649 = vmatprep.subr.mxu0 %v11202_v63 }
0x19e8   :  { %v8990_v7 = vpop.eup %8989  ;;  %8665 = vmatpush3.msk.msra.mxu1 %vm4164_vm7, %v10525_v11  ;;  %v4048_v28 = vpop.xlane.xlu1 %4047  ;;  %8666 = vmatprep.mubr.msk.f32.mxu1 %vm9048_vm2, %v11202_v63  ;;  %v4135_v11 = vmul.f32 %v8988_v39, %v10626_v44 }
0x19e9   :  { %v4051_v23 = vpop.xlane.xlu0 %4050  ;;  %8999 = vrcp.f32 %v4048_v28  ;;  %8642 = vmatmul.mubr.msk.f32.vlgmr.msra.gmra.mxu0 %vm4160_vm8, %v4133_v2  ;;  %8674 = vmatprep.subr.mxu1 %v11202_v63  ;;  %v4138_v20 = vmul.f32 %v8990_v7, %v10631_v1 }
0x19ea   :  { %8650 = vmatpush3.msk.msra.mxu0 %vm4164_vm7, %v10521_v40  ;;  %8651 = vmatprep.mubr.msk.f32.mxu0 %vm9048_vm2, %v11202_v63  ;;  %9001 = vrcp.f32 %v4051_v23  ;;  %v8992_v51 = vpop.eup %8991 }
0x19eb   :  { %8667 = vmatmul.mubr.msk.f32.vlgmr.msra.gmra.mxu1 %vm4160_vm8, %v4138_v20  ;;  %8659 = vmatprep.subr.mxu0 %v11202_v63  ;;  %v11203_v20 = vld [vmem:[#allocation7_spill] sm:$0xff] }
0x19ec   :  { %8675 = vmatpush3.msk.msra.mxu1 %vm4164_vm7, %v10531_v30  ;;  %v4054_v19 = vpop.xlane.xlu1 %4053  ;;  %8676 = vmatprep.mubr.msk.f32.mxu1 %vm9048_vm2, %v11202_v63  ;;  %v4137_v30 = vmul.f32 %v8992_v51, %v10636_v50 }
0x19ed   :  { %v4057_v42 = vpop.xlane.xlu0 %4056  ;;  %9003 = vrcp.f32 %v4054_v19  ;;  %8652 = vmatmul.mubr.msk.f32.vlgmr.msra.gmra.mxu0 %vm4160_vm8, %v4135_v11  ;;  %8684 = vmatprep.subr.mxu1 %v11202_v63  ;;  %v11204_v11 = vld [vmem:[#allocation10_spill] sm:$0xff] }
0x19ee   :  { %8660 = vmatpush3.msk.msra.mxu0 %vm4164_vm7, %v10527_v24  ;;  %v10788_v40 = vpop.f32.mrf.mxu1  ;;  %8661 = vmatprep.mubr.msk.f32.mxu0 %vm9048_vm2, %v11202_v63  ;;  %9005 = vrcp.f32 %v4057_v42  ;;  %v8994_v44 = vpop.eup %8993  ;;  %v11205_v42 = vld [vmem:[#allocation8_spill] sm:$0xff] }
0x19ef   :  { %8669 = vmatprep.subr.mxu0 %v11202_v63  ;;  %v4139_v24 = vmul.f32 %v8994_v44, %v10642_v36 }
0x19f0   :  { %v8608_v1 = vpop.f32.mrf.mxu1  ;;  %v4060_v45 = vpop.xlane.xlu1 %4059 }
0x19f1   :  { %9007 = vrcp.f32 %v4060_v45  ;;  %v4063_v53 = vpop.xlane.xlu0 %4062  ;;  %8662 = vmatmul.mubr.msk.f32.vlgmr.msra.gmra.mxu0 %vm4160_vm8, %v4137_v30  ;;  %v11206_v30 = vld [vmem:[#allocation11_spill] sm:$0xff]  ;;  %v11207_v45 = vld [vmem:[#allocation9_spill] sm:$0xff] }
0x19f2   :  { %v8996_v46 = vpop.eup %8995  ;;  %8670 = vmatpush3.msk.msra.mxu0 %vm4164_vm7, %v10559_v48  ;;  %8671 = vmatprep.mubr.msk.f32.mxu0 %vm9048_vm2, %v11202_v63  ;;  %9009 = vrcp.f32 %v4063_v53 }
0x19f3   :  { %8679 = vmatprep.subr.mxu0 %v11202_v63  ;;  %v4140_v50 = vmul.f32 %v8996_v46, %v10644_v4  ;;  %v8998_v14 = vpop.eup %8997 }
0x19f4   :  { %v10802_v37 = vpop.f32.mrf.mxu0  ;;  %v4066_v29 = vpop.xlane.xlu1 %4065  ;;  %v4141_v4 = vmul.f32 %v8998_v14, %v10650_v58 }
0x19f5   :  { %v6632_v32 = vcombine.low %v10788_v40, %v10802_v37  ;;  %9011 = vrcp.f32 %v4066_v29  ;;  %v4069_v47 = vpop.xlane.xlu0 %4068  ;;  %8672 = vmatmul.mubr.msk.f32.vlgmr.msra.gmra.mxu0 %vm4160_vm8, %v4139_v24  ;;  %8677 = vmatmul.mubr.msk.f32.vlgmr.msra.gmra.mxu1 %vm4160_vm8, %v4140_v50 }
0x19f6   :  { %v9000_v48 = vpop.eup %8999  ;;  %8680 = vmatpush3.msk.msra.mxu0 %vm4164_vm7, %v10533_v34  ;;  %8685 = vmatpush3.msk.msra.mxu1 %vm4164_vm7, %v10535_v41  ;;  %v8613_v36 = vpop.f32.mrf.mxu0  ;;  %9013 = vrcp.f32 %v4069_v47 }
0x19f7   :  { %8681 = vmatprep.mubr.msk.f32.mxu0 %vm9048_vm2, %v11202_v63  ;;  %8689 = vmatprep.subr.mxu0 %v11202_v63  ;;  %v4142_v38 = vmul.f32 %v9000_v48, %v10654_v52  ;;  %v9002_v16 = vpop.eup %9001 }
0x19f8   :  { %v4072_v15 = vpop.xlane.xlu1 %4071  ;;  %8686 = vmatprep.mubr.msk.f32.mxu1 %vm9048_vm2, %v11202_v63  ;;  %8694 = vmatprep.subr.mxu1 %v11202_v63  ;;  %v4143_v52 = vmul.f32 %v9002_v16, %v10660_v5 }
0x19f9   :  { %9015 = vrcp.f32 %v4072_v15  ;;  %v4075_v34 = vpop.xlane.xlu0 %4074  ;;  %8682 = vmatmul.mubr.msk.f32.vlgmr.msra.gmra.mxu0 %vm4160_vm8, %v4141_v4  ;;  %8687 = vmatmul.mubr.msk.f32.vlgmr.msra.gmra.mxu1 %vm4160_vm8, %v4142_v38 }
0x19fa   :  { %v9004_v41 = vpop.eup %9003  ;;  %8690 = vmatpush3.msk.msra.mxu0 %vm4164_vm7, %v10537_v25  ;;  %8695 = vmatpush3.msk.msra.mxu1 %vm4164_vm7, %v10539_v49  ;;  %v10826_v58 = vpop.f32.mrf.mxu1  ;;  %9017 = vrcp.f32 %v4075_v34 }
0x19fb   :  { %8691 = vmatprep.mubr.msk.f32.mxu0 %vm9048_vm2, %v11202_v63  ;;  %8696 = vmatprep.mubr.msk.f32.mxu1 %vm9048_vm2, %v11202_v63  ;;  %v4144_v17 = vmul.f32 %v9004_v41, %v10664_v0  ;;  %v9006_v6 = vpop.eup %9005 }
0x19fc   :  { %v8618_v12 = vpop.f32.mrf.mxu1  ;;  %v4078_v10 = vpop.xlane.xlu1 %4077  ;;  %8699 = vmatprep.subr.mxu0 %v11202_v63  ;;  %8704 = vmatprep.subr.mxu1 %v11202_v63  ;;  %v4145_v5 = vmul.f32 %v9006_v6, %v10670_v9 }
0x19fd   :  { %9019 = vrcp.f32 %v4078_v10  ;;  %v4081_v25 = vpop.xlane.xlu0 %4080  ;;  %8692 = vmatmul.mubr.msk.f32.vlgmr.msra.gmra.mxu0 %vm4160_vm8, %v4143_v52  ;;  %8697 = vmatmul.mubr.msk.f32.vlgmr.msra.gmra.mxu1 %vm4160_vm8, %v4144_v17 }
0x19fe   :  { %v9008_v49 = vpop.eup %9007  ;;  %8700 = vmatpush3.msk.msra.mxu0 %vm4164_vm7, %v10541_v62  ;;  %8705 = vmatpush3.msk.msra.mxu1 %vm4164_vm7, %v10545_v8  ;;  %9021 = vrcp.f32 %v4081_v25 }
0x19ff   :  { %8701 = vmatprep.mubr.msk.f32.mxu0 %vm9048_vm2, %v11202_v63  ;;  %8706 = vmatprep.mubr.msk.f32.mxu1 %vm9048_vm2, %v11202_v63  ;;  %v4146_v0 = vmul.f32 %v9008_v49, %v10674_v60  ;;  %v9010_v21 = vpop.eup %9009 }
0x1a00   :  { %v10848_v35 = vpop.f32.mrf.mxu0  ;;  %v4084_v39 = vpop.xlane.xlu1 %4083  ;;  %8709 = vmatprep.subr.mxu0 %v11202_v63  ;;  %8714 = vmatprep.subr.mxu1 %v11202_v63  ;;  %v4147_v2 = vmul.f32 %v9010_v21, %v10680_v18 }
0x1a01   :  { %v6633_v62 = vcombine.low %v10826_v58, %v10848_v35  ;;  %9023 = vrcp.f32 %v4084_v39  ;;  %v4087_v8 = vpop.xlane.xlu0 %4086  ;;  %8702 = vmatmul.mubr.msk.f32.vlgmr.msra.gmra.mxu0 %vm4160_vm8, %v4145_v5  ;;  %8707 = vmatmul.mubr.msk.f32.vlgmr.msra.gmra.mxu1 %vm4160_vm8, %v4146_v0 }
0x1a02   :  { %v9012_v9 = vpop.eup %9011  ;;  %8710 = vmatpush3.msk.msra.mxu0 %vm4164_vm7, %v10555_v3  ;;  %8715 = vmatpush3.msk.msra.mxu1 %vm4164_vm7, %v10549_v55  ;;  %v8623_v60 = vpop.f32.mrf.mxu0  ;;  %9025 = vrcp.f32 %v4087_v8 }
0x1a03   :  { %8711 = vmatprep.mubr.msk.f32.mxu0 %vm9048_vm2, %v11202_v63  ;;  %8716 = vmatprep.mubr.msk.f32.mxu1 %vm9048_vm2, %v11202_v63  ;;  %v4148_v7 = vmul.f32 %v9012_v9, %v10684_v56  ;;  %v9014_v28 = vpop.eup %9013  ;;  %v6728_v9 = vld [vmem:[%s11182_s4 + $0x18] sm:$0xff] }
0x1a04   :  { %v4090_v23 = vpop.xlane.xlu1 %4089  ;;  %8719 = vmatprep.subr.mxu0 %v11202_v63  ;;  %8724 = vmatprep.subr.mxu1 %v11202_v63  ;;  %v4149_v18 = vmul.f32 %v9014_v28, %v10689_v27 }
0x1a05   :  { %9027 = vrcp.f32 %v4090_v23  ;;  %v4093_v55 = vpop.xlane.xlu0 %4092  ;;  %8712 = vmatmul.mubr.msk.f32.vlgmr.msra.gmra.mxu0 %vm4160_vm8, %v4147_v2  ;;  %8717 = vmatmul.mubr.msk.f32.vlgmr.msra.gmra.mxu1 %vm4160_vm8, %v4148_v7 }
0x1a06   :  { %v9016_v3 = vpop.eup %9015  ;;  %8720 = vmatpush3.msk.msra.mxu0 %vm4164_vm7, %v11203_v20  ;;  %8725 = vmatpush3.msk.msra.mxu1 %vm4164_vm7, %v11204_v11  ;;  %9029 = vrcp.f32 %v4093_v55  ;;  %v6727_v55 = vld [vmem:[%s11182_s4 + $0x10] sm:$0xff] }
0x1a07   :  { %8721 = vmatprep.mubr.msk.f32.mxu0 %vm9048_vm2, %v11202_v63  ;;  %8726 = vmatprep.mubr.msk.f32.mxu1 %vm9048_vm2, %v11202_v63  ;;  %v4150_v56 = vmul.f32 %v9016_v3, %v10695_v57  ;;  %v9018_v51 = vpop.eup %9017 }
0x1a08   :  { %8729 = vmatprep.subr.mxu0 %v11202_v63  ;;  %8734 = vmatprep.subr.mxu1 %v11202_v63  ;;  %v4151_v27 = vmul.f32 %v9018_v51, %v10697_v22  ;;  %v6471_v46 = vpop.permute.xlu1 %6470  ;;  %v6726_v51 = vld [vmem:[%s11182_s4 + $0x8] sm:$0xff] }
0x1a09   :  { %8722 = vmatmul.mubr.msk.f32.vlgmr.msra.gmra.mxu0 %vm4160_vm8, %v4149_v18  ;;  %8727 = vmatmul.mubr.msk.f32.vlgmr.msra.gmra.mxu1 %vm4160_vm8, %v4150_v56  ;;  %v6548_v50 = vpop.permute.xlu0 %6547 }
0x1a0a   :  { %v9020_v19 = vpop.eup %9019  ;;  %8730 = vmatpush3.msk.msra.mxu0 %vm4164_vm7, %v11205_v42  ;;  %8735 = vmatpush3.msk.msra.mxu1 %vm4164_vm7, %v11206_v30 }
0x1a0b   :  { %8731 = vmatprep.mubr.msk.f32.mxu0 %vm9048_vm2, %v11202_v63  ;;  %8736 = vmatprep.mubr.msk.f32.mxu1 %vm9048_vm2, %v11202_v63  ;;  %v4152_v57 = vmul.f32 %v9020_v19, %v10699_v33  ;;  %v9022_v44 = vpop.eup %9021 }
0x1a0c   :  { %8739 = vmatprep.subr.mxu0 %v11202_v63  ;;  %8744 = vmatprep.subr.mxu1 %v11202_v63  ;;  %v4153_v22 = vmul.f32 %v9022_v44, %v10705_v54  ;;  %v6725_v44 = vld [vmem:[%s11182_s4] sm:$0xff]  ;;  %s9057_s4 = smov 24  }
0x1a0d   :  { %8732 = vmatmul.mubr.msk.f32.vlgmr.msra.gmra.mxu0 %vm4160_vm8, %v4151_v27  ;;  %8737 = vmatmul.mubr.msk.f32.vlgmr.msra.gmra.mxu1 %vm4160_vm8, %v4152_v57 }
0x1a0e   :  { %v9024_v1 = vpop.eup %9023  ;;  %8740 = vmatpush3.msk.msra.mxu0 %vm4164_vm7, %v11207_v45  ;;  %8745 = vmatpush3.msk.msra.mxu1 %vm4164_vm7, %v10733_v26 }
0x1a0f   :  { %8741 = vmatprep.mubr.msk.f32.mxu0 %vm9048_vm2, %v11202_v63  ;;  %8746 = vmatprep.mubr.msk.f32.mxu1 %vm9048_vm2, %v11202_v63  ;;  %v4154_v33 = vmul.f32 %v9024_v1, %v10711_v43  ;;  %v9026_v53 = vpop.eup %9025 }
0x1a10   :  { %8749 = vmatprep.subr.mxu0 %v11202_v63  ;;  %8754 = vmatprep.subr.mxu1 %v11202_v63  ;;  %v4155_v54 = vmul.f32 %v9026_v53, %v10713_v13 }
0x1a11   :  { %8742 = vmatmul.mubr.msk.f32.vlgmr.msra.gmra.mxu0 %vm4160_vm8, %v4153_v22  ;;  %8747 = vmatmul.mubr.msk.f32.vlgmr.msra.gmra.mxu1 %vm4160_vm8, %v4154_v33 }
0x1a12   :  { %v9028_v26 = vpop.eup %9027  ;;  %8750 = vmatpush3.msk.msra.mxu0 %vm4164_vm7, %v10731_v31  ;;  %8755 = vmatpush3.msk.msra.mxu1 %vm4164_vm7, %v6471_v46 }
0x1a13   :  { %8751 = vmatprep.mubr.msk.f32.mxu0 %vm9048_vm2, %v11202_v63  ;;  %8756 = vmatprep.mubr.msk.f32.mxu1 %vm9048_vm2, %v11202_v63  ;;  %v4156_v43 = vmul.f32 %v9028_v26, %v10719_v59  ;;  %v9030_v24 = vpop.eup %9029 }
0x1a14   :  { %8759 = vmatprep.subr.mxu0 %v11202_v63  ;;  %v4157_v31 = vmul.f32 %v9030_v24, %v10721_v61  ;;  %8764 = vmatprep.subr.msk.mxu1 %vm229_vm1, %v6728_v9 }
0x1a15   :  { %8752 = vmatmul.mubr.msk.f32.vlgmr.msra.gmra.mxu0 %vm4160_vm8, %v4155_v54  ;;  %8757 = vmatmul.mubr.msk.f32.vlgmr.msra.gmra.mxu1 %vm4160_vm8, %v4156_v43 }
0x1a16   :  { %8760 = vmatpush3.msk.msra.mxu0 %vm4164_vm7, %v6548_v50  ;;  %8761 = vmatprep.mubr.msk.f32.mxu0 %vm9048_vm2, %v11202_v63 }
0x1a17   :  { %8765 = vmatpush3.xpose.msk.msra.mxu1 %vm229_vm1, %v6728_v9 }
0x1a18   :  { %8766 = vmatprep.subr.msk.mxu1 %vm229_vm1, %v6727_v55 }
0x1a19   :  { %8762 = vmatmul.mubr.msk.f32.vlgmr.msra.gmra.mxu0 %vm4160_vm8, %v4157_v31 }
0x1a1b   :  { %8767 = vmatpush3.xpose.msk.msra.mxu1 %vm229_vm1, %v6727_v55 }
0x1a1c   :  { %8768 = vmatprep.subr.msk.mxu1 %vm229_vm1, %v6726_v51 }
0x1a1f   :  { %8769 = vmatpush3.xpose.msk.msra.mxu1 %vm229_vm1, %v6726_v51 }
0x1a20   :  { %8770 = vmatprep.subr.msk.mxu1 %vm229_vm1, %v6725_v44 }
0x1a23   :  { %8771 = vmatpush3.xpose.msk.msra.mxu1 %vm229_vm1, %v6725_v44 }
0x1a9b   :  { %v10929_v13 = vpop.f32.mrf.mxu1 }
0x1a9d   :  { %v8628_v59 = vpop.f32.mrf.mxu1 }
0x1a9f   :  { %v10931_v14 = vpop.f32.mrf.mxu1 }
0x1aa1   :  { %v8638_v29 = vpop.f32.mrf.mxu1 }
0x1aa3   :  { %v4849_v47 = vpop.f32.mrf.mxu1 }
0x1aa5   :  { %v10933_v48 = vpop.f32.mrf.mxu0  ;;  %v8648_v36 = vpop.f32.mrf.mxu1 }
0x1aa6   :  { %v6634_v4 = vcombine.low %v10929_v13, %v10933_v48  ;;  %v7700_v13 = vld [vmem:[%s11180_s8 + $0x2] ss:$0 sm:$0xff] }
0x1aa7   :  { %v8633_v38 = vpop.f32.mrf.mxu0  ;;  %v5003_v16 = vpop.f32.mrf.mxu1 }
0x1aa9   :  { %v10937_v63 = vpop.f32.mrf.mxu0  ;;  %v8658_v61 = vpop.f32.mrf.mxu1 }
0x1aaa   :  { %v6635_v15 = vcombine.low %v10931_v14, %v10937_v63  ;;  %v11209_v14 = vld [vmem:[#allocation3_spill] sm:$0xff] }
0x1aab   :  { %v8643_v34 = vpop.f32.mrf.mxu0  ;;  %v5157_v41 = vpop.f32.mrf.mxu1 }
0x1aad   :  { %v4926_v52 = vpop.f32.mrf.mxu0  ;;  %v8668_v17 = vpop.f32.mrf.mxu1 }
0x1aae   :  { %v6648_v6 = vcombine.low %v4849_v47, %v4926_v52 }
0x1aaf   :  { %v8653_v12 = vpop.f32.mrf.mxu0 }
0x1ab0   :  { %6652 = vrot.lane.b32.xlu1 %v6648_v6, %s9055_s14 }
0x1ab1   :  { %v5080_v10 = vpop.f32.mrf.mxu0 }
0x1ab2   :  { %v6649_v25 = vcombine.low %v5003_v16, %v5080_v10 }
0x1ab3   :  { %v8663_v49 = vpop.f32.mrf.mxu0 }
0x1ab4   :  { %6654 = vrot.lane.b32.xlu0 %v6649_v25, %s9055_s14 }
0x1ab5   :  { %v5234_v5 = vpop.f32.mrf.mxu0  ;;  %v5311_v0 = vpop.f32.mrf.mxu1 }
0x1ab6   :  { %v6650_v21 = vcombine.low %v5157_v41, %v5234_v5 }
0x1ab7   :  { %v8673_v39 = vpop.f32.mrf.mxu0  ;;  %v8678_v8 = vpop.f32.mrf.mxu1 }
0x1ab8   :  { %6656 = vrot.lane.b32.xlu1 %v6650_v21, %s9055_s14 }
0x1ab9   :  { %v5388_v60 = vpop.f32.mrf.mxu0  ;;  %v5465_v2 = vpop.f32.mrf.mxu1 }
0x1aba   :  { %v6651_v7 = vcombine.low %v5311_v0, %v5388_v60 }
0x1abb   :  { %v8683_v28 = vpop.f32.mrf.mxu0  ;;  %v8688_v23 = vpop.f32.mrf.mxu1 }
0x1abc   :  { %6658 = vrot.lane.b32.xlu0 %v6651_v7, %s9055_s14 }
0x1abd   :  { %v5542_v3 = vpop.f32.mrf.mxu0  ;;  %v5619_v20 = vpop.f32.mrf.mxu1 }
0x1abe   :  { %v6672_v11 = vcombine.low %v5465_v2, %v5542_v3 }
0x1abf   :  { %v8693_v18 = vpop.f32.mrf.mxu0  ;;  %v8698_v56 = vpop.f32.mrf.mxu1 }
0x1ac0   :  { %6676 = vrot.lane.b32.xlu1 %v6672_v11, %s9056_s1 }
0x1ac1   :  { %v5696_v19 = vpop.f32.mrf.mxu0  ;;  %v5773_v42 = vpop.f32.mrf.mxu1 }
0x1ac2   :  { %v6673_v30 = vcombine.low %v5619_v20, %v5696_v19 }
0x1ac3   :  { %v8703_v27 = vpop.f32.mrf.mxu0  ;;  %v8708_v57 = vpop.f32.mrf.mxu1 }
0x1ac4   :  { %6678 = vrot.lane.b32.xlu0 %v6673_v30, %s9056_s1 }
0x1ac5   :  { %v5850_v1 = vpop.f32.mrf.mxu0  ;;  %v5927_v45 = vpop.f32.mrf.mxu1 }
0x1ac6   :  { %v6674_v22 = vcombine.low %v5773_v42, %v5850_v1  ;;  %v11208_v42 = vld [vmem:[#allocation4_spill] sm:$0xff] }
0x1ac7   :  { %v8713_v33 = vpop.f32.mrf.mxu0  ;;  %v8718_v53 = vpop.f32.mrf.mxu1 }
0x1ac8   :  { %6680 = vrot.lane.b32.xlu1 %v6674_v22, %s9056_s1  ;;  %v11210_v22 = vld [vmem:[#allocation6_spill] sm:$0xff] }
0x1ac9   :  { %v6004_v46 = vpop.f32.mrf.mxu0  ;;  %v6081_v26 = vpop.f32.mrf.mxu1 }
0x1aca   :  { %v6675_v54 = vcombine.low %v5927_v45, %v6004_v46  ;;  %v11211_v46 = vld [vmem:[#allocation5_spill] sm:$0xff] }
0x1acb   :  { %v8723_v43 = vpop.f32.mrf.mxu0  ;;  %v8728_v24 = vpop.f32.mrf.mxu1 }
0x1acc   :  { %6682 = vrot.lane.b32.xlu0 %v6675_v54, %s9056_s1 }
0x1acd   :  { %v6158_v50 = vpop.f32.mrf.mxu0  ;;  %v6235_v31 = vpop.f32.mrf.mxu1 }
0x1ace   :  { %v6696_v59 = vcombine.low %v6081_v26, %v6158_v50 }
0x1acf   :  { %v8733_v29 = vpop.f32.mrf.mxu0  ;;  %v8738_v47 = vpop.f32.mrf.mxu1 }
0x1ad0   :  { %6700 = vrot.lane.b32.xlu1 %v6696_v59, %s9057_s4 }
0x1ad1   :  { %v6312_v36 = vpop.f32.mrf.mxu0  ;;  %v6389_v38 = vpop.f32.mrf.mxu1 }
0x1ad2   :  { %v6697_v16 = vcombine.low %v6235_v31, %v6312_v36 }
0x1ad3   :  { %v8743_v61 = vpop.f32.mrf.mxu0  ;;  %v8748_v34 = vpop.f32.mrf.mxu1 }
0x1ad4   :  { %6702 = vrot.lane.b32.xlu0 %v6697_v16, %s9057_s4 }
0x1ad5   :  { %v6466_v41 = vpop.f32.mrf.mxu0  ;;  %v6543_v52 = vpop.f32.mrf.mxu1 }
0x1ad6   :  { %v6698_v17 = vcombine.low %v6389_v38, %v6466_v41 }
0x1ad7   :  { %v8753_v6 = vpop.f32.mrf.mxu0  ;;  %v8758_v12 = vpop.f32.mrf.mxu1 }
0x1ad8   :  { %6704 = vrot.lane.b32.xlu1 %v6698_v17, %s9057_s4 }
0x1ad9   :  { %v6620_v10 = vpop.f32.mrf.mxu0 }
0x1ada   :  { %v6699_v25 = vcombine.low %v6543_v52, %v6620_v10 }
0x1adb   :  { %v8763_v49 = vpop.f32.mrf.mxu0 }
0x1adc   :  { %6706 = vrot.lane.b32.xlu0 %v6699_v25, %s9057_s4 }
0x1b22   :  { %v6653_v5 = vpop.permute.xlu1 %6652 }
0x1b23   :  { %v6712_v2 = vsel %vm1342_vm5, %v6632_v32, %v6653_v5 }
0x1b26   :  { %v6655_v0 = vpop.permute.xlu0 %6654 }
0x1b27   :  { %v6713_v3 = vsel %vm1342_vm5, %v6633_v62, %v6655_v0  ;;  %v6918_v0 = vld [vmem:[%s11183_s5 + $0x18] sm:$0xff] }
0x1b28   :  { %8778 = vmatprep.subr.msk.mxu1 %vm229_vm1, %v6918_v0 }
0x1b2a   :  { %v6657_v21 = vpop.permute.xlu1 %6656 }
0x1b2b   :  { %v6714_v37 = vsel %vm1342_vm5, %v6634_v4, %v6657_v21  ;;  %v6917_v21 = vld [vmem:[%s11183_s5 + $0x10] sm:$0xff] }
0x1b2e   :  { %v6659_v39 = vpop.permute.xlu0 %6658 }
0x1b2f   :  { %v6715_v58 = vsel %vm1342_vm5, %v6635_v15, %v6659_v39  ;;  %v6916_v39 = vld [vmem:[%s11183_s5 + $0x8] sm:$0xff] }
0x1b32   :  { %v6677_v8 = vpop.permute.xlu1 %6676 }
0x1b33   :  { %v6716_v7 = vsel %vm67_vm0, %v6712_v2, %v6677_v8  ;;  %v6915_v8 = vld [vmem:[%s11183_s5] sm:$0xff] }
0x1b36   :  { %v6679_v9 = vpop.permute.xlu0 %6678 }
0x1b37   :  { %v6717_v20 = vsel %vm67_vm0, %v6713_v3, %v6679_v9  ;;  %v7039_v9 = vld [vmem:[%s11184_s6 + $0x18] sm:$0xff] }
0x1b3a   :  { %v6681_v60 = vpop.permute.xlu1 %6680 }
0x1b3b   :  { %v6718_v32 = vsel %vm67_vm0, %v6714_v37, %v6681_v60 }
0x1b3e   :  { %v6683_v28 = vpop.permute.xlu0 %6682 }
0x1b3f   :  { %v6719_v35 = vsel %vm67_vm0, %v6715_v58, %v6683_v28  ;;  %v7709_v58 = vld [vmem:[%s11180_s8 + $0x5] ss:$0 sm:$0xff] }
0x1b42   :  { %v6701_v23 = vpop.permute.xlu1 %6700 }
0x1b43   :  { %v6721_v55 = vsel %vm6720_vm9, %v6716_v7, %v6701_v23 }
0x1b44   :  { %8772 = vmatprep.mubr.msk.f32.mxu1 %vm229_vm1, %v6721_v55 }
0x1b46   :  { %v6703_v11 = vpop.permute.xlu0 %6702 }
0x1b47   :  { %v6722_v40 = vsel %vm6720_vm9, %v6717_v20, %v6703_v11 }
0x1b48   :  { %8773 = vmatmul.mubr.msk.f32.vlgmr.msra.gmra.mxu1 %vm229_vm1, %v6722_v40 }
0x1b49   :  { %8779 = vmatpush3.xpose.msk.msra.mxu1 %vm229_vm1, %v6918_v0 }
0x1b4a   :  { %v6705_v18 = vpop.permute.xlu1 %6704  ;;  %8780 = vmatprep.subr.msk.mxu1 %vm229_vm1, %v6917_v21 }
0x1b4b   :  { %v6723_v56 = vsel %vm6720_vm9, %v6718_v32, %v6705_v18 }
0x1b4c   :  { %8775 = vmatprep.mubr.msk.f32.mxu1 %vm229_vm1, %v6723_v56 }
0x1b4d   :  { %8781 = vmatpush3.xpose.msk.msra.mxu1 %vm229_vm1, %v6917_v21 }
0x1b4e   :  { %v6707_v62 = vpop.permute.xlu0 %6706  ;;  %8782 = vmatprep.subr.msk.mxu1 %vm229_vm1, %v6916_v39 }
0x1b4f   :  { %v6724_v51 = vsel %vm6720_vm9, %v6719_v35, %v6707_v62 }
0x1b50   :  { %8776 = vmatmul.mubr.msk.f32.gmra.mxu1 %vm229_vm1, %v6724_v51 }
0x1b51   :  { %8783 = vmatpush3.xpose.msk.msra.mxu1 %vm229_vm1, %v6916_v39 }
0x1b52   :  { %8784 = vmatprep.subr.msk.mxu1 %vm229_vm1, %v6915_v8 }
0x1b55   :  { %8785 = vmatpush3.xpose.msk.msra.mxu1 %vm229_vm1, %v6915_v8 }
0x1b56   :  { %8792 = vmatprep.subr.msk.mxu1 %vm229_vm1, %v7039_v9 }
0x1c08   :  { %v8774_v48 = vpop.f32.mrf.mxu1 }
0x1c09   :  { %v6829_v4 = vadd.f32 %v8774_v48, %v7700_v13 }
0x1c0a   :  { %v6823_v19 = vpop.f32.mrf.mxu1 }
0x1c0b   :  { %v6843_v30 = vadd.f32 %v6829_v4, %v11208_v42  ;;  %v6824_v27 = vadd.f32 %v7700_v13, %v6823_v19 }
0x1c0d   :  { %v6842_v63 = vadd.f32 %v6824_v27, %v11209_v14  ;;  %v6849_v15 = vsel %vm229_vm1, %v6843_v30, 0.0  ;;  %v7038_v27 = vld [vmem:[%s11184_s6 + $0x10] sm:$0xff] }
0x1c0e   :  { %6850 = vadd.xlane.f32.xlu0 %v6849_v15 }
0x1c0f   :  { %v6846_v57 = vsel %vm229_vm1, %v6842_v63, 0.0 }
0x1c10   :  { %6847 = vadd.xlane.f32.xlu1 %v6846_v57  ;;  %v8777_v44 = vpop.f32.mrf.mxu1 }
0x1c11   :  { %v6839_v1 = vadd.f32 %v8777_v44, %v7700_v13 }
0x1c12   :  { %v6833_v45 = vpop.f32.mrf.mxu1 }
0x1c13   :  { %v6845_v33 = vadd.f32 %v6839_v1, %v11210_v22  ;;  %v6834_v53 = vadd.f32 %v7700_v13, %v6833_v45  ;;  %v7710_v13 = vld [vmem:[%s11180_s8 + $0x6] ss:$0 sm:$0xff]  ;;  %v7037_v45 = vld [vmem:[%s11184_s6 + $0x8] sm:$0xff] }
0x1c14   :  { %v7036_v22 = vld [vmem:[%s11184_s6] sm:$0xff] }
0x1c15   :  { %v6844_v26 = vadd.f32 %v6834_v53, %v11211_v46  ;;  %v6855_v54 = vsel %vm229_vm1, %v6845_v33, 0.0 }
0x1c16   :  { %6856 = vadd.xlane.f32.xlu1 %v6855_v54 }
0x1c17   :  { %v6852_v43 = vsel %vm229_vm1, %v6844_v26, 0.0 }
0x1c18   :  { %6853 = vadd.xlane.f32.xlu0 %v6852_v43 }
0x1c97   :  { %v6851_v24 = vpop.xlane.xlu0 %6850 }
0x1c98   :  { %v6860_v50 = vmul.f32 0.03125, %v6851_v24 }
0x1c99   :  { %v6848_v31 = vpop.xlane.xlu1 %6847 }
0x1c9a   :  { %v6864_v59 = vsub.f32 %v6843_v30, %v6860_v50  ;;  %v6859_v29 = vmul.f32 0.03125, %v6848_v31 }
0x1c9c   :  { %v6863_v47 = vsub.f32 %v6842_v63, %v6859_v29  ;;  %v6868_v36 = vmul.f32 %v6864_v59, %v6864_v59 }
0x1c9e   :  { %v6874_v38 = vsel %vm229_vm1, %v6868_v36, 0.0  ;;  %v6867_v16 = vmul.f32 %v6863_v47, %v6863_v47 }
0x1c9f   :  { %v6857_v61 = vpop.xlane.xlu1 %6856  ;;  %6875 = vadd.xlane.f32.xlu1 %v6874_v38  ;;  %v7720_v38 = vld [vmem:[%s11180_s8 + $0x4] ss:$0 sm:$0xff] }
0x1ca0   :  { %v6862_v34 = vmul.f32 0.03125, %v6857_v61  ;;  %v6871_v41 = vsel %vm229_vm1, %v6867_v16, 0.0 }
0x1ca1   :  { %6872 = vadd.xlane.f32.xlu0 %v6871_v41  ;;  %v6854_v52 = vpop.xlane.xlu0 %6853 }
0x1ca2   :  { %v6866_v17 = vsub.f32 %v6845_v33, %v6862_v34  ;;  %v6861_v6 = vmul.f32 0.03125, %v6854_v52  ;;  %v7711_v33 = vld [vmem:[%s11180_s8 + $0x3] ss:$0 sm:$0xff] }
0x1ca4   :  { %v6865_v12 = vsub.f32 %v6844_v26, %v6861_v6  ;;  %v6870_v10 = vmul.f32 %v6866_v17, %v6866_v17 }
0x1ca6   :  { %v6880_v25 = vsel %vm229_vm1, %v6870_v10, 0.0  ;;  %v6869_v49 = vmul.f32 %v6865_v12, %v6865_v12 }
0x1ca7   :  { %6881 = vadd.xlane.f32.xlu1 %v6880_v25 }
0x1ca8   :  { %v6877_v5 = vsel %vm229_vm1, %v6869_v49, 0.0 }
0x1ca9   :  { %6878 = vadd.xlane.f32.xlu0 %v6877_v5 }
0x1d28   :  { %v6876_v60 = vpop.xlane.xlu1 %6875 }
0x1d29   :  { %v6884_v2 = vmul.f32 0.03125, %v6876_v60  ;;  %v7239_v60 = vld [vmem:[%s11185_s7 + $0x70] sm:$0xff] }
0x1d2a   :  { %v6873_v7 = vpop.xlane.xlu0 %6872 }
0x1d2b   :  { %v6888_v28 = vadd.f32 1e-05, %v6884_v2  ;;  %v6883_v23 = vmul.f32 0.03125, %v6873_v7  ;;  %v7238_v2 = vld [vmem:[%s11185_s7 + $0x68] sm:$0xff]  ;;  %v7237_v7 = vld [vmem:[%s11185_s7 + $0x60] sm:$0xff] }
0x1d2d   :  { %9031 = vrsqrt.f32 %v6888_v28  ;;  %v6887_v55 = vadd.f32 1e-05, %v6883_v23  ;;  %v7236_v28 = vld [vmem:[%s11185_s7 + $0x58] sm:$0xff]  ;;  %v7235_v23 = vld [vmem:[%s11185_s7 + $0x50] sm:$0xff] }
0x1d2f   :  { %9033 = vrsqrt.f32 %v6887_v55  ;;  %v7234_v55 = vld [vmem:[%s11185_s7 + $0x48] sm:$0xff] }
0x1d30   :  { %v6882_v3 = vpop.xlane.xlu1 %6881 }
0x1d31   :  { %v6886_v20 = vmul.f32 0.03125, %v6882_v3  ;;  %v7233_v3 = vld [vmem:[%s11185_s7 + $0x40] sm:$0xff] }
0x1d32   :  { %v6879_v11 = vpop.xlane.xlu0 %6878 }
0x1d33   :  { %v6890_v40 = vadd.f32 1e-05, %v6886_v20  ;;  %v6885_v37 = vmul.f32 0.03125, %v6879_v11  ;;  %v7232_v20 = vld [vmem:[%s11185_s7 + $0x38] sm:$0xff]  ;;  %v7231_v11 = vld [vmem:[%s11185_s7 + $0x30] sm:$0xff] }
0x1d35   :  { %9035 = vrsqrt.f32 %v6890_v40  ;;  %v6889_v32 = vadd.f32 1e-05, %v6885_v37 }
0x1d37   :  { %9037 = vrsqrt.f32 %v6889_v32 }
0x1d3a   :  { %v9032_v18 = vpop.eup %9031 }
0x1d3b   :  { %v6896_v56 = vmul.f32 %v9032_v18, %v6864_v59 }
0x1d3c   :  { %v9034_v35 = vpop.eup %9033 }
0x1d3d   :  { %v6895_v62 = vmul.f32 %v9034_v35, %v6863_v47  ;;  %v6904_v51 = vmul.f32 %v7709_v58, %v6896_v56 }
0x1d3f   :  { %v6903_v48 = vmul.f32 %v7709_v58, %v6895_v62  ;;  %v6912_v42 = vadd.f32 %v7710_v13, %v6904_v51 }
0x1d41   :  { %v6911_v4 = vadd.f32 %v7710_v13, %v6903_v48 }
0x1d42   :  { %v9036_v19 = vpop.eup %9035 }
0x1d43   :  { %8786 = vmatprep.mubr.msk.f32.mxu1 %vm229_vm1, %v6911_v4  ;;  %v6898_v30 = vmul.f32 %v9036_v19, %v6866_v17 }
0x1d44   :  { %v9038_v14 = vpop.eup %9037  ;;  %8787 = vmatmul.mubr.msk.f32.vlgmr.msra.gmra.mxu1 %vm229_vm1, %v6912_v42 }
0x1d45   :  { %v6897_v63 = vmul.f32 %v9038_v14, %v6865_v12  ;;  %8793 = vmatpush3.xpose.msk.msra.mxu1 %vm229_vm1, %v7039_v9  ;;  %v6906_v15 = vmul.f32 %v7709_v58, %v6898_v30  ;;  %v7240_v9 = vld [vmem:[%s11185_s7 + $0x78] sm:$0xff] }
0x1d46   :  { %8794 = vmatprep.subr.msk.mxu1 %vm229_vm1, %v7038_v27  ;;  %8806 = vmatprep.subr.msk.mxu0 %vm229_vm1, %v7240_v9 }
0x1d47   :  { %v6905_v57 = vmul.f32 %v7709_v58, %v6897_v63  ;;  %v6914_v1 = vadd.f32 %v7710_v13, %v6906_v15  ;;  %8807 = vmatpush3.xpose.msk.msra.mxu0 %vm229_vm1, %v7240_v9 }
0x1d48   :  { %8808 = vmatprep.subr.msk.mxu0 %vm229_vm1, %v7239_v60 }
0x1d49   :  { %v6913_v44 = vadd.f32 %v7710_v13, %v6905_v57  ;;  %8795 = vmatpush3.xpose.msk.msra.mxu1 %vm229_vm1, %v7038_v27 }
0x1d4a   :  { %8796 = vmatprep.subr.msk.mxu1 %vm229_vm1, %v7037_v45 }
0x1d4b   :  { %8789 = vmatprep.mubr.msk.f32.mxu1 %vm229_vm1, %v6913_v44  ;;  %8809 = vmatpush3.xpose.msk.msra.mxu0 %vm229_vm1, %v7239_v60 }
0x1d4c   :  { %8790 = vmatmul.mubr.msk.f32.gmra.mxu1 %vm229_vm1, %v6914_v1  ;;  %8810 = vmatprep.subr.msk.mxu0 %vm229_vm1, %v7238_v2 }
0x1d4d   :  { %8797 = vmatpush3.xpose.msk.msra.mxu1 %vm229_vm1, %v7037_v45  ;;  %v7228_v45 = vld [vmem:[%s11185_s7 + $0x18] sm:$0xff] }
0x1d4e   :  { %8798 = vmatprep.subr.msk.mxu1 %vm229_vm1, %v7036_v22 }
0x1d4f   :  { %8811 = vmatpush3.xpose.msk.msra.mxu0 %vm229_vm1, %v7238_v2  ;;  %v7731_v2 = vld [vmem:[%s11180_s8 + $0x9] ss:$0 sm:$0xff] }
0x1d50   :  { %8812 = vmatprep.subr.msk.mxu0 %vm229_vm1, %v7237_v7 }
0x1d51   :  { %8799 = vmatpush3.xpose.msk.msra.mxu1 %vm229_vm1, %v7036_v22  ;;  %v7227_v22 = vld [vmem:[%s11185_s7 + $0x10] sm:$0xff] }
0x1d53   :  { %8813 = vmatpush3.xpose.msk.msra.mxu0 %vm229_vm1, %v7237_v7 }
0x1d54   :  { %8814 = vmatprep.subr.msk.mxu0 %vm229_vm1, %v7236_v28 }
0x1d57   :  { %8815 = vmatpush3.xpose.msk.msra.mxu0 %vm229_vm1, %v7236_v28 }
0x1d58   :  { %8816 = vmatprep.subr.msk.mxu0 %vm229_vm1, %v7235_v23 }
0x1d5b   :  { %8817 = vmatpush3.xpose.msk.msra.mxu0 %vm229_vm1, %v7235_v23 }
0x1d5c   :  { %8818 = vmatprep.subr.msk.mxu0 %vm229_vm1, %v7234_v55 }
0x1d5f   :  { %8819 = vmatpush3.xpose.msk.msra.mxu0 %vm229_vm1, %v7234_v55 }
0x1d60   :  { %8820 = vmatprep.subr.msk.mxu0 %vm229_vm1, %v7233_v3 }
0x1d63   :  { %8821 = vmatpush3.xpose.msk.msra.mxu0 %vm229_vm1, %v7233_v3 }
0x1d64   :  { %8822 = vmatprep.subr.msk.mxu0 %vm229_vm1, %v7232_v20 }
0x1d67   :  { %8823 = vmatpush3.xpose.msk.msra.mxu0 %vm229_vm1, %v7232_v20 }
0x1d68   :  { %8824 = vmatprep.subr.msk.mxu0 %vm229_vm1, %v7231_v11 }
0x1d6b   :  { %8825 = vmatpush3.xpose.msk.msra.mxu0 %vm229_vm1, %v7231_v11 }
0x1e04   :  { %v8788_v53 = vpop.f32.mrf.mxu1 }
0x1e05   :  { %v7019_v46 = vadd.f32 %v8788_v53, %v7711_v33  ;;  %v7225_v53 = vld [vmem:[%s11185_s7] sm:$0xff] }
0x1e06   :  { %v7013_v26 = vpop.f32.mrf.mxu1 }
0x1e07   :  { %v7014_v54 = vadd.f32 %v7711_v33, %v7013_v26  ;;  %v7033_v24 = vmax.f32 %v7019_v46, 0.0 }
0x1e09   :  { %v7032_v43 = vmax.f32 %v7014_v54, 0.0 }
0x1e0b   :  { %8800 = vmatprep.mubr.msk.f32.mxu1 %vm229_vm1, %v7032_v43 }
0x1e0c   :  { %v8791_v50 = vpop.f32.mrf.mxu1  ;;  %8801 = vmatmul.mubr.msk.f32.vlgmr.msra.gmra.mxu1 %vm229_vm1, %v7033_v24 }
0x1e0d   :  { %v7029_v31 = vadd.f32 %v8791_v50, %v7711_v33 }
0x1e0e   :  { %v7023_v59 = vpop.f32.mrf.mxu1 }
0x1e0f   :  { %v7024_v29 = vadd.f32 %v7711_v33, %v7023_v59  ;;  %v7035_v36 = vmax.f32 %v7029_v31, 0.0  ;;  %v7226_v33 = vld [vmem:[%s11185_s7 + $0x8] sm:$0xff] }
0x1e11   :  { %v7034_v47 = vmax.f32 %v7024_v29, 0.0 }
0x1e13   :  { %8803 = vmatprep.mubr.msk.f32.mxu1 %vm229_vm1, %v7034_v47 }
0x1e14   :  { %8804 = vmatmul.mubr.msk.f32.gmra.mxu1 %vm229_vm1, %v7035_v36 }
0x1ecc   :  { %v8802_v16 = vpop.f32.mrf.mxu1 }
0x1ecd   :  { %v7140_v61 = vadd.f32 %v8802_v16, %v7720_v38 }
0x1ece   :  { %v7134_v34 = vpop.f32.mrf.mxu1 }
0x1ecf   :  { %v7154_v41 = vadd.f32 %v7140_v61, %v6912_v42  ;;  %v7135_v52 = vadd.f32 %v7720_v38, %v7134_v34  ;;  %v7729_v34 = vld [vmem:[%s11180_s8 + $0x7] ss:$0 sm:$0xff] }
0x1ed1   :  { %v7153_v17 = vadd.f32 %v7135_v52, %v6911_v4  ;;  %v7160_v6 = vsel %vm229_vm1, %v7154_v41, 0.0 }
0x1ed2   :  { %7161 = vadd.xlane.f32.xlu1 %v7160_v6  ;;  %v7730_v6 = vld [vmem:[%s11180_s8 + $0x8] ss:$0 sm:$0xff] }
0x1ed3   :  { %v7157_v12 = vsel %vm229_vm1, %v7153_v17, 0.0 }
0x1ed4   :  { %7158 = vadd.xlane.f32.xlu0 %v7157_v12  ;;  %v8805_v10 = vpop.f32.mrf.mxu1 }
0x1ed5   :  { %v7150_v25 = vadd.f32 %v8805_v10, %v7720_v38 }
0x1ed6   :  { %v7144_v49 = vpop.f32.mrf.mxu1 }
0x1ed7   :  { %v7156_v5 = vadd.f32 %v7150_v25, %v6914_v1  ;;  %v7145_v0 = vadd.f32 %v7720_v38, %v7144_v49  ;;  %v7229_v1 = vld [vmem:[%s11185_s7 + $0x20] sm:$0xff] }
0x1ed9   :  { %v7155_v21 = vadd.f32 %v7145_v0, %v6913_v44  ;;  %v7166_v39 = vsel %vm229_vm1, %v7156_v5, 0.0  ;;  %v7230_v44 = vld [vmem:[%s11185_s7 + $0x28] sm:$0xff] }
0x1eda   :  { %7167 = vadd.xlane.f32.xlu1 %v7166_v39  ;;  %8826 = vmatprep.subr.msk.mxu0 %vm229_vm1, %v7230_v44 }
0x1edb   :  { %v7163_v8 = vsel %vm229_vm1, %v7155_v21, 0.0  ;;  %8827 = vmatpush3.xpose.msk.msra.mxu0 %vm229_vm1, %v7230_v44 }
0x1edc   :  { %7164 = vadd.xlane.f32.xlu0 %v7163_v8  ;;  %8828 = vmatprep.subr.msk.mxu0 %vm229_vm1, %v7229_v1 }
0x1edf   :  { %8829 = vmatpush3.xpose.msk.msra.mxu0 %vm229_vm1, %v7229_v1 }
0x1ee0   :  { %8830 = vmatprep.subr.msk.mxu0 %vm229_vm1, %v7228_v45 }
0x1ee3   :  { %8831 = vmatpush3.xpose.msk.msra.mxu0 %vm229_vm1, %v7228_v45 }
0x1ee4   :  { %8832 = vmatprep.subr.msk.mxu0 %vm229_vm1, %v7227_v22 }
0x1ee7   :  { %8833 = vmatpush3.xpose.msk.msra.mxu0 %vm229_vm1, %v7227_v22 }
0x1ee8   :  { %8834 = vmatprep.subr.msk.mxu0 %vm229_vm1, %v7226_v33 }
0x1eeb   :  { %8835 = vmatpush3.xpose.msk.msra.mxu0 %vm229_vm1, %v7226_v33 }
0x1eec   :  { %8836 = vmatprep.subr.msk.mxu0 %vm229_vm1, %v7225_v53 }
0x1eef   :  { %8837 = vmatpush3.xpose.msk.msra.mxu0 %vm229_vm1, %v7225_v53 }
0x1f5b   :  { %v7162_v40 = vpop.xlane.xlu1 %7161 }
0x1f5c   :  { %v7170_v37 = vmul.f32 0.03125, %v7162_v40 }
0x1f5d   :  { %v7159_v32 = vpop.xlane.xlu0 %7158 }
0x1f5e   :  { %v7174_v18 = vsub.f32 %v7154_v41, %v7170_v37  ;;  %v7169_v56 = vmul.f32 0.03125, %v7159_v32 }
0x1f60   :  { %v7173_v58 = vsub.f32 %v7153_v17, %v7169_v56  ;;  %v7178_v35 = vmul.f32 %v7174_v18, %v7174_v18 }
0x1f62   :  { %v7184_v62 = vsel %vm229_vm1, %v7178_v35, 0.0  ;;  %v7177_v51 = vmul.f32 %v7173_v58, %v7173_v58 }
0x1f63   :  { %7185 = vadd.xlane.f32.xlu1 %v7184_v62  ;;  %v7168_v13 = vpop.xlane.xlu1 %7167 }
0x1f64   :  { %v7172_v48 = vmul.f32 0.03125, %v7168_v13  ;;  %v7181_v4 = vsel %vm229_vm1, %v7177_v51, 0.0 }
0x1f65   :  { %7182 = vadd.xlane.f32.xlu0 %v7181_v4  ;;  %v7165_v19 = vpop.xlane.xlu0 %7164 }
0x1f66   :  { %v7176_v42 = vsub.f32 %v7156_v5, %v7172_v48  ;;  %v7171_v30 = vmul.f32 0.03125, %v7165_v19 }
0x1f68   :  { %v7175_v27 = vsub.f32 %v7155_v21, %v7171_v30  ;;  %v7180_v14 = vmul.f32 %v7176_v42, %v7176_v42 }
0x1f6a   :  { %v7190_v63 = vsel %vm229_vm1, %v7180_v14, 0.0  ;;  %v7179_v15 = vmul.f32 %v7175_v27, %v7175_v27 }
0x1f6b   :  { %7191 = vadd.xlane.f32.xlu1 %v7190_v63 }
0x1f6c   :  { %v7187_v57 = vsel %vm229_vm1, %v7179_v15, 0.0 }
0x1f6d   :  { %7188 = vadd.xlane.f32.xlu0 %v7187_v57 }
0x1fec   :  { %v7186_v46 = vpop.xlane.xlu1 %7185 }
0x1fed   :  { %v7194_v26 = vmul.f32 0.03125, %v7186_v46 }
0x1fee   :  { %v7183_v54 = vpop.xlane.xlu0 %7182 }
0x1fef   :  { %v7198_v43 = vadd.f32 1e-05, %v7194_v26  ;;  %v7193_v24 = vmul.f32 0.03125, %v7183_v54 }
0x1ff1   :  { %9039 = vrsqrt.f32 %v7198_v43  ;;  %v7197_v50 = vadd.f32 1e-05, %v7193_v24 }
0x1ff3   :  { %9041 = vrsqrt.f32 %v7197_v50 }
0x1ff4   :  { %v7192_v31 = vpop.xlane.xlu1 %7191 }
0x1ff5   :  { %v7196_v59 = vmul.f32 0.03125, %v7192_v31 }
0x1ff6   :  { %v7189_v29 = vpop.xlane.xlu0 %7188 }
0x1ff7   :  { %v7200_v47 = vadd.f32 1e-05, %v7196_v59  ;;  %v7195_v36 = vmul.f32 0.03125, %v7189_v29 }
0x1ff9   :  { %9043 = vrsqrt.f32 %v7200_v47  ;;  %v7199_v38 = vadd.f32 1e-05, %v7195_v36 }
0x1ffb   :  { %9045 = vrsqrt.f32 %v7199_v38 }
0x1ffe   :  { %v9040_v16 = vpop.eup %9039 }
0x1fff   :  { %v7206_v61 = vmul.f32 %v9040_v16, %v7174_v18 }
0x2000   :  { %v9042_v41 = vpop.eup %9041 }
0x2001   :  { %v7205_v52 = vmul.f32 %v9042_v41, %v7173_v58  ;;  %v7214_v17 = vmul.f32 %v7729_v34, %v7206_v61 }
0x2003   :  { %v7213_v12 = vmul.f32 %v7729_v34, %v7205_v52  ;;  %v7222_v49 = vadd.f32 %v7730_v6, %v7214_v17 }
0x2005   :  { %v7221_v10 = vadd.f32 %v7730_v6, %v7213_v12 }
0x2006   :  { %v9044_v25 = vpop.eup %9043 }
0x2007   :  { %8838 = vmatprep.mubr.msk.f32.mxu0 %vm229_vm1, %v7221_v10  ;;  %v7208_v5 = vmul.f32 %v9044_v25, %v7176_v42 }
0x2008   :  { %v9046_v0 = vpop.eup %9045  ;;  %8839 = vmatmul.mubr.msk.f32.vlgmr.msra.gmra.mxu0 %vm229_vm1, %v7222_v49 }
0x2009   :  { %v7207_v21 = vmul.f32 %v9046_v0, %v7175_v27  ;;  %v7216_v39 = vmul.f32 %v7729_v34, %v7208_v5 }
0x200b   :  { %v7215_v8 = vmul.f32 %v7729_v34, %v7207_v21  ;;  %v7224_v60 = vadd.f32 %v7730_v6, %v7216_v39 }
0x200d   :  { %v7223_v9 = vadd.f32 %v7730_v6, %v7215_v8 }
0x200f   :  { %8841 = vmatprep.mubr.msk.f32.mxu0 %vm229_vm1, %v7223_v9 }
0x2010   :  { %8842 = vmatmul.mubr.msk.f32.gmra.mxu0 %vm229_vm1, %v7224_v60 }
0x20c8   :  { %v8840_v7 = vpop.f32.mrf.mxu0 }
0x20c9   :  { %v7377_v28 = vadd.f32 %v8840_v7, %v7731_v2 }
0x20ca   :  { %v7371_v23 = vpop.f32.mrf.mxu0 }
0x20cb   :  { %7391 = vst [vmem:[%s11186_s9 + $0x8] sm:$0xff] %v7377_v28  ;;  %v7372_v55 = vadd.f32 %v7731_v2, %v7371_v23 }
0x20cd   :  { %7390 = vst [vmem:[%s11186_s9] sm:$0xff] %v7372_v55 }
0x20d0   :  { %v8843_v3 = vpop.f32.mrf.mxu0 }
0x20d1   :  { %v7387_v20 = vadd.f32 %v8843_v3, %v7731_v2 }
0x20d2   :  { %v7381_v11 = vpop.f32.mrf.mxu0 }
0x20d3   :  { %7393 = vst [vmem:[%s11186_s9 + $0x18] sm:$0xff] %v7387_v20  ;;  %v7382_v40 = vadd.f32 %v7731_v2, %v7381_v11 }
0x20d5   :  { %7392 = vst [vmem:[%s11186_s9 + $0x10] sm:$0xff] %v7382_v40 }

</bundles_post_ra>
